<compile_context>
chip_gen: v7x
topology: tpu7x:2x2x1
jax: 0.10.0
libtpu: 0.0.40
codegen_flags: <defaults>
</compile_context>

<pallas_src>
import jax
import jax.numpy as jnp
from jax.experimental import pallas as pl
from jax.experimental.pallas import tpu as pltpu

D_MODEL = 512
WINDOW = 180
INTERMEDIATE = D_MODEL * 2
LEAKY_SLOPE = 0.01          # F.leaky_relu default
N_CLASSES = 3
W_PAD = 256                 # lane-aligned padded width for the raw inputs (>= WINDOW)
OUT_W = 128                 # lane-dense packed output width
EPS_STD = 1e-9
EPS_LN = 1e-5               # PyTorch LayerNorm default


def _round_up(x, m):
    return (x + m - 1) // m * m


def _leaky_relu(x):
    return jnp.where(x >= 0, x, LEAKY_SLOPE * x)


def network_kernel(x_ref,
                   w_init_ref, b_init_ref,
                   ln_g_ref, ln_b_ref,
                   w1a_ref, b1a_ref, w1b_ref, b1b_ref,
                   w2a_ref, b2a_ref, w2b_ref, b2b_ref,
                   w_f_ref, b_f_ref,
                   o_ref):
    x = x_ref[...].astype(jnp.float32)               # (TB, W_PAD); cols >= WINDOW are zero

    # --- per-row standardization over the real WINDOW columns (torch.std -> unbiased)
    col_in = jax.lax.broadcasted_iota(jnp.int32, x.shape, 1)
    n = jnp.float32(WINDOW)
    mean = jnp.sum(x, axis=-1, keepdims=True) / n    # zero padding does not change the sum
    centered = jnp.where(col_in < WINDOW, x - mean, 0.0)
    var = jnp.sum(centered * centered, axis=-1, keepdims=True) / (n - 1.0)
    std = jnp.sqrt(var)
    inv_std = 1.0 / (std + EPS_STD)                  # exact: (TB,1) column, negligible cost
    xn = centered * inv_std                          # padded cols stay exactly 0
    xn_last = xn[:, WINDOW - 1:WINDOW]               # standardized inputs[:, -1]

    # --- init_fc: (TB, W_PAD) @ (W_PAD, D_MODEL); bf16 operands, f32 accumulation
    h = jnp.dot(xn.astype(jnp.bfloat16), w_init_ref[...],
                preferred_element_type=jnp.float32) + b_init_ref[...]

    # --- LayerNorm(D_MODEL), eps=1e-5, biased variance
    mu = jnp.mean(h, axis=-1, keepdims=True)
    v = jnp.mean((h - mu) ** 2, axis=-1, keepdims=True)
    h = (h - mu) * jax.lax.rsqrt(v + EPS_LN) * ln_g_ref[...] + ln_b_ref[...]

    # --- 2 x FCResLayer (dropout p=0 -> identity); residual path kept in f32
    def res_layer(h, wa, ba, wb, bb):
        y = jnp.dot(h.astype(jnp.bfloat16), wa, preferred_element_type=jnp.float32) + ba
        y = _leaky_relu(y)
        y = jnp.dot(y.astype(jnp.bfloat16), wb, preferred_element_type=jnp.float32) + bb
        return y + h

    h = res_layer(h, w1a_ref[...], b1a_ref[...], w1b_ref[...], b1b_ref[...])
    h = res_layer(h, w2a_ref[...], b2a_ref[...], w2b_ref[...], b2b_ref[...])

    # --- final_fc (weight padded to 128 lane-dense columns) + masked softmax over 3 classes
    logits = jnp.dot(h.astype(jnp.bfloat16), w_f_ref[...],
                     preferred_element_type=jnp.float32) + b_f_ref[...]    # (TB, OUT_W)
    col_out = jax.lax.broadcasted_iota(jnp.int32, logits.shape, 1)
    logits = jnp.where(col_out < N_CLASSES, logits, -1e30)
    m = jnp.max(logits, axis=-1, keepdims=True)
    e = jnp.exp(logits - m)                                 # padded cols underflow to 0
    probs = e / jnp.sum(e, axis=-1, keepdims=True)          # exact: probs sum to 1

    # --- pack all outputs into one lane-dense (TB, 128) slab
    out = probs                                             # cols 0..2: softmax, cols >=3: 0
    out = jnp.where(col_out == N_CLASSES, xn_last, out)     # col 3: standardized last value
    out = jnp.where(col_out == N_CLASSES + 1, mean, out)    # col 4: mean
    out = jnp.where(col_out == N_CLASSES + 2, std, out)     # col 5: std
    o_ref[...] = out.astype(o_ref.dtype)


def make_params(key):
    """Deterministic init mimicking the PyTorch module (stored f32, weights as (in, out))."""
    ks = jax.random.split(key, 12)

    def nrm(k, shape):
        return (0.02 * jax.random.normal(k, shape)).astype(jnp.float32)

    return {
        "w_init": nrm(ks[0], (WINDOW, D_MODEL)),
        "b_init": nrm(ks[1], (1, D_MODEL)),
        "ln_g": jnp.ones((1, D_MODEL), jnp.float32),
        "ln_b": jnp.zeros((1, D_MODEL), jnp.float32),
        "w1a": nrm(ks[2], (D_MODEL, INTERMEDIATE)),
        "b1a": nrm(ks[3], (1, INTERMEDIATE)),
        "w1b": nrm(ks[4], (INTERMEDIATE, D_MODEL)),
        "b1b": nrm(ks[5], (1, D_MODEL)),
        "w2a": nrm(ks[6], (D_MODEL, INTERMEDIATE)),
        "b2a": nrm(ks[7], (1, INTERMEDIATE)),
        "w2b": nrm(ks[8], (INTERMEDIATE, D_MODEL)),
        "b2b": nrm(ks[9], (1, D_MODEL)),
        "w_f": nrm(ks[10], (D_MODEL, N_CLASSES)),
        "b_f": nrm(ks[11], (1, N_CLASSES)),
    }


def prepare_params(params):
    """Pad to lane-aligned shapes; cast matmul weights to bf16 (f32 accumulation in-kernel).

    Call ONCE and reuse the returned tuple for every forward call (perf: avoids
    re-reading/writing all weights in HBM on every call)."""
    w_init = jnp.zeros((W_PAD, D_MODEL), jnp.bfloat16).at[:WINDOW, :].set(
        params["w_init"].astype(jnp.bfloat16))
    w_f = jnp.zeros((D_MODEL, OUT_W), jnp.bfloat16).at[:, :N_CLASSES].set(
        params["w_f"].astype(jnp.bfloat16))
    b_f = jnp.zeros((1, OUT_W), jnp.float32).at[:, :N_CLASSES].set(params["b_f"])
    kparams = (
        w_init, params["b_init"],
        params["ln_g"], params["ln_b"],
        params["w1a"].astype(jnp.bfloat16), params["b1a"],
        params["w1b"].astype(jnp.bfloat16), params["b1b"],
        params["w2a"].astype(jnp.bfloat16), params["b2a"],
        params["w2b"].astype(jnp.bfloat16), params["b2b"],
        w_f, b_f,
    )
    return jax.block_until_ready(jax.device_put(kparams))


def _choose_tb(batch):
    """Pick the batch tile: big enough to feed the MXU, small enough to cap padding
    waste at ~30% of B, and (when possible) >= 2 grid steps so both v7x cores work."""
    b8 = _round_up(max(batch, 1), 8)
    for tb in (512, 256, 128, 64, 32, 16, 8):
        bp = _round_up(b8, tb)
        if bp // tb < 2:
            continue                                 # need >= 2 grid steps for v7x megacore
        if bp - batch > max((3 * batch) // 10, 8):
            continue                                 # cap wasted (padded) MXU rows
        return tb, bp
    return 8, b8                                     # tiny batch: single 8-row step


def network_forward(market_values, kparams):
    """market_values: (B, WINDOW, D_BAR), kparams: prepare_params(...) output.
    Returns (softmax (B,3), last_std_input (B,1), mean (B,1), std (B,1))."""
    B, S, _ = market_values.shape
    assert S == WINDOW, f"seq_len must equal WINDOW={WINDOW}"

    TB, B_pad = _choose_tb(B)

    # channel 3, zero-padded in one shot to a lane-aligned (B_pad, 256) slab
    inputs = market_values[:, :, 3].astype(jnp.float32)
    x = jnp.pad(inputs, ((0, B_pad - B), (0, W_PAD - WINDOW)))

    x_spec = pl.BlockSpec((TB, W_PAD), lambda i: (i, 0))
    # weights/biases: full-array blocks, constant index_map, single-buffered ->
    # fetched once, stay resident, no wasted VMEM on a second buffer.
    w_specs = [pl.BlockSpec(p.shape, lambda i: (0, 0), pipeline_mode=pl.Buffered(1))
               for p in kparams]
    out_spec = pl.BlockSpec((TB, OUT_W), lambda i: (i, 0))

    out = pl.pallas_call(
        network_kernel,
        out_shape=jax.ShapeDtypeStruct((B_pad, OUT_W), jnp.float32),
        grid=(B_pad // TB,),
        in_specs=[x_spec] + w_specs,
        out_specs=out_spec,
        compiler_params=pltpu.CompilerParams(
            dimension_semantics=("parallel",),   # megacore split on v7x; harmless on v5e/v6e
            # ~4.5 MiB resident weights + <=4 MiB of tiles/intermediates at TB=512;
            # 32 MiB leaves headroom for Mosaic scratch on every generation incl. v7x.
            vmem_limit_bytes=32 << 20,
        ),
    )(x, *kparams)

    probs = out[:B, :N_CLASSES]
    last = out[:B, N_CLASSES:N_CLASSES + 1]
    mean = out[:B, N_CLASSES + 1:N_CLASSES + 2]
    std = out[:B, N_CLASSES + 2:N_CLASSES + 3]
    return probs, last, mean, std


def reference_forward(market_values, params):
    """Pure-JAX f32 reference mirroring the PyTorch forward."""
    x = market_values[:, :, 3].astype(jnp.float32)
    n = x.shape[1]
    mean = jnp.mean(x, axis=1, keepdims=True)
    std = jnp.sqrt(jnp.sum((x - mean) ** 2, axis=1, keepdims=True) / (n - 1))
    xn = (x - mean) / (std + EPS_STD)
    h = xn @ params["w_init"] + params["b_init"]
    mu = jnp.mean(h, axis=-1, keepdims=True)
    v = jnp.mean((h - mu) ** 2, axis=-1, keepdims=True)
    h = (h - mu) * jax.lax.rsqrt(v + EPS_LN) * params["ln_g"] + params["ln_b"]
    for wa, ba, wb, bb in (("w1a", "b1a", "w1b", "b1b"), ("w2a", "b2a", "w2b", "b2b")):
        y = h @ params[wa] + params[ba]
        y = jnp.where(y >= 0, y, LEAKY_SLOPE * y)
        y = y @ params[wb] + params[bb]
        h = y + h
    logits = h @ params["w_f"] + params["b_f"]
    probs = jax.nn.softmax(logits, axis=-1)
    return probs, xn[:, -1:], mean, std


if __name__ == "__main__":
    key = jax.random.PRNGKey(0)
    k_param, k_x = jax.random.split(key)
    params = make_params(k_param)
    kparams = prepare_params(params)     # one-time pad + bf16 cast of all weights

    batch, d_bar = 8, 5
    market_values = jax.random.normal(k_x, (batch, WINDOW, d_bar), dtype=jnp.float32)

    fwd = jax.jit(network_forward)
    probs, last, mean, std = fwd(market_values, kparams)
    jax.block_until_ready((probs, last, mean, std))

    r_probs, r_last, r_mean, r_std = reference_forward(market_values, params)

    assert probs.shape == (batch, N_CLASSES)
    assert last.shape == (batch, 1) and mean.shape == (batch, 1) and std.shape == (batch, 1)
    # bf16 matmuls (f32 accumulation) vs f32 reference -> loosened tolerance on network outputs
    assert jnp.allclose(probs, r_probs, atol=2e-2, rtol=2e-2), (probs, r_probs)
    assert jnp.allclose(jnp.sum(probs, axis=-1), 1.0, atol=1e-6), probs
    assert jnp.allclose(last, r_last, atol=1e-2, rtol=1e-2), (last, r_last)
    assert jnp.allclose(mean, r_mean, atol=1e-5, rtol=1e-5), (mean, r_mean)
    assert jnp.allclose(std, r_std, atol=1e-5, rtol=1e-5), (std, r_std)

    print("KERNEL_OK")
</pallas_src>

<mosaic_0001>
module attributes {stable_mosaic.version = 11 : i64} {
  func.func @network_kernel(%arg0: i32, %arg1: memref<8x256xf32, #tpu.memory_space<vmem>>, %arg2: memref<256x512xbf16, #tpu.memory_space<vmem>>, %arg3: memref<1x512xf32, #tpu.memory_space<vmem>>, %arg4: memref<1x512xf32, #tpu.memory_space<vmem>>, %arg5: memref<1x512xf32, #tpu.memory_space<vmem>>, %arg6: memref<512x1024xbf16, #tpu.memory_space<vmem>>, %arg7: memref<1x1024xf32, #tpu.memory_space<vmem>>, %arg8: memref<1024x512xbf16, #tpu.memory_space<vmem>>, %arg9: memref<1x512xf32, #tpu.memory_space<vmem>>, %arg10: memref<512x1024xbf16, #tpu.memory_space<vmem>>, %arg11: memref<1x1024xf32, #tpu.memory_space<vmem>>, %arg12: memref<1024x512xbf16, #tpu.memory_space<vmem>>, %arg13: memref<1x512xf32, #tpu.memory_space<vmem>>, %arg14: memref<512x128xbf16, #tpu.memory_space<vmem>>, %arg15: memref<1x128xf32, #tpu.memory_space<vmem>>, %arg16: memref<8x128xf32, #tpu.memory_space<vmem>>) attributes {dimension_semantics = [#tpu.dimension_semantics<parallel>], iteration_bounds = array<i64: 1>, scalar_prefetch = 0 : i64, scratch_operands = 0 : i64, tpu.core_type = #tpu.core_type<tc>, window_params = [{transform_indices = @transform_0, window_bounds = array<i64: 8, 256>}, {pipeline_mode = #tpu.pipeline_mode<synchronous>, transform_indices = @transform_1, window_bounds = array<i64: 256, 512>}, {pipeline_mode = #tpu.pipeline_mode<synchronous>, transform_indices = @transform_2, window_bounds = array<i64: 1, 512>}, {pipeline_mode = #tpu.pipeline_mode<synchronous>, transform_indices = @transform_3, window_bounds = array<i64: 1, 512>}, {pipeline_mode = #tpu.pipeline_mode<synchronous>, transform_indices = @transform_4, window_bounds = array<i64: 1, 512>}, {pipeline_mode = #tpu.pipeline_mode<synchronous>, transform_indices = @transform_5, window_bounds = array<i64: 512, 1024>}, {pipeline_mode = #tpu.pipeline_mode<synchronous>, transform_indices = @transform_6, window_bounds = array<i64: 1, 1024>}, {pipeline_mode = #tpu.pipeline_mode<synchronous>, transform_indices = @transform_7, window_bounds = array<i64: 1024, 512>}, {pipeline_mode = #tpu.pipeline_mode<synchronous>, transform_indices = @transform_8, window_bounds = array<i64: 1, 512>}, {pipeline_mode = #tpu.pipeline_mode<synchronous>, transform_indices = @transform_9, window_bounds = array<i64: 512, 1024>}, {pipeline_mode = #tpu.pipeline_mode<synchronous>, transform_indices = @transform_10, window_bounds = array<i64: 1, 1024>}, {pipeline_mode = #tpu.pipeline_mode<synchronous>, transform_indices = @transform_11, window_bounds = array<i64: 1024, 512>}, {pipeline_mode = #tpu.pipeline_mode<synchronous>, transform_indices = @transform_12, window_bounds = array<i64: 1, 512>}, {pipeline_mode = #tpu.pipeline_mode<synchronous>, transform_indices = @transform_13, window_bounds = array<i64: 512, 128>}, {pipeline_mode = #tpu.pipeline_mode<synchronous>, transform_indices = @transform_14, window_bounds = array<i64: 1, 128>}, {transform_indices = @transform_15, window_bounds = array<i64: 8, 128>}]} {
    %c0 = arith.constant 0 : index
    %c0_0 = arith.constant 0 : index
    %0 = vector.load %arg1[%c0, %c0_0] : memref<8x256xf32, #tpu.memory_space<vmem>>, vector<8x256xf32>
    %1 = tpu.iota {dimensions = array<i32: 1>} : vector<8x256xi32>
    %cst = arith.constant dense<0.000000e+00> : vector<8xf32>
    %2 = vector.multi_reduction <add>, %0, %cst [1] : vector<8x256xf32> to vector<8xf32>
    %3 = vector.shape_cast %2 : vector<8xf32> to vector<8x1xf32>
    %cst_1 = arith.constant 1.800000e+02 : f32
    %4 = vector.broadcast %cst_1 : f32 to vector<8x1xf32>
    %5 = arith.divf %3, %4 : vector<8x1xf32>
    %c180_i32 = arith.constant 180 : i32
    %6 = vector.broadcast %c180_i32 : i32 to vector<8x256xi32>
    %7 = arith.cmpi slt, %1, %6 : vector<8x256xi32>
    %8 = vector.broadcast %5 : vector<8x1xf32> to vector<8x256xf32>
    %9 = arith.subf %0, %8 : vector<8x256xf32>
    %cst_2 = arith.constant 0.000000e+00 : f32
    %10 = vector.broadcast %cst_2 : f32 to vector<8x256xf32>
    %11 = arith.select %7, %9, %10 : vector<8x256xi1>, vector<8x256xf32>
    %12 = arith.mulf %11, %11 : vector<8x256xf32>
    %cst_3 = arith.constant dense<0.000000e+00> : vector<8xf32>
    %13 = vector.multi_reduction <add>, %12, %cst_3 [1] : vector<8x256xf32> to vector<8xf32>
    %14 = vector.shape_cast %13 : vector<8xf32> to vector<8x1xf32>
    %cst_4 = arith.constant 1.800000e+02 : f32
    %cst_5 = arith.constant 1.000000e+00 : f32
    %15 = arith.subf %cst_4, %cst_5 : f32
    %16 = vector.broadcast %15 : f32 to vector<8x1xf32>
    %17 = arith.divf %14, %16 : vector<8x1xf32>
    %18 = math.sqrt %17 : vector<8x1xf32>
    %cst_6 = arith.constant 9.99999971E-10 : f32
    %19 = vector.broadcast %cst_6 : f32 to vector<8x1xf32>
    %20 = arith.addf %18, %19 : vector<8x1xf32>
    %cst_7 = arith.constant 1.000000e+00 : f32
    %21 = vector.broadcast %cst_7 : f32 to vector<8x1xf32>
    %22 = arith.divf %21, %20 : vector<8x1xf32>
    %23 = vector.broadcast %22 : vector<8x1xf32> to vector<8x256xf32>
    %24 = arith.mulf %11, %23 : vector<8x256xf32>
    %25 = vector.extract_strided_slice %24 {offsets = [0, 179], sizes = [8, 1], strides = [1, 1]} : vector<8x256xf32> to vector<8x1xf32>
    %26 = arith.truncf %24 : vector<8x256xf32> to vector<8x256xbf16>
    %c0_8 = arith.constant 0 : index
    %c0_9 = arith.constant 0 : index
    %27 = vector.load %arg2[%c0_8, %c0_9] : memref<256x512xbf16, #tpu.memory_space<vmem>>, vector<256x512xbf16>
    %cst_10 = arith.constant dense<0.000000e+00> : vector<8x512xf32>
    %28 = tpu.matmul %26, %27, %cst_10 {dimension_numbers = #tpu.dot_dimension_numbers<[1], [0], [0], [1], [0, 0, 1, 1], [], []>} : vector<8x256xbf16>, vector<256x512xbf16>, vector<8x512xf32> -> vector<8x512xf32>
    %c0_11 = arith.constant 0 : index
    %c0_12 = arith.constant 0 : index
    %29 = vector.load %arg3[%c0_11, %c0_12] : memref<1x512xf32, #tpu.memory_space<vmem>>, vector<1x512xf32>
    %30 = vector.broadcast %29 : vector<1x512xf32> to vector<8x512xf32>
    %31 = arith.addf %28, %30 : vector<8x512xf32>
    %cst_13 = arith.constant dense<0.000000e+00> : vector<8xf32>
    %32 = vector.multi_reduction <add>, %31, %cst_13 [1] : vector<8x512xf32> to vector<8xf32>
    %33 = vector.shape_cast %32 : vector<8xf32> to vector<8x1xf32>
    %cst_14 = arith.constant 5.120000e+02 : f32
    %34 = vector.broadcast %cst_14 : f32 to vector<8x1xf32>
    %35 = arith.divf %33, %34 : vector<8x1xf32>
    %36 = vector.broadcast %35 : vector<8x1xf32> to vector<8x512xf32>
    %37 = arith.subf %31, %36 : vector<8x512xf32>
    %38 = arith.mulf %37, %37 : vector<8x512xf32>
    %cst_15 = arith.constant dense<0.000000e+00> : vector<8xf32>
    %39 = vector.multi_reduction <add>, %38, %cst_15 [1] : vector<8x512xf32> to vector<8xf32>
    %40 = vector.shape_cast %39 : vector<8xf32> to vector<8x1xf32>
    %cst_16 = arith.constant 5.120000e+02 : f32
    %41 = vector.broadcast %cst_16 : f32 to vector<8x1xf32>
    %42 = arith.divf %40, %41 : vector<8x1xf32>
    %43 = vector.broadcast %35 : vector<8x1xf32> to vector<8x512xf32>
    %44 = arith.subf %31, %43 : vector<8x512xf32>
    %cst_17 = arith.constant 9.99999974E-6 : f32
    %45 = vector.broadcast %cst_17 : f32 to vector<8x1xf32>
    %46 = arith.addf %42, %45 : vector<8x1xf32>
    %47 = math.rsqrt %46 : vector<8x1xf32>
    %48 = vector.broadcast %47 : vector<8x1xf32> to vector<8x512xf32>
    %49 = arith.mulf %44, %48 : vector<8x512xf32>
    %c0_18 = arith.constant 0 : index
    %c0_19 = arith.constant 0 : index
    %50 = vector.load %arg4[%c0_18, %c0_19] : memref<1x512xf32, #tpu.memory_space<vmem>>, vector<1x512xf32>
    %51 = vector.broadcast %50 : vector<1x512xf32> to vector<8x512xf32>
    %52 = arith.mulf %49, %51 : vector<8x512xf32>
    %c0_20 = arith.constant 0 : index
    %c0_21 = arith.constant 0 : index
    %53 = vector.load %arg5[%c0_20, %c0_21] : memref<1x512xf32, #tpu.memory_space<vmem>>, vector<1x512xf32>
    %54 = vector.broadcast %53 : vector<1x512xf32> to vector<8x512xf32>
    %55 = arith.addf %52, %54 : vector<8x512xf32>
    %c0_22 = arith.constant 0 : index
    %c0_23 = arith.constant 0 : index
    %56 = vector.load %arg6[%c0_22, %c0_23] : memref<512x1024xbf16, #tpu.memory_space<vmem>>, vector<512x1024xbf16>
    %c0_24 = arith.constant 0 : index
    %c0_25 = arith.constant 0 : index
    %57 = vector.load %arg7[%c0_24, %c0_25] : memref<1x1024xf32, #tpu.memory_space<vmem>>, vector<1x1024xf32>
    %c0_26 = arith.constant 0 : index
    %c0_27 = arith.constant 0 : index
    %58 = vector.load %arg8[%c0_26, %c0_27] : memref<1024x512xbf16, #tpu.memory_space<vmem>>, vector<1024x512xbf16>
    %c0_28 = arith.constant 0 : index
    %c0_29 = arith.constant 0 : index
    %59 = vector.load %arg9[%c0_28, %c0_29] : memref<1x512xf32, #tpu.memory_space<vmem>>, vector<1x512xf32>
    %60 = arith.truncf %55 : vector<8x512xf32> to vector<8x512xbf16>
    %cst_30 = arith.constant dense<0.000000e+00> : vector<8x1024xf32>
    %61 = tpu.matmul %60, %56, %cst_30 {dimension_numbers = #tpu.dot_dimension_numbers<[1], [0], [0], [1], [0, 0, 1, 1], [], []>} : vector<8x512xbf16>, vector<512x1024xbf16>, vector<8x1024xf32> -> vector<8x1024xf32>
    %62 = vector.broadcast %57 : vector<1x1024xf32> to vector<8x1024xf32>
    %63 = arith.addf %61, %62 : vector<8x1024xf32>
    %cst_31 = arith.constant 0.000000e+00 : f32
    %64 = vector.broadcast %cst_31 : f32 to vector<8x1024xf32>
    %65 = arith.cmpf oge, %63, %64 : vector<8x1024xf32>
    %cst_32 = arith.constant 0.00999999977 : f32
    %66 = vector.broadcast %cst_32 : f32 to vector<8x1024xf32>
    %67 = arith.mulf %66, %63 : vector<8x1024xf32>
    %68 = arith.select %65, %63, %67 : vector<8x1024xi1>, vector<8x1024xf32>
    %69 = arith.truncf %68 : vector<8x1024xf32> to vector<8x1024xbf16>
    %cst_33 = arith.constant dense<0.000000e+00> : vector<8x512xf32>
    %70 = tpu.matmul %69, %58, %cst_33 {dimension_numbers = #tpu.dot_dimension_numbers<[1], [0], [0], [1], [0, 0, 1, 1], [], []>} : vector<8x1024xbf16>, vector<1024x512xbf16>, vector<8x512xf32> -> vector<8x512xf32>
    %71 = vector.broadcast %59 : vector<1x512xf32> to vector<8x512xf32>
    %72 = arith.addf %70, %71 : vector<8x512xf32>
    %73 = arith.addf %72, %55 : vector<8x512xf32>
    %c0_34 = arith.constant 0 : index
    %c0_35 = arith.constant 0 : index
    %74 = vector.load %arg10[%c0_34, %c0_35] : memref<512x1024xbf16, #tpu.memory_space<vmem>>, vector<512x1024xbf16>
    %c0_36 = arith.constant 0 : index
    %c0_37 = arith.constant 0 : index
    %75 = vector.load %arg11[%c0_36, %c0_37] : memref<1x1024xf32, #tpu.memory_space<vmem>>, vector<1x1024xf32>
    %c0_38 = arith.constant 0 : index
    %c0_39 = arith.constant 0 : index
    %76 = vector.load %arg12[%c0_38, %c0_39] : memref<1024x512xbf16, #tpu.memory_space<vmem>>, vector<1024x512xbf16>
    %c0_40 = arith.constant 0 : index
    %c0_41 = arith.constant 0 : index
    %77 = vector.load %arg13[%c0_40, %c0_41] : memref<1x512xf32, #tpu.memory_space<vmem>>, vector<1x512xf32>
    %78 = arith.truncf %73 : vector<8x512xf32> to vector<8x512xbf16>
    %cst_42 = arith.constant dense<0.000000e+00> : vector<8x1024xf32>
    %79 = tpu.matmul %78, %74, %cst_42 {dimension_numbers = #tpu.dot_dimension_numbers<[1], [0], [0], [1], [0, 0, 1, 1], [], []>} : vector<8x512xbf16>, vector<512x1024xbf16>, vector<8x1024xf32> -> vector<8x1024xf32>
    %80 = vector.broadcast %75 : vector<1x1024xf32> to vector<8x1024xf32>
    %81 = arith.addf %79, %80 : vector<8x1024xf32>
    %cst_43 = arith.constant 0.000000e+00 : f32
    %82 = vector.broadcast %cst_43 : f32 to vector<8x1024xf32>
    %83 = arith.cmpf oge, %81, %82 : vector<8x1024xf32>
    %cst_44 = arith.constant 0.00999999977 : f32
    %84 = vector.broadcast %cst_44 : f32 to vector<8x1024xf32>
    %85 = arith.mulf %84, %81 : vector<8x1024xf32>
    %86 = arith.select %83, %81, %85 : vector<8x1024xi1>, vector<8x1024xf32>
    %87 = arith.truncf %86 : vector<8x1024xf32> to vector<8x1024xbf16>
    %cst_45 = arith.constant dense<0.000000e+00> : vector<8x512xf32>
    %88 = tpu.matmul %87, %76, %cst_45 {dimension_numbers = #tpu.dot_dimension_numbers<[1], [0], [0], [1], [0, 0, 1, 1], [], []>} : vector<8x1024xbf16>, vector<1024x512xbf16>, vector<8x512xf32> -> vector<8x512xf32>
    %89 = vector.broadcast %77 : vector<1x512xf32> to vector<8x512xf32>
    %90 = arith.addf %88, %89 : vector<8x512xf32>
    %91 = arith.addf %90, %73 : vector<8x512xf32>
    %92 = arith.truncf %91 : vector<8x512xf32> to vector<8x512xbf16>
    %c0_46 = arith.constant 0 : index
    %c0_47 = arith.constant 0 : index
    %93 = vector.load %arg14[%c0_46, %c0_47] : memref<512x128xbf16, #tpu.memory_space<vmem>>, vector<512x128xbf16>
    %cst_48 = arith.constant dense<0.000000e+00> : vector<8x128xf32>
    %94 = tpu.matmul %92, %93, %cst_48 {dimension_numbers = #tpu.dot_dimension_numbers<[1], [0], [0], [1], [0, 0, 1, 1], [], []>} : vector<8x512xbf16>, vector<512x128xbf16>, vector<8x128xf32> -> vector<8x128xf32>
    %c0_49 = arith.constant 0 : index
    %c0_50 = arith.constant 0 : index
    %95 = vector.load %arg15[%c0_49, %c0_50] : memref<1x128xf32, #tpu.memory_space<vmem>>, vector<1x128xf32>
    %96 = vector.broadcast %95 : vector<1x128xf32> to vector<8x128xf32>
    %97 = arith.addf %94, %96 : vector<8x128xf32>
    %98 = tpu.iota {dimensions = array<i32: 1>} : vector<8x128xi32>
    %c3_i32 = arith.constant 3 : i32
    %99 = vector.broadcast %c3_i32 : i32 to vector<8x128xi32>
    %100 = arith.cmpi slt, %98, %99 : vector<8x128xi32>
    %cst_51 = arith.constant -1.000000e+30 : f32
    %101 = vector.broadcast %cst_51 : f32 to vector<8x128xf32>
    %102 = arith.select %100, %97, %101 : vector<8x128xi1>, vector<8x128xf32>
    %cst_52 = arith.constant dense<0xFF800000> : vector<8xf32>
    %103 = vector.multi_reduction <maximumf>, %102, %cst_52 [1] : vector<8x128xf32> to vector<8xf32>
    %104 = vector.shape_cast %103 : vector<8xf32> to vector<8x1xf32>
    %105 = vector.broadcast %104 : vector<8x1xf32> to vector<8x128xf32>
    %106 = arith.subf %102, %105 : vector<8x128xf32>
    %107 = math.exp %106 : vector<8x128xf32>
    %cst_53 = arith.constant dense<0.000000e+00> : vector<8xf32>
    %108 = vector.multi_reduction <add>, %107, %cst_53 [1] : vector<8x128xf32> to vector<8xf32>
    %109 = vector.shape_cast %108 : vector<8xf32> to vector<8x1xf32>
    %110 = vector.broadcast %109 : vector<8x1xf32> to vector<8x128xf32>
    %111 = arith.divf %107, %110 : vector<8x128xf32>
    %c3_i32_54 = arith.constant 3 : i32
    %112 = vector.broadcast %c3_i32_54 : i32 to vector<8x128xi32>
    %113 = arith.cmpi eq, %98, %112 : vector<8x128xi32>
    %114 = vector.shape_cast %25 : vector<8x1xf32> to vector<8x1xf32>
    %115 = vector.broadcast %114 : vector<8x1xf32> to vector<8x128xf32>
    %116 = arith.select %113, %115, %111 : vector<8x128xi1>, vector<8x128xf32>
    %c4_i32 = arith.constant 4 : i32
    %117 = vector.broadcast %c4_i32 : i32 to vector<8x128xi32>
    %118 = arith.cmpi eq, %98, %117 : vector<8x128xi32>
    %119 = vector.shape_cast %5 : vector<8x1xf32> to vector<8x1xf32>
    %120 = vector.broadcast %119 : vector<8x1xf32> to vector<8x128xf32>
    %121 = arith.select %118, %120, %116 : vector<8x128xi1>, vector<8x128xf32>
    %c5_i32 = arith.constant 5 : i32
    %122 = vector.broadcast %c5_i32 : i32 to vector<8x128xi32>
    %123 = arith.cmpi eq, %98, %122 : vector<8x128xi32>
    %124 = vector.shape_cast %18 : vector<8x1xf32> to vector<8x1xf32>
    %125 = vector.broadcast %124 : vector<8x1xf32> to vector<8x128xf32>
    %126 = arith.select %123, %125, %121 : vector<8x128xi1>, vector<8x128xf32>
    %c0_55 = arith.constant 0 : index
    %c0_56 = arith.constant 0 : index
    %127 = vector.load %arg16[%c0_55, %c0_56] : memref<8x128xf32, #tpu.memory_space<vmem>>, vector<8x128xf32>
    tpu.vector_store %arg16[%c0_55, %c0_56], %126 {strides = array<i32>} : memref<8x128xf32, #tpu.memory_space<vmem>>, vector<8x128xf32>,
    return
  }
  func.func @transform_0(%arg0: i32) -> (i32, i32) {
    %c0_i32 = arith.constant 0 : i32
    %c0_i32_0 = arith.constant 0 : i32
    return %arg0, %c0_i32 : i32, i32
  }
  func.func @transform_1(%arg0: i32) -> (i32, i32) {
    %c0_i32 = arith.constant 0 : i32
    %c0_i32_0 = arith.constant 0 : i32
    %c0_i32_1 = arith.constant 0 : i32
    return %c0_i32, %c0_i32_0 : i32, i32
  }
  func.func @transform_2(%arg0: i32) -> (i32, i32) {
    %c0_i32 = arith.constant 0 : i32
    %c0_i32_0 = arith.constant 0 : i32
    %c0_i32_1 = arith.constant 0 : i32
    return %c0_i32, %c0_i32_0 : i32, i32
  }
  func.func @transform_3(%arg0: i32) -> (i32, i32) {
    %c0_i32 = arith.constant 0 : i32
    %c0_i32_0 = arith.constant 0 : i32
    %c0_i32_1 = arith.constant 0 : i32
    return %c0_i32, %c0_i32_0 : i32, i32
  }
  func.func @transform_4(%arg0: i32) -> (i32, i32) {
    %c0_i32 = arith.constant 0 : i32
    %c0_i32_0 = arith.constant 0 : i32
    %c0_i32_1 = arith.constant 0 : i32
    return %c0_i32, %c0_i32_0 : i32, i32
  }
  func.func @transform_5(%arg0: i32) -> (i32, i32) {
    %c0_i32 = arith.constant 0 : i32
    %c0_i32_0 = arith.constant 0 : i32
    %c0_i32_1 = arith.constant 0 : i32
    return %c0_i32, %c0_i32_0 : i32, i32
  }
  func.func @transform_6(%arg0: i32) -> (i32, i32) {
    %c0_i32 = arith.constant 0 : i32
    %c0_i32_0 = arith.constant 0 : i32
    %c0_i32_1 = arith.constant 0 : i32
    return %c0_i32, %c0_i32_0 : i32, i32
  }
  func.func @transform_7(%arg0: i32) -> (i32, i32) {
    %c0_i32 = arith.constant 0 : i32
    %c0_i32_0 = arith.constant 0 : i32
    %c0_i32_1 = arith.constant 0 : i32
    return %c0_i32, %c0_i32_0 : i32, i32
  }
  func.func @transform_8(%arg0: i32) -> (i32, i32) {
    %c0_i32 = arith.constant 0 : i32
    %c0_i32_0 = arith.constant 0 : i32
    %c0_i32_1 = arith.constant 0 : i32
    return %c0_i32, %c0_i32_0 : i32, i32
  }
  func.func @transform_9(%arg0: i32) -> (i32, i32) {
    %c0_i32 = arith.constant 0 : i32
    %c0_i32_0 = arith.constant 0 : i32
    %c0_i32_1 = arith.constant 0 : i32
    return %c0_i32, %c0_i32_0 : i32, i32
  }
  func.func @transform_10(%arg0: i32) -> (i32, i32) {
    %c0_i32 = arith.constant 0 : i32
    %c0_i32_0 = arith.constant 0 : i32
    %c0_i32_1 = arith.constant 0 : i32
    return %c0_i32, %c0_i32_0 : i32, i32
  }
  func.func @transform_11(%arg0: i32) -> (i32, i32) {
    %c0_i32 = arith.constant 0 : i32
    %c0_i32_0 = arith.constant 0 : i32
    %c0_i32_1 = arith.constant 0 : i32
    return %c0_i32, %c0_i32_0 : i32, i32
  }
  func.func @transform_12(%arg0: i32) -> (i32, i32) {
    %c0_i32 = arith.constant 0 : i32
    %c0_i32_0 = arith.constant 0 : i32
    %c0_i32_1 = arith.constant 0 : i32
    return %c0_i32, %c0_i32_0 : i32, i32
  }
  func.func @transform_13(%arg0: i32) -> (i32, i32) {
    %c0_i32 = arith.constant 0 : i32
    %c0_i32_0 = arith.constant 0 : i32
    %c0_i32_1 = arith.constant 0 : i32
    return %c0_i32, %c0_i32_0 : i32, i32
  }
  func.func @transform_14(%arg0: i32) -> (i32, i32) {
    %c0_i32 = arith.constant 0 : i32
    %c0_i32_0 = arith.constant 0 : i32
    %c0_i32_1 = arith.constant 0 : i32
    return %c0_i32, %c0_i32_0 : i32, i32
  }
  func.func @transform_15(%arg0: i32) -> (i32, i32) {
    %c0_i32 = arith.constant 0 : i32
    %c0_i32_0 = arith.constant 0 : i32
    return %arg0, %c0_i32 : i32, i32
  }
}

</mosaic_0001>

<bundles_post_ra>
// kernel: network_forward.1
= control target key start
LH: loop header
LB: loop body
LE: loop exit
PB: predicated region body
PF: predicated region fallthrough
CT: control target
= control target key end

     0   :  { %s11616_s0 = inlined_call_operand.vmem [shape: f32[8,256], index: 0, kind: input, shape index: {}]   ;;  %s11617_s1 = inlined_call_operand.hbm [shape: bf16[256,512], index: 1, kind: input, shape index: {}]   ;;  %s11618_s2 = inlined_call_operand.vmem [shape: f32[1,512], index: 2, kind: input, shape index: {}]   ;;  %s11619_s3 = inlined_call_operand.vmem [shape: f32[1,512], index: 3, kind: input, shape index: {}]   ;;  %s11620_s4 = inlined_call_operand.vmem [shape: f32[1,512], index: 4, kind: input, shape index: {}]   ;;  %s11621_s5 = inlined_call_operand.hbm [shape: bf16[512,1024], index: 5, kind: input, shape index: {}]   ;;  %s11622_s6 = inlined_call_operand.vmem [shape: f32[1,1024], index: 6, kind: input, shape index: {}]   ;;  %s11623_s7 = inlined_call_operand.hbm [shape: bf16[1024,512], index: 7, kind: input, shape index: {}]   ;;  %s11624_s8 = inlined_call_operand.vmem [shape: f32[1,512], index: 8, kind: input, shape index: {}]   ;;  %s11625_s9 = inlined_call_operand.hbm [shape: bf16[512,1024], index: 9, kind: input, shape index: {}]   ;;  %s11626_s10 = inlined_call_operand.vmem [shape: f32[1,1024], index: 10, kind: input, shape index: {}]   ;;  %s11627_s11 = inlined_call_operand.hbm [shape: bf16[1024,512], index: 11, kind: input, shape index: {}]   ;;  %s11628_s12 = inlined_call_operand.vmem [shape: f32[1,512], index: 12, kind: input, shape index: {}]   ;;  %s11629_s13 = inlined_call_operand.hbm [shape: bf16[512,128], index: 13, kind: input, shape index: {}]   ;;  %s11630_s14 = inlined_call_operand.vmem [shape: f32[1,128], index: 14, kind: input, shape index: {}]   ;;  %s11631_s15 = inlined_call_operand.vmem [shape: f32[8,128], index: 15, kind: output, shape index: {}]  }
   0x1   :  { %11632 = sst [smem:[#allocation16_spill]] %s11631_s15 }
   0x2   :  { %20 = vsyncpa [#allocation3], 0 }
   0x3   :  { %21 = vsyncpa [#allocation5], 0 }
   0x4   :  { %22 = vsyncpa [#allocation8], 0 }
   0x5   :  { %23 = vsyncpa [#allocation11], 0  ;;  %s11052_s18 = smov [#allocation4]   ;;  %s10912_s22 = scalar_lea.hbm %s11621_s5, 32768 }
   0x6   :  { %s49_s19 = sshll.u32 %s11052_s18, 4  ;;  %p10913_p0 = scmp.ne.s32.totalorder %s11621_s5, %s10912_s22  ;;  %s50_s19 = int_to_ptr.vmem [resolvable:$true] %s49_s19 }
   0x7   :  { %p10916_p1 = scmp.lt.u32.totalorder %s10912_s22, %s11621_s5 }
   0x9   :  { %p10918_p2 = pnand %p10916_p1, %p10913_p0 }
   0xb   :  { %10921 = shalt.err (!%p10918_p2)
}
   0xc   :  { %s10922_s27 = scalar_lea.vmem %s50_s19, 32768  ;;  %p10927_p4 = scmp.lt.s32.totalorder %s50_s19, %s50_s19 }
   0xd   :  { %p10923_p3 = scmp.ne.s32.totalorder %s50_s19, %s10922_s27  ;;  %p10928_p5 = scmp.lt.s32.totalorder %s10922_s27, %s10922_s27 }
   0xf   :  { %p10929_p6 = por %p10928_p5, %p10927_p4 }
  0x11   :  { %p10930_p7 = pnand %p10929_p6, %p10923_p3 }
  0x13   :  { %10933 = shalt.err (!%p10930_p7)
}
  0x14   :  { %s11053_s28 = smov 512   ;;  %s11054_s29 = smov 32  }
  0x15   :  { %55 = dma.hbm_to_vmem [thread:$0]  %s11621_s5, 32768, %s50_s19, [#allocation5], %s11053_s28, %s11053_s28, %s11054_s29  }
  0x16   :  { %s11055_s17 = smov [#allocation7]   ;;  %s11056_s20 = smov [#allocation2]  }
  0x17   :  { %s77_s18 = sshll.u32 %s11055_s17, 4  ;;  %s31_s21 = sshll.u32 %s11056_s20, 4  ;;  %s78_s18 = int_to_ptr.vmem [resolvable:$true] %s77_s18  ;;  %s32_s21 = int_to_ptr.vmem [resolvable:$true] %s31_s21 }
  0x18   :  { %s10934_s24 = scalar_lea.hbm %s11625_s9, 32768 }
  0x19   :  { %p10935_p8 = scmp.ne.s32.totalorder %s11625_s9, %s10934_s24  ;;  %p10938_p9 = scmp.lt.u32.totalorder %s10934_s24, %s11625_s9 }
  0x1b   :  { %p10940_p10 = pnand %p10938_p9, %p10935_p8 }
  0x1d   :  { %10943 = shalt.err (!%p10940_p10)
}
  0x1e   :  { %s10944_s5 = scalar_lea.vmem %s78_s18, 32768  ;;  %p10949_p12 = scmp.lt.s32.totalorder %s78_s18, %s78_s18 }
  0x1f   :  { %p10945_p11 = scmp.ne.s32.totalorder %s78_s18, %s10944_s5  ;;  %p10950_p13 = scmp.lt.s32.totalorder %s10944_s5, %s10944_s5 }
  0x21   :  { %p10951_p0 = por %p10950_p13, %p10949_p12 }
  0x23   :  { %p10952_p1 = pnand %p10951_p0, %p10945_p11 }
  0x25   :  { %10955 = shalt.err (!%p10952_p1)
}
  0x26   :  { %83 = dma.hbm_to_vmem [thread:$0]  %s11625_s9, 32768, %s78_s18, [#allocation8], %s11053_s28, %s11053_s28, %s11054_s29  }
  0x27   :  { %s10956_s20 = scalar_lea.hbm %s11617_s1, 8192 }
  0x28   :  { %p10957_p2 = scmp.ne.s32.totalorder %s11617_s1, %s10956_s20  ;;  %p10960_p3 = scmp.lt.u32.totalorder %s10956_s20, %s11617_s1 }
  0x2a   :  { %p10962_p4 = pnand %p10960_p3, %p10957_p2 }
  0x2c   :  { %10965 = shalt.err (!%p10962_p4)
}
  0x2d   :  { %s10966_s25 = scalar_lea.vmem %s32_s21, 8192  ;;  %p10971_p6 = scmp.lt.s32.totalorder %s32_s21, %s32_s21 }
  0x2e   :  { %p10967_p5 = scmp.ne.s32.totalorder %s32_s21, %s10966_s25  ;;  %p10972_p7 = scmp.lt.s32.totalorder %s10966_s25, %s10966_s25 }
  0x30   :  { %p10973_p8 = por %p10972_p7, %p10971_p6 }
  0x32   :  { %p10974_p9 = pnand %p10973_p8, %p10967_p5 }
  0x34   :  { %10977 = shalt.err (!%p10974_p9)
}
  0x35   :  { %s11057_s9 = smov 256   ;;  %s11058_s28 = smov 16  }
  0x36   :  { %37 = dma.hbm_to_vmem [thread:$0]  %s11617_s1, 8192, %s32_s21, [#allocation3], %s11057_s9, %s11057_s9, %s11058_s28  }
  0x37   :  { %s11059_s26 = smov [#allocation6]   ;;  %s11060_s5 = smov [#allocation9]  }
  0x38   :  { %s63_s27 = sshll.u32 %s11059_s26, 4  ;;  %s91_s19 = sshll.u32 %s11060_s5, 4  ;;  %s64_s27 = int_to_ptr.vmem [resolvable:$true] %s63_s27  ;;  %s92_s19 = int_to_ptr.vmem [resolvable:$true] %s91_s19 }
  0x39   :  { %s10978_s17 = scalar_lea.hbm %s11623_s7, 32768 }
  0x3a   :  { %p10979_p10 = scmp.ne.s32.totalorder %s11623_s7, %s10978_s17  ;;  %p10982_p11 = scmp.lt.u32.totalorder %s10978_s17, %s11623_s7 }
  0x3c   :  { %p10984_p12 = pnand %p10982_p11, %p10979_p10 }
  0x3e   :  { %10987 = shalt.err (!%p10984_p12)
}
  0x3f   :  { %s10988_s1 = scalar_lea.vmem %s64_s27, 32768  ;;  %p10993_p0 = scmp.lt.s32.totalorder %s64_s27, %s64_s27 }
  0x40   :  { %p10989_p13 = scmp.ne.s32.totalorder %s64_s27, %s10988_s1  ;;  %p10994_p1 = scmp.lt.s32.totalorder %s10988_s1, %s10988_s1 }
  0x42   :  { %p10995_p2 = por %p10994_p1, %p10993_p0 }
  0x44   :  { %p10996_p3 = pnand %p10995_p2, %p10989_p13 }
  0x46   :  { %10999 = shalt.err (!%p10996_p3)
}
  0x47   :  { %69 = dma.hbm_to_vmem [thread:$0]  %s11623_s7, 32768, %s64_s27, [#allocation5], %s11057_s9, %s11057_s9, %s11058_s28  }
  0x48   :  { %s11000_s18 = scalar_lea.hbm %s11627_s11, 32768 }
  0x49   :  { %p11001_p4 = scmp.ne.s32.totalorder %s11627_s11, %s11000_s18  ;;  %p11004_p5 = scmp.lt.u32.totalorder %s11000_s18, %s11627_s11 }
  0x4b   :  { %p11006_p6 = pnand %p11004_p5, %p11001_p4 }
  0x4d   :  { %11009 = shalt.err (!%p11006_p6)
}
  0x4e   :  { %s11010_s17 = scalar_lea.vmem %s92_s19, 32768  ;;  %p11015_p8 = scmp.lt.s32.totalorder %s92_s19, %s92_s19 }
  0x4f   :  { %p11011_p7 = scmp.ne.s32.totalorder %s92_s19, %s11010_s17  ;;  %p11016_p9 = scmp.lt.s32.totalorder %s11010_s17, %s11010_s17 }
  0x51   :  { %p11017_p10 = por %p11016_p9, %p11015_p8 }
  0x53   :  { %p11018_p11 = pnand %p11017_p10, %p11011_p7 }
  0x55   :  { %11021 = shalt.err (!%p11018_p11)
}
  0x56   :  { %97 = dma.hbm_to_vmem [thread:$0]  %s11627_s11, 32768, %s92_s19, [#allocation8], %s11057_s9, %s11057_s9, %s11058_s28  }
  0x57   :  { %s11061_s20 = smov [#allocation10]   ;;  %s11022_s1 = scalar_lea.hbm %s11629_s13, 4096 }
  0x58   :  { %s105_s15 = sshll.u32 %s11061_s20, 4  ;;  %p11023_p12 = scmp.ne.s32.totalorder %s11629_s13, %s11022_s1  ;;  %s106_s15 = int_to_ptr.vmem [resolvable:$true] %s105_s15 }
  0x59   :  { %p11026_p13 = scmp.lt.u32.totalorder %s11022_s1, %s11629_s13 }
  0x5b   :  { %p11028_p0 = pnand %p11026_p13, %p11023_p12 }
  0x5d   :  { %11031 = shalt.err (!%p11028_p0)
}
  0x5e   :  { %s11032_s18 = scalar_lea.vmem %s106_s15, 4096  ;;  %p11037_p2 = scmp.lt.s32.totalorder %s106_s15, %s106_s15 }
  0x5f   :  { %p11033_p1 = scmp.ne.s32.totalorder %s106_s15, %s11032_s18  ;;  %p11038_p3 = scmp.lt.s32.totalorder %s11032_s18, %s11032_s18 }
  0x61   :  { %p11039_p4 = por %p11038_p3, %p11037_p2 }
  0x63   :  { %p11040_p5 = pnand %p11039_p4, %p11033_p1 }
  0x65   :  { %11043 = shalt.err (!%p11040_p5)
}
  0x66   :  { %s11062_s11 = smov 64   ;;  %s11063_s9 = smov 4  }
  0x67   :  { %111 = dma.hbm_to_vmem [thread:$0]  %s11629_s13, 4096, %s106_s15, [#allocation11], %s11062_s11, %s11062_s11, %s11063_s9  }
  0x68   :  { %11044 = dma.done.wait [#allocation3], 8192  }
  0x69   :  { %11045 = vsyncadd [#allocation3], 4294959104 }
  0x6a   :  { %11046 = dma.done.wait [#allocation5], 65536  }
  0x6b   :  { %11047 = vsyncadd [#allocation5], 4294901760 }
  0x6c   :  { %11048 = dma.done.wait [#allocation8], 65536  }
  0x6d   :  { %11049 = vsyncadd [#allocation8], 4294901760 }
  0x6e   :  { %11050 = dma.done.wait [#allocation11], 4096  }
  0x6f   :  { %11051 = vsyncadd [#allocation11], 4294963200  ;;  %v11229_v0 = vld [vmem:[%s11616_s0] sm:$0xff]  ;;  %v11234_v1 = vld [vmem:[%s11616_s0 + $0x8] sm:$0xff]  ;;  %v135_v33 = vlaneseq  ;;  %s11633_s21 = sld [smem:[#allocation16_spill]] }
  0x70   :  { %v138_v2 = vadd.f32 %v11234_v1, %v11229_v0  ;;  %v10006_v3 = vld [vmem:[#allocation2 + $0x4] ss:$16 sps:$4 sm:$0xff]   ;;  %v10008_v4 = vld [vmem:[#allocation2 + $0xc] ss:$16 sps:$4 sm:$0xff]   ;;  %v10010_v5 = vld [vmem:[#allocation2] ss:$16 sps:$4 sm:$0xff]  }
  0x71   :  { %v10011_v6 = vld [vmem:[#allocation2 + $0x8] ss:$16 sps:$4 sm:$0xff]   ;;  %v10012_v7 = vld [vmem:[#allocation2 + $0x24] ss:$16 sps:$4 sm:$0xff]   ;;  %v10014_v8 = vld [vmem:[#allocation2 + $0x2c] ss:$16 sps:$4 sm:$0xff]   ;;  %576 = vmatprep.subr.bf16.mxu0 %v10006_v3  ;;  %617 = vmatprep.subr.bf16.mxu1 %v10008_v4 }
  0x72   :  { %139 = vadd.xlane.f32.xlu0 %v138_v2  ;;  %577 = vmatpush1.bf16.msra.mxu0 %v10010_v5  ;;  %v10016_v9 = vld [vmem:[#allocation2 + $0x20] ss:$16 sps:$4 sm:$0xff]   ;;  %v10017_v10 = vld [vmem:[#allocation2 + $0x28] ss:$16 sps:$4 sm:$0xff]   ;;  %v10018_v11 = vld [vmem:[#allocation2 + $0x44] ss:$16 sps:$4 sm:$0xff]  }
  0x73   :  { %618 = vmatpush1.bf16.msra.mxu1 %v10011_v6  ;;  %578 = vmatprep.subr.bf16.mxu0 %v10012_v7  ;;  %v10020_v12 = vld [vmem:[#allocation2 + $0x4c] ss:$16 sps:$4 sm:$0xff]   ;;  %v10022_v13 = vld [vmem:[#allocation2 + $0x40] ss:$16 sps:$4 sm:$0xff]   ;;  %v10023_v14 = vld [vmem:[#allocation2 + $0x48] ss:$16 sps:$4 sm:$0xff]  }
  0x74   :  { %619 = vmatprep.subr.bf16.mxu1 %v10014_v8  ;;  %v10024_v15 = vld [vmem:[#allocation2 + $0x64] ss:$16 sps:$4 sm:$0xff]   ;;  %v10026_v16 = vld [vmem:[#allocation2 + $0x6c] ss:$16 sps:$4 sm:$0xff]   ;;  %v10028_v17 = vld [vmem:[#allocation2 + $0x60] ss:$16 sps:$4 sm:$0xff]  }
  0x75   :  { %v10029_v18 = vld [vmem:[#allocation2 + $0x68] ss:$16 sps:$4 sm:$0xff]   ;;  %v10030_v19 = vld [vmem:[#allocation2 + $0x84] ss:$16 sps:$4 sm:$0xff]   ;;  %v10032_v20 = vld [vmem:[#allocation2 + $0x8c] ss:$16 sps:$4 sm:$0xff]  }
  0x76   :  { %579 = vmatpush1.bf16.msra.mxu0 %v10016_v9  ;;  %v10034_v21 = vld [vmem:[#allocation2 + $0x80] ss:$16 sps:$4 sm:$0xff]   ;;  %v10035_v22 = vld [vmem:[#allocation2 + $0x88] ss:$16 sps:$4 sm:$0xff]   ;;  %v10036_v23 = vld [vmem:[#allocation2 + $0xa4] ss:$16 sps:$4 sm:$0xff]  }
  0x77   :  { %620 = vmatpush1.bf16.msra.mxu1 %v10017_v10  ;;  %580 = vmatprep.subr.bf16.mxu0 %v10018_v11  ;;  %v10038_v24 = vld [vmem:[#allocation2 + $0xac] ss:$16 sps:$4 sm:$0xff]   ;;  %v10040_v25 = vld [vmem:[#allocation2 + $0xa0] ss:$16 sps:$4 sm:$0xff]   ;;  %v10041_v26 = vld [vmem:[#allocation2 + $0xa8] ss:$16 sps:$4 sm:$0xff]  }
  0x78   :  { %621 = vmatprep.subr.bf16.mxu1 %v10020_v12  ;;  %v10042_v27 = vld [vmem:[#allocation2 + $0xc4] ss:$16 sps:$4 sm:$0xff]   ;;  %v10044_v28 = vld [vmem:[#allocation2 + $0xcc] ss:$16 sps:$4 sm:$0xff]   ;;  %v10046_v29 = vld [vmem:[#allocation2 + $0xc0] ss:$16 sps:$4 sm:$0xff]  }
  0x79   :  { %v10047_v30 = vld [vmem:[#allocation2 + $0xc8] ss:$16 sps:$4 sm:$0xff]   ;;  %v10048_v31 = vld [vmem:[#allocation2 + $0xe4] ss:$16 sps:$4 sm:$0xff]   ;;  %v10050_v32 = vld [vmem:[#allocation2 + $0xec] ss:$16 sps:$4 sm:$0xff]  }
  0x7a   :  { %581 = vmatpush1.bf16.msra.mxu0 %v10022_v13  ;;  %v11239_v34 = vand.u32 127, %v135_v33  ;;  %v10052_v44 = vld [vmem:[#allocation2 + $0xe0] ss:$16 sps:$4 sm:$0xff]   ;;  %v10053_v45 = vld [vmem:[#allocation2 + $0xe8] ss:$16 sps:$4 sm:$0xff]  }
  0x7b   :  { %622 = vmatpush1.bf16.msra.mxu1 %v10023_v14  ;;  %582 = vmatprep.subr.bf16.mxu0 %v10024_v15  ;;  %v10054_v46 = vld [vmem:[#allocation2 + $0x104] ss:$16 sps:$4 sm:$0xff]   ;;  %v10056_v47 = vld [vmem:[#allocation2 + $0x10c] ss:$16 sps:$4 sm:$0xff]   ;;  %v10058_v48 = vld [vmem:[#allocation2 + $0x100] ss:$16 sps:$4 sm:$0xff]  }
  0x7c   :  { %623 = vmatprep.subr.bf16.mxu1 %v10026_v16  ;;  %v137_v35 = vadd.s32 128, %v11239_v34  ;;  %v10059_v49 = vld [vmem:[#allocation2 + $0x108] ss:$16 sps:$4 sm:$0xff]   ;;  %v10060_v50 = vld [vmem:[#allocation2 + $0x124] ss:$16 sps:$4 sm:$0xff]  }
  0x7d   :  { %v10062_v51 = vld [vmem:[#allocation2 + $0x12c] ss:$16 sps:$4 sm:$0xff]   ;;  %v10064_v52 = vld [vmem:[#allocation2 + $0x120] ss:$16 sps:$4 sm:$0xff]   ;;  %v10065_v53 = vld [vmem:[#allocation2 + $0x128] ss:$16 sps:$4 sm:$0xff]  }
  0x7e   :  { %583 = vmatpush1.bf16.msra.mxu0 %v10028_v17  ;;  %vm144_vm0 = vcmp.lt.s32.totalorder %v137_v35, 180  ;;  %v10066_v54 = vld [vmem:[#allocation2 + $0x144] ss:$16 sps:$4 sm:$0xff]   ;;  %v10068_v55 = vld [vmem:[#allocation2 + $0x14c] ss:$16 sps:$4 sm:$0xff]  }
  0x7f   :  { %624 = vmatpush1.bf16.msra.mxu1 %v10029_v18  ;;  %584 = vmatprep.subr.bf16.mxu0 %v10030_v19  ;;  %v10070_v56 = vld [vmem:[#allocation2 + $0x140] ss:$16 sps:$4 sm:$0xff]   ;;  %v10071_v57 = vld [vmem:[#allocation2 + $0x148] ss:$16 sps:$4 sm:$0xff]   ;;  %v10072_v58 = vld [vmem:[#allocation2 + $0x164] ss:$16 sps:$4 sm:$0xff]  }
  0x80   :  { %625 = vmatprep.subr.bf16.mxu1 %v10032_v20  ;;  %v10074_v59 = vld [vmem:[#allocation2 + $0x16c] ss:$16 sps:$4 sm:$0xff]   ;;  %v10076_v60 = vld [vmem:[#allocation2 + $0x160] ss:$16 sps:$4 sm:$0xff]   ;;  %v10077_v61 = vld [vmem:[#allocation2 + $0x168] ss:$16 sps:$4 sm:$0xff]  }
  0x81   :  { %v10078_v62 = vld [vmem:[#allocation2 + $0x184] ss:$16 sps:$4 sm:$0xff]   ;;  %v10080_v63 = vld [vmem:[#allocation2 + $0x18c] ss:$16 sps:$4 sm:$0xff]   ;;  %v10088_v4 = vld [vmem:[#allocation2 + $0x1a0] ss:$16 sps:$4 sm:$0xff]  }
  0x82   :  { %585 = vmatpush1.bf16.msra.mxu0 %v10034_v21  ;;  %v10084_v2 = vld [vmem:[#allocation2 + $0x1a4] ss:$16 sps:$4 sm:$0xff]   ;;  %v10086_v3 = vld [vmem:[#allocation2 + $0x1ac] ss:$16 sps:$4 sm:$0xff]   ;;  %v10089_v5 = vld [vmem:[#allocation2 + $0x1a8] ss:$16 sps:$4 sm:$0xff]  }
  0x83   :  { %626 = vmatpush1.bf16.msra.mxu1 %v10035_v22  ;;  %586 = vmatprep.subr.bf16.mxu0 %v10036_v23  ;;  %v10090_v6 = vld [vmem:[#allocation2 + $0x1c4] ss:$16 sps:$4 sm:$0xff]   ;;  %v10092_v7 = vld [vmem:[#allocation2 + $0x1cc] ss:$16 sps:$4 sm:$0xff]   ;;  %v10094_v8 = vld [vmem:[#allocation2 + $0x1c0] ss:$16 sps:$4 sm:$0xff]  }
  0x84   :  { %627 = vmatprep.subr.bf16.mxu1 %v10038_v24  ;;  %v10095_v9 = vld [vmem:[#allocation2 + $0x1c8] ss:$16 sps:$4 sm:$0xff]   ;;  %v10096_v10 = vld [vmem:[#allocation2 + $0x1e4] ss:$16 sps:$4 sm:$0xff]   ;;  %v10098_v11 = vld [vmem:[#allocation2 + $0x1ec] ss:$16 sps:$4 sm:$0xff]  }
  0x85   :  { %v10100_v12 = vld [vmem:[#allocation2 + $0x1e0] ss:$16 sps:$4 sm:$0xff]   ;;  %v10101_v13 = vld [vmem:[#allocation2 + $0x1e8] ss:$16 sps:$4 sm:$0xff]  }
  0x86   :  { %587 = vmatpush1.bf16.msra.mxu0 %v10040_v25 }
  0x87   :  { %628 = vmatpush1.bf16.msra.mxu1 %v10041_v26  ;;  %588 = vmatprep.subr.bf16.mxu0 %v10042_v27  ;;  %v11266_v27 = vshrl.u32 %v135_v33, 7 }
  0x88   :  { %629 = vmatprep.subr.bf16.mxu1 %v10044_v28 }
  0x89   :  { %v11269_v28 = vsub.s32 0, %v11266_v27  ;;  %v11283_v33 = vsub.s32 3, %v11266_v27 }
  0x8a   :  { %589 = vmatpush1.bf16.msra.mxu0 %v10046_v29  ;;  %v234_v29 = vld [vmem:[%s11618_s2] sm:$0xf] }
  0x8b   :  { %630 = vmatpush1.bf16.msra.mxu1 %v10047_v30  ;;  %590 = vmatprep.subr.bf16.mxu0 %v10048_v31  ;;  %v11275_v30 = vsub.s32 1, %v11266_v27  ;;  %v11278_v31 = vsub.s32 2, %v11266_v27 }
  0x8c   :  { %631 = vmatprep.subr.bf16.mxu1 %v10050_v32  ;;  %v239_v32 = vrot.slane %v234_v29, %v11269_v28 }
  0x8d   :  { %v243_v35 = vrot.slane %v234_v29, %v11275_v30 }
  0x8e   :  { %591 = vmatpush1.bf16.msra.mxu0 %v10052_v44  ;;  %v251_v44 = vrot.slane %v234_v29, %v11283_v33 }
  0x8f   :  { %632 = vmatpush1.bf16.msra.mxu1 %v10053_v45  ;;  %592 = vmatprep.subr.bf16.mxu0 %v10054_v46 }
  0x90   :  { %633 = vmatprep.subr.bf16.mxu1 %v10056_v47 }
  0x92   :  { %593 = vmatpush1.bf16.msra.mxu0 %v10058_v48 }
  0x93   :  { %634 = vmatpush1.bf16.msra.mxu1 %v10059_v49  ;;  %594 = vmatprep.subr.bf16.mxu0 %v10060_v50 }
  0x94   :  { %635 = vmatprep.subr.bf16.mxu1 %v10062_v51 }
  0x96   :  { %595 = vmatpush1.bf16.msra.mxu0 %v10064_v52 }
  0x97   :  { %636 = vmatpush1.bf16.msra.mxu1 %v10065_v53  ;;  %596 = vmatprep.subr.bf16.mxu0 %v10066_v54  ;;  %v737_v54 = vld [vmem:[#allocation4] sm:$0xff] }
  0x98   :  { %637 = vmatprep.subr.bf16.mxu1 %v10068_v55  ;;  %v741_v55 = vld [vmem:[#allocation4 + $0x20] sm:$0xff] }
  0x9a   :  { %597 = vmatpush1.bf16.msra.mxu0 %v10070_v56  ;;  %v738_v56 = vld [vmem:[#allocation4 + $0x8] sm:$0xff] }
  0x9b   :  { %638 = vmatpush1.bf16.msra.mxu1 %v10071_v57  ;;  %598 = vmatprep.subr.bf16.mxu0 %v10072_v58  ;;  %v8843_v57 = vcombine.low %v737_v54, %v741_v55  ;;  %v8844_v58 = vcombine.high %v737_v54, %v741_v55 }
  0x9c   :  { %639 = vmatprep.subr.bf16.mxu1 %v10074_v59  ;;  %v742_v59 = vld [vmem:[#allocation4 + $0x28] sm:$0xff] }
  0x9e   :  { %599 = vmatpush1.bf16.msra.mxu0 %v10076_v60  ;;  %v745_v60 = vld [vmem:[#allocation4 + $0x40] sm:$0xff] }
  0x9f   :  { %640 = vmatpush1.bf16.msra.mxu1 %v10077_v61  ;;  %600 = vmatprep.subr.bf16.mxu0 %v10078_v62  ;;  %v749_v61 = vld [vmem:[#allocation4 + $0x60] sm:$0xff]  ;;  %v8845_v62 = vcombine.low %v738_v56, %v742_v59 }
  0xa0   :  { %641 = vmatprep.subr.bf16.mxu1 %v10080_v63  ;;  %v8846_v63 = vcombine.high %v738_v56, %v742_v59  ;;  %v794_v59 = vld [vmem:[#allocation4 + $0x1c8] sm:$0xff] }
  0xff   :  { %v140_v36 = vpop.xlane.xlu0 %139 }
 0x100   :  { %v11242_v37 = vmul.f32 0.0055555557, %v140_v36 }
 0x102   :  { %v11246_v38 = vsub.f32 %v11229_v0, %v11242_v37  ;;  %v146_v39 = vsub.f32 %v11234_v1, %v11242_v37  ;;  %v10082_v0 = vld [vmem:[#allocation2 + $0x180] ss:$16 sps:$4 sm:$0xff]   ;;  %v10083_v1 = vld [vmem:[#allocation2 + $0x188] ss:$16 sps:$4 sm:$0xff]  }
 0x103   :  { %601 = vmatpush1.bf16.msra.mxu0 %v10082_v0  ;;  %642 = vmatpush1.bf16.msra.mxu1 %v10083_v1  ;;  %v8852_v0 = vcombine.high %v745_v60, %v749_v61  ;;  %v746_v1 = vld [vmem:[#allocation4 + $0x48] sm:$0xff] }
 0x104   :  { %v11250_v40 = vsel %vm144_vm0, %v146_v39, 0.0  ;;  %v149_v41 = vmul.f32 %v11246_v38, %v11246_v38  ;;  %602 = vmatprep.subr.bf16.mxu0 %v10084_v2  ;;  %643 = vmatprep.subr.bf16.mxu1 %v10086_v3  ;;  %v750_v2 = vld [vmem:[#allocation4 + $0x68] sm:$0xff]  ;;  %v753_v3 = vld [vmem:[#allocation4 + $0x80] sm:$0xff] }
 0x105   :  { %v150_v42 = vmul.f32 %v11250_v40, %v11250_v40 }
 0x107   :  { %v151_v43 = vadd.f32 %v150_v42, %v149_v41  ;;  %603 = vmatpush1.bf16.msra.mxu0 %v10088_v4  ;;  %644 = vmatpush1.bf16.msra.mxu1 %v10089_v5  ;;  %v8854_v4 = vcombine.high %v746_v1, %v750_v2  ;;  %v757_v5 = vld [vmem:[#allocation4 + $0xa0] sm:$0xff] }
 0x108   :  { %604 = vmatprep.subr.bf16.mxu0 %v10090_v6  ;;  %645 = vmatprep.subr.bf16.mxu1 %v10092_v7  ;;  %v754_v6 = vld [vmem:[#allocation4 + $0x88] sm:$0xff] }
 0x109   :  { %152 = vadd.xlane.f32.xlu0 %v151_v43  ;;  %v758_v7 = vld [vmem:[#allocation4 + $0xa8] sm:$0xff] }
 0x10b   :  { %605 = vmatpush1.bf16.msra.mxu0 %v10094_v8  ;;  %646 = vmatpush1.bf16.msra.mxu1 %v10095_v9  ;;  %v8851_v8 = vcombine.low %v745_v60, %v749_v61  ;;  %v8853_v9 = vcombine.low %v746_v1, %v750_v2  ;;  %v798_v60 = vld [vmem:[#allocation4 + $0x1e8] sm:$0xff]  ;;  %v801_v1 = vld [vmem:[#allocation4 + $0x200] sm:$0xff] }
 0x10c   :  { %606 = vmatprep.subr.bf16.mxu0 %v10096_v10  ;;  %647 = vmatprep.subr.bf16.mxu1 %v10098_v11  ;;  %v8860_v10 = vcombine.high %v753_v3, %v757_v5  ;;  %v8862_v11 = vcombine.high %v754_v6, %v758_v7  ;;  %v805_v2 = vld [vmem:[#allocation4 + $0x220] sm:$0xff] }
 0x10f   :  { %607 = vmatpush1.bf16.msra.mxu0 %v10100_v12  ;;  %648 = vmatpush1.bf16.msra.mxu1 %v10101_v13  ;;  %v761_v12 = vld [vmem:[#allocation4 + $0xc0] sm:$0xff] }
 0x110   :  { %2576 = vmatprep.subr.bf16.mxu0 %v8844_v58  ;;  %2658 = vmatprep.subr.bf16.mxu1 %v8846_v63  ;;  %v765_v13 = vld [vmem:[#allocation4 + $0xe0] sm:$0xff] }
 0x111   :  { %v797_v58 = vld [vmem:[#allocation4 + $0x1e0] sm:$0xff] }
 0x196   :  { %v153_v14 = vpop.xlane.xlu0 %152 }
 0x197   :  { %v155_v15 = vmul.f32 0.005586592, %v153_v14  ;;  %v762_v14 = vld [vmem:[#allocation4 + $0xc8] sm:$0xff] }
 0x199   :  { %10902 = vrsqrt.f32 %v155_v15  ;;  %vm158_vm1 = vcmp.eq.f32.partialorder %v155_v15, inf  ;;  %v161_v18 = vand.u32 2147483648, %v155_v15  ;;  %vm160_vm2 = vcmp.eq.f32.partialorder %v155_v15, 0.0 }
 0x1a3   :  { %v10903_v16 = vpop.eup %10902 }
 0x1a4   :  { %v157_v17 = vmul.f32 %v10903_v16, %v155_v15  ;;  %v8859_v16 = vcombine.low %v753_v3, %v757_v5  ;;  %v802_v3 = vld [vmem:[#allocation4 + $0x208] sm:$0xff] }
 0x1a6   :  { %v159_v19 = vsel %vm158_vm1, %v155_v15, %v157_v17  ;;  %v766_v15 = vld [vmem:[#allocation4 + $0xe8] sm:$0xff]  ;;  %v8861_v17 = vcombine.low %v754_v6, %v758_v7  ;;  %v8901_v6 = vcombine.low %v794_v59, %v798_v60  ;;  %v8908_v7 = vcombine.high %v801_v1, %v805_v2 }
 0x1a7   :  { %v11256_v20 = vsel %vm160_vm2, %v161_v18, %v159_v19  ;;  %v8868_v18 = vcombine.high %v761_v12, %v765_v13  ;;  %v8870_v19 = vcombine.high %v762_v14, %v766_v15 }
 0x1a8   :  { %v163_v21 = vadd.f32 1e-09, %v11256_v20 }
 0x1aa   :  { %10904 = vrcp.f32 %v163_v21  ;;  %v769_v21 = vld [vmem:[#allocation4 + $0x100] sm:$0xff] }
 0x1b4   :  { %v10905_v22 = vpop.eup %10904 }
 0x1b5   :  { %v11260_v23 = vmul.f32 %v10905_v22, %v11250_v40  ;;  %v166_v24 = vmul.f32 %v10905_v22, %v11246_v38  ;;  %v247_v38 = vrot.slane %v234_v29, %v11278_v31  ;;  %v773_v22 = vld [vmem:[#allocation4 + $0x120] sm:$0xff]  ;;  %v8869_v29 = vcombine.low %v762_v14, %v766_v15 }
 0x1b7   :  { %v169_v25 = vpack.c.bf16 %v11260_v23, %v11260_v23  ;;  %v168_v26 = vpack.c.bf16 %v166_v24, %v166_v24  ;;  %v770_v24 = vld [vmem:[#allocation4 + $0x108] sm:$0xff] }
 0x1b9   :  { %608 = vmatprep.mubr.bf16.mxu0 %v169_v25  ;;  %649 = vmatprep.mubr.bf16.mxu1 %v169_v25  ;;  %v774_v25 = vld [vmem:[#allocation4 + $0x128] sm:$0xff] }
 0x1ba   :  { %609 = vmatmul.mubr.bf16.vlgmr.msra.gmra.mrb[0].mxu0 %v168_v26  ;;  %650 = vmatmul.mubr.bf16.vlgmr.msra.gmra.mrb[0].mxu1 %v168_v26  ;;  %v8867_v26 = vcombine.low %v761_v12, %v765_v13  ;;  %v814_v12 = vld [vmem:[#allocation4 + $0x268] sm:$0xff]  ;;  %v8907_v13 = vcombine.low %v801_v1, %v805_v2 }
 0x1bb   :  { %2577 = vmatpush1.bf16.msra.mxu0 %v8843_v57  ;;  %2659 = vmatpush1.bf16.msra.mxu1 %v8845_v62  ;;  %v793_v57 = vld [vmem:[#allocation4 + $0x1c0] sm:$0xff] }
 0x1bc   :  { %2578 = vmatprep.subr.bf16.mxu0 %v8852_v0  ;;  %2660 = vmatprep.subr.bf16.mxu1 %v8854_v4  ;;  %v8900_v63 = vcombine.high %v793_v57, %v797_v58  ;;  %v8902_v0 = vcombine.high %v794_v59, %v798_v60  ;;  %v806_v4 = vld [vmem:[#allocation4 + $0x228] sm:$0xff]  ;;  %v8899_v5 = vcombine.low %v793_v57, %v797_v58  ;;  %v833_v57 = vld [vmem:[#allocation4 + $0x300] sm:$0xff] }
 0x1bd   :  { %v8909_v14 = vcombine.low %v802_v3, %v806_v4  ;;  %v837_v58 = vld [vmem:[#allocation4 + $0x320] sm:$0xff]  ;;  %v834_v59 = vld [vmem:[#allocation4 + $0x308] sm:$0xff] }
 0x1be   :  { %v8939_v60 = vcombine.low %v833_v57, %v837_v58 }
 0x1bf   :  { %2579 = vmatpush1.bf16.msra.mxu0 %v8851_v8  ;;  %2661 = vmatpush1.bf16.msra.mxu1 %v8853_v9  ;;  %v8910_v8 = vcombine.high %v802_v3, %v806_v4  ;;  %v809_v9 = vld [vmem:[#allocation4 + $0x240] sm:$0xff]  ;;  %v842_v4 = vld [vmem:[#allocation4 + $0x348] sm:$0xff] }
 0x1c0   :  { %2580 = vmatprep.subr.bf16.mxu0 %v8860_v10  ;;  %2662 = vmatprep.subr.bf16.mxu1 %v8862_v11  ;;  %v813_v10 = vld [vmem:[#allocation4 + $0x260] sm:$0xff]  ;;  %v810_v11 = vld [vmem:[#allocation4 + $0x248] sm:$0xff] }
 0x1c1   :  { %v8916_v15 = vcombine.high %v809_v9, %v813_v10 }
 0x1c3   :  { %2581 = vmatpush1.bf16.msra.mxu0 %v8859_v16  ;;  %2663 = vmatpush1.bf16.msra.mxu1 %v8861_v17  ;;  %v8918_v16 = vcombine.high %v810_v11, %v814_v12  ;;  %v817_v17 = vld [vmem:[#allocation4 + $0x280] sm:$0xff] }
 0x1c4   :  { %2582 = vmatprep.subr.bf16.mxu0 %v8868_v18  ;;  %2664 = vmatprep.subr.bf16.mxu1 %v8870_v19  ;;  %v821_v18 = vld [vmem:[#allocation4 + $0x2a0] sm:$0xff]  ;;  %v818_v19 = vld [vmem:[#allocation4 + $0x288] sm:$0xff] }
 0x1c7   :  { %2583 = vmatpush1.bf16.msra.mxu0 %v8867_v26  ;;  %2665 = vmatpush1.bf16.msra.mxu1 %v8869_v29  ;;  %v8923_v29 = vcombine.low %v817_v17, %v821_v18 }
 0x28d   :  { %v610_v36 = vpop.f32.mrb[0].mxu0  ;;  %v651_v39 = vpop.f32.mrb[0].mxu1 }
 0x28e   :  { %v11286_v40 = vadd.f32 %v610_v36, %v239_v32  ;;  %v612_v41 = vpop.f32.mrb[1].mxu0  ;;  %v653_v42 = vpop.f32.mrb[1].mxu1  ;;  %v11291_v49 = vadd.f32 %v651_v39, %v247_v38  ;;  %v8876_v32 = vcombine.high %v769_v21, %v773_v22  ;;  %v777_v36 = vld [vmem:[#allocation4 + $0x140] sm:$0xff]  ;;  %v778_v39 = vld [vmem:[#allocation4 + $0x148] sm:$0xff] }
 0x28f   :  { %v11288_v43 = vadd.f32 %v612_v41, %v243_v35  ;;  %v614_v45 = vpop.f32.mrb[2].mxu0  ;;  %v655_v46 = vpop.f32.mrb[2].mxu1  ;;  %v11295_v51 = vadd.f32 %v653_v42, %v251_v44  ;;  %v8878_v35 = vcombine.high %v770_v24, %v774_v25  ;;  %v781_v38 = vld [vmem:[#allocation4 + $0x160] sm:$0xff]  ;;  %v782_v41 = vld [vmem:[#allocation4 + $0x168] sm:$0xff]  ;;  %v8875_v42 = vcombine.low %v769_v21, %v773_v22 }
 0x290   :  { %v615_v47 = vpop.f32.mrb[3].mxu0  ;;  %v656_v48 = vpop.f32.mrb[3].mxu1  ;;  %2584 = vmatprep.subr.bf16.mxu0 %v8876_v32  ;;  %v8877_v44 = vcombine.low %v770_v24, %v774_v25  ;;  %v8884_v45 = vcombine.high %v777_v36, %v781_v38  ;;  %v8886_v46 = vcombine.high %v778_v39, %v782_v41  ;;  %v8885_v54 = vcombine.low %v778_v39, %v782_v41  ;;  %v822_v21 = vld [vmem:[#allocation4 + $0x2a8] sm:$0xff] }
 0x291   :  { %v658_v50 = vadd.f32 %v11288_v43, %v11286_v40  ;;  %2666 = vmatprep.subr.bf16.mxu1 %v8878_v35  ;;  %v785_v47 = vld [vmem:[#allocation4 + $0x180] sm:$0xff]  ;;  %2585 = vmatpush1.bf16.msra.mxu0 %v8875_v42  ;;  %v8915_v22 = vcombine.low %v809_v9, %v813_v10  ;;  %v8917_v24 = vcombine.low %v810_v11, %v814_v12  ;;  %v850_v9 = vld [vmem:[#allocation4 + $0x388] sm:$0xff] }
 0x292   :  { %v789_v48 = vld [vmem:[#allocation4 + $0x1a0] sm:$0xff]  ;;  %2667 = vmatpush1.bf16.msra.mxu1 %v8877_v44  ;;  %2586 = vmatprep.subr.bf16.mxu0 %v8884_v45  ;;  %v8924_v25 = vcombine.high %v817_v17, %v821_v18  ;;  %v8926_v26 = vcombine.high %v818_v19, %v822_v21  ;;  %v8925_v32 = vcombine.low %v818_v19, %v822_v21  ;;  %v854_v10 = vld [vmem:[#allocation4 + $0x3a8] sm:$0xff] }
 0x293   :  { %v659_v52 = vadd.f32 %v658_v50, %v11291_v49  ;;  %v786_v50 = vld [vmem:[#allocation4 + $0x188] sm:$0xff]  ;;  %v8892_v55 = vcombine.high %v785_v47, %v789_v48  ;;  %2668 = vmatprep.subr.bf16.mxu1 %v8886_v46  ;;  %v8891_v61 = vcombine.low %v785_v47, %v789_v48  ;;  %v8957_v21 = vcombine.low %v850_v9, %v854_v10 }
 0x294   :  { %v858_v17 = vld [vmem:[#allocation4 + $0x3c8] sm:$0xff] }
 0x295   :  { %v660_v53 = vadd.f32 %v659_v52, %v11295_v51  ;;  %v790_v52 = vld [vmem:[#allocation4 + $0x1a8] sm:$0xff] }
 0x296   :  { %v8894_v56 = vcombine.high %v786_v50, %v790_v52  ;;  %2669 = vmatpush1.bf16.msra.mxu1 %v8885_v54  ;;  %v8893_v62 = vcombine.low %v786_v50, %v790_v52  ;;  %v829_v50 = vld [vmem:[#allocation4 + $0x2e0] sm:$0xff]  ;;  %v862_v18 = vld [vmem:[#allocation4 + $0x3e8] sm:$0xff] }
 0x297   :  { %661 = vadd.xlane.f32.xlu1 %v660_v53  ;;  %v8883_v53 = vcombine.low %v777_v36, %v781_v38 }
 0x298   :  { %2670 = vmatprep.subr.bf16.mxu1 %v8894_v56 }
 0x299   :  { %2587 = vmatpush1.bf16.msra.mxu0 %v8883_v53  ;;  %v830_v53 = vld [vmem:[#allocation4 + $0x2e8] sm:$0xff] }
 0x29a   :  { %2588 = vmatprep.subr.bf16.mxu0 %v8892_v55  ;;  %2671 = vmatpush1.bf16.msra.mxu1 %v8893_v62  ;;  %v838_v62 = vld [vmem:[#allocation4 + $0x328] sm:$0xff] }
 0x29b   :  { %2672 = vmatprep.subr.bf16.mxu1 %v8902_v0  ;;  %v845_v0 = vld [vmem:[#allocation4 + $0x360] sm:$0xff]  ;;  %v8941_v1 = vcombine.low %v834_v59, %v838_v62  ;;  %v8942_v2 = vcombine.high %v834_v59, %v838_v62 }
 0x29d   :  { %2589 = vmatpush1.bf16.msra.mxu0 %v8891_v61  ;;  %v8940_v61 = vcombine.high %v833_v57, %v837_v58 }
 0x29e   :  { %2590 = vmatprep.subr.bf16.mxu0 %v8900_v63  ;;  %2673 = vmatpush1.bf16.msra.mxu1 %v8901_v6  ;;  %v841_v63 = vld [vmem:[#allocation4 + $0x340] sm:$0xff] }
 0x29f   :  { %2674 = vmatprep.subr.bf16.mxu1 %v8910_v8  ;;  %v8948_v3 = vcombine.high %v841_v63, %v845_v0  ;;  %v849_v6 = vld [vmem:[#allocation4 + $0x380] sm:$0xff]  ;;  %v8947_v11 = vcombine.low %v841_v63, %v845_v0 }
 0x2a0   :  { %v853_v8 = vld [vmem:[#allocation4 + $0x3a0] sm:$0xff] }
 0x2a1   :  { %2591 = vmatpush1.bf16.msra.mxu0 %v8899_v5  ;;  %v846_v5 = vld [vmem:[#allocation4 + $0x368] sm:$0xff]  ;;  %v8955_v19 = vcombine.low %v849_v6, %v853_v8 }
 0x2a2   :  { %2592 = vmatprep.subr.bf16.mxu0 %v8908_v7  ;;  %2675 = vmatpush1.bf16.msra.mxu1 %v8909_v14  ;;  %v8950_v7 = vcombine.high %v842_v4, %v846_v5  ;;  %v8949_v12 = vcombine.low %v842_v4, %v846_v5  ;;  %v8958_v14 = vcombine.high %v850_v9, %v854_v10  ;;  %v881_v10 = vld [vmem:[#allocation4 + $0x480] sm:$0xff] }
 0x2a3   :  { %2676 = vmatprep.subr.bf16.mxu1 %v8918_v16  ;;  %v861_v16 = vld [vmem:[#allocation4 + $0x3e0] sm:$0xff] }
 0x2a5   :  { %2593 = vmatpush1.bf16.msra.mxu0 %v8907_v13  ;;  %v8956_v13 = vcombine.high %v849_v6, %v853_v8  ;;  %v873_v6 = vld [vmem:[#allocation4 + $0x440] sm:$0xff]  ;;  %v874_v8 = vld [vmem:[#allocation4 + $0x448] sm:$0xff] }
 0x2a6   :  { %2594 = vmatprep.subr.bf16.mxu0 %v8916_v15  ;;  %2677 = vmatpush1.bf16.msra.mxu1 %v8917_v24  ;;  %v857_v15 = vld [vmem:[#allocation4 + $0x3c0] sm:$0xff]  ;;  %v8966_v24 = vcombine.high %v858_v17, %v862_v18 }
 0x2a7   :  { %2678 = vmatprep.subr.bf16.mxu1 %v8926_v26  ;;  %v8965_v26 = vcombine.low %v858_v17, %v862_v18 }
 0x2a9   :  { %2595 = vmatpush1.bf16.msra.mxu0 %v8915_v22  ;;  %v8964_v22 = vcombine.high %v857_v15, %v861_v16 }
 0x2aa   :  { %2596 = vmatprep.subr.bf16.mxu0 %v8924_v25  ;;  %2679 = vmatpush1.bf16.msra.mxu1 %v8925_v32  ;;  %v8963_v25 = vcombine.low %v857_v15, %v861_v16  ;;  %v869_v32 = vld [vmem:[#allocation4 + $0x420] sm:$0xff]  ;;  %v886_v15 = vld [vmem:[#allocation4 + $0x4a8] sm:$0xff] }
 0x2ad   :  { %2597 = vmatpush1.bf16.msra.mxu0 %v8923_v29  ;;  %v865_v29 = vld [vmem:[#allocation4 + $0x400] sm:$0xff] }
 0x324   :  { %v662_v35 = vpop.xlane.xlu1 %661 }
 0x325   :  { %v664_v36 = vmul.f32 0.001953125, %v662_v35  ;;  %v866_v35 = vld [vmem:[#allocation4 + $0x408] sm:$0xff] }
 0x327   :  { %v11300_v38 = vsub.f32 %v11286_v40, %v664_v36  ;;  %v11303_v39 = vsub.f32 %v11288_v43, %v664_v36  ;;  %v11306_v41 = vsub.f32 %v11291_v49, %v664_v36  ;;  %v11309_v42 = vsub.f32 %v11295_v51, %v664_v36  ;;  %v825_v49 = vld [vmem:[#allocation4 + $0x2c0] sm:$0xff]  ;;  %v826_v51 = vld [vmem:[#allocation4 + $0x2c8] sm:$0xff] }
 0x328   :  { %v8932_v52 = vcombine.high %v825_v49, %v829_v50  ;;  %v8931_v54 = vcombine.low %v825_v49, %v829_v50  ;;  %v8933_v55 = vcombine.low %v826_v51, %v830_v53  ;;  %v8934_v56 = vcombine.high %v826_v51, %v830_v53  ;;  %v685_v49 = vld [vmem:[%s11619_s3] sm:$0xf] }
 0x329   :  { %v669_v44 = vmul.f32 %v11300_v38, %v11300_v38  ;;  %v670_v45 = vmul.f32 %v11303_v39, %v11303_v39  ;;  %v671_v46 = vmul.f32 %v11306_v41, %v11306_v41  ;;  %v672_v43 = vmul.f32 %v11309_v42, %v11309_v42  ;;  %v711_v50 = vld [vmem:[%s11620_s4] sm:$0xf] }
 0x32a   :  { %2598 = vmatprep.subr.bf16.mxu0 %v8932_v52  ;;  %2680 = vmatprep.subr.bf16.mxu1 %v8934_v56  ;;  %v8972_v36 = vcombine.high %v865_v29, %v869_v32  ;;  %v694_v51 = vrot.slane %v685_v49, %v11275_v30  ;;  %v690_v52 = vrot.slane %v685_v49, %v11269_v28 }
 0x32b   :  { %v673_v40 = vadd.f32 %v670_v45, %v669_v44  ;;  %2599 = vmatpush1.bf16.msra.mxu0 %v8931_v54  ;;  %2681 = vmatpush1.bf16.msra.mxu1 %v8933_v55  ;;  %v870_v44 = vld [vmem:[#allocation4 + $0x428] sm:$0xff]  ;;  %v8971_v45 = vcombine.low %v865_v29, %v869_v32  ;;  %v702_v53 = vrot.slane %v685_v49, %v11283_v33 }
 0x32c   :  { %2600 = vmatprep.subr.bf16.mxu0 %v8940_v61  ;;  %2682 = vmatprep.subr.bf16.mxu1 %v8942_v2  ;;  %v698_v54 = vrot.slane %v685_v49, %v11278_v31  ;;  %v720_v56 = vrot.slane %v711_v50, %v11275_v30  ;;  %v716_v57 = vrot.slane %v711_v50, %v11269_v28 }
 0x32d   :  { %v674_v47 = vadd.f32 %v673_v40, %v671_v46  ;;  %v8973_v46 = vcombine.low %v866_v35, %v870_v44  ;;  %v8974_v40 = vcombine.high %v866_v35, %v870_v44  ;;  %v724_v58 = vrot.slane %v711_v50, %v11278_v31  ;;  %v897_v44 = vld [vmem:[#allocation4 + $0x500] sm:$0xff] }
 0x32e   :  { %v728_v63 = vrot.slane %v711_v50, %v11283_v33  ;;  %v905_v50 = vld [vmem:[#allocation4 + $0x540] sm:$0xff] }
 0x32f   :  { %v675_v48 = vadd.f32 %v674_v47, %v672_v43  ;;  %2601 = vmatpush1.bf16.msra.mxu0 %v8939_v60  ;;  %2683 = vmatpush1.bf16.msra.mxu1 %v8941_v1 }
 0x330   :  { %2602 = vmatprep.subr.bf16.mxu0 %v8948_v3  ;;  %2684 = vmatprep.subr.bf16.mxu1 %v8950_v7 }
 0x331   :  { %676 = vadd.xlane.f32.xlu1 %v675_v48 }
 0x333   :  { %2603 = vmatpush1.bf16.msra.mxu0 %v8947_v11  ;;  %2685 = vmatpush1.bf16.msra.mxu1 %v8949_v12 }
 0x334   :  { %2604 = vmatprep.subr.bf16.mxu0 %v8956_v13  ;;  %2686 = vmatprep.subr.bf16.mxu1 %v8958_v14  ;;  %v885_v13 = vld [vmem:[#allocation4 + $0x4a0] sm:$0xff]  ;;  %v882_v14 = vld [vmem:[#allocation4 + $0x488] sm:$0xff] }
 0x335   :  { %v8987_v29 = vcombine.low %v881_v10, %v885_v13  ;;  %v8989_v32 = vcombine.low %v882_v14, %v886_v15 }
 0x337   :  { %2605 = vmatpush1.bf16.msra.mxu0 %v8955_v19  ;;  %2687 = vmatpush1.bf16.msra.mxu1 %v8957_v21  ;;  %v8988_v19 = vcombine.high %v881_v10, %v885_v13  ;;  %v8990_v21 = vcombine.high %v882_v14, %v886_v15  ;;  %v933_v13 = vld [vmem:[#allocation4 + $0x620] sm:$0xff]  ;;  %v930_v14 = vld [vmem:[#allocation4 + $0x608] sm:$0xff] }
 0x338   :  { %2606 = vmatprep.subr.bf16.mxu0 %v8964_v22  ;;  %2688 = vmatprep.subr.bf16.mxu1 %v8966_v24  ;;  %v889_v22 = vld [vmem:[#allocation4 + $0x4c0] sm:$0xff]  ;;  %v934_v15 = vld [vmem:[#allocation4 + $0x628] sm:$0xff] }
 0x339   :  { %v893_v24 = vld [vmem:[#allocation4 + $0x4e0] sm:$0xff] }
 0x33a   :  { %v8996_v35 = vcombine.high %v889_v22, %v893_v24 }
 0x33b   :  { %2607 = vmatpush1.bf16.msra.mxu0 %v8963_v25  ;;  %2689 = vmatpush1.bf16.msra.mxu1 %v8965_v26  ;;  %v890_v25 = vld [vmem:[#allocation4 + $0x4c8] sm:$0xff] }
 0x33c   :  { %2617 = vmatprep.subr.bf16.mxu0 %v8972_v36  ;;  %2699 = vmatprep.subr.bf16.mxu1 %v8974_v40  ;;  %v894_v26 = vld [vmem:[#allocation4 + $0x4e8] sm:$0xff] }
 0x33d   :  { %v8998_v36 = vcombine.high %v890_v25, %v894_v26  ;;  %v902_v40 = vld [vmem:[#allocation4 + $0x528] sm:$0xff] }
 0x3be   :  { %v677_v43 = vpop.xlane.xlu1 %676 }
 0x3bf   :  { %v678_v47 = vmul.f32 0.001953125, %v677_v43  ;;  %v8995_v43 = vcombine.low %v889_v22, %v893_v24  ;;  %v937_v22 = vld [vmem:[#allocation4 + $0x640] sm:$0xff] }
 0x3c0   :  { %v941_v24 = vld [vmem:[#allocation4 + $0x660] sm:$0xff] }
 0x3c1   :  { %v679_v48 = vadd.f32 1e-05, %v678_v47  ;;  %v8997_v47 = vcombine.low %v890_v25, %v894_v26  ;;  %v938_v25 = vld [vmem:[#allocation4 + $0x648] sm:$0xff] }
 0x3c2   :  { %v942_v26 = vld [vmem:[#allocation4 + $0x668] sm:$0xff] }
 0x3c3   :  { %10906 = vrsqrt.f32 %v679_v48 }
 0x3cd   :  { %v10907_v55 = vpop.eup %10906 }
 0x3ce   :  { %v682_v59 = vmul.f32 %v10907_v55, %v11303_v39  ;;  %v681_v60 = vmul.f32 %v10907_v55, %v11300_v38  ;;  %v684_v61 = vmul.f32 %v10907_v55, %v11309_v42  ;;  %v683_v62 = vmul.f32 %v10907_v55, %v11306_v41  ;;  %v877_v38 = vld [vmem:[#allocation4 + $0x460] sm:$0xff]  ;;  %v878_v42 = vld [vmem:[#allocation4 + $0x468] sm:$0xff] }
 0x3cf   :  { %v8980_v11 = vcombine.high %v873_v6, %v877_v38  ;;  %v8982_v12 = vcombine.high %v874_v8, %v878_v42  ;;  %v8979_v17 = vcombine.low %v873_v6, %v877_v38  ;;  %v8981_v18 = vcombine.low %v874_v8, %v878_v42  ;;  %v922_v6 = vld [vmem:[#allocation4 + $0x5c8] sm:$0xff] }
 0x3d0   :  { %v708_v0 = vmul.f32 %v694_v51, %v682_v59  ;;  %v707_v1 = vmul.f32 %v690_v52, %v681_v60  ;;  %v710_v2 = vmul.f32 %v702_v53, %v684_v61  ;;  %v709_v3 = vmul.f32 %v698_v54, %v683_v62  ;;  %v909_v51 = vld [vmem:[#allocation4 + $0x560] sm:$0xff]  ;;  %v906_v52 = vld [vmem:[#allocation4 + $0x548] sm:$0xff] }
 0x3d1   :  { %v910_v53 = vld [vmem:[#allocation4 + $0x568] sm:$0xff]  ;;  %v917_v59 = vld [vmem:[#allocation4 + $0x5a0] sm:$0xff]  ;;  %v9011_v62 = vcombine.low %v905_v50, %v909_v51 }
 0x3d2   :  { %v11337_v4 = vadd.f32 %v720_v56, %v708_v0  ;;  %v11339_v5 = vadd.f32 %v716_v57, %v707_v1  ;;  %v11341_v7 = vadd.f32 %v724_v58, %v709_v3  ;;  %v11343_v39 = vadd.f32 %v728_v63, %v710_v2  ;;  %v913_v58 = vld [vmem:[#allocation4 + $0x580] sm:$0xff]  ;;  %v914_v60 = vld [vmem:[#allocation4 + $0x588] sm:$0xff] }
 0x3d3   :  { %v9012_v56 = vcombine.high %v905_v50, %v909_v51  ;;  %v9014_v57 = vcombine.high %v906_v52, %v910_v53  ;;  %v918_v61 = vld [vmem:[#allocation4 + $0x5a8] sm:$0xff]  ;;  %v9013_v63 = vcombine.low %v906_v52, %v910_v53  ;;  %v9020_v0 = vcombine.high %v913_v58, %v917_v59  ;;  %v921_v2 = vld [vmem:[#allocation4 + $0x5c0] sm:$0xff] }
 0x3d4   :  { %v11347_v41 = vpack.c.bf16 %v11337_v4, %v11337_v4  ;;  %v11351_v9 = vpack.c.bf16 %v11339_v5, %v11339_v5  ;;  %v11359_v16 = vpack.c.bf16 %v11343_v39, %v11343_v39  ;;  %v9022_v1 = vcombine.high %v914_v60, %v918_v61  ;;  %v925_v3 = vld [vmem:[#allocation4 + $0x5e0] sm:$0xff]  ;;  %v926_v38 = vld [vmem:[#allocation4 + $0x5e8] sm:$0xff] }
 0x3d5   :  { %v9019_v8 = vcombine.low %v913_v58, %v917_v59  ;;  %v9021_v42 = vcombine.low %v914_v60, %v918_v61  ;;  %v9028_v10 = vcombine.high %v921_v2, %v925_v3  ;;  %v953_v50 = vld [vmem:[#allocation4 + $0x6c0] sm:$0xff]  ;;  %v954_v52 = vld [vmem:[#allocation4 + $0x6c8] sm:$0xff] }
 0x3d6   :  { %2608 = vmatprep.mubr.bf16.mxu0 %v11347_v41  ;;  %2690 = vmatprep.mubr.bf16.mxu1 %v11347_v41  ;;  %v957_v51 = vld [vmem:[#allocation4 + $0x6e0] sm:$0xff]  ;;  %v958_v53 = vld [vmem:[#allocation4 + $0x6e8] sm:$0xff] }
 0x3d7   :  { %2609 = vmatmul.mubr.bf16.vlgmr.msra.gmra.mrb[4].mxu0 %v11351_v9  ;;  %2691 = vmatmul.mubr.bf16.vlgmr.msra.gmra.mrb[4].mxu1 %v11351_v9  ;;  %v961_v58 = vld [vmem:[#allocation4 + $0x700] sm:$0xff]  ;;  %v962_v60 = vld [vmem:[#allocation4 + $0x708] sm:$0xff] }
 0x3d8   :  { %2618 = vmatpush1.bf16.msra.mxu0 %v8971_v45  ;;  %2700 = vmatpush1.bf16.msra.mxu1 %v8973_v46  ;;  %v901_v45 = vld [vmem:[#allocation4 + $0x520] sm:$0xff]  ;;  %v898_v46 = vld [vmem:[#allocation4 + $0x508] sm:$0xff] }
 0x3d9   :  { %2649 = vmatprep.mubr.bf16.mxu0 %v11359_v16  ;;  %2731 = vmatprep.mubr.bf16.mxu1 %v11359_v16  ;;  %v9004_v48 = vcombine.high %v897_v44, %v901_v45  ;;  %v9006_v49 = vcombine.high %v898_v46, %v902_v40  ;;  %v9003_v54 = vcombine.low %v897_v44, %v901_v45  ;;  %v945_v44 = vld [vmem:[#allocation4 + $0x680] sm:$0xff]  ;;  %v966_v61 = vld [vmem:[#allocation4 + $0x728] sm:$0xff] }
 0x3da   :  { %2619 = vmatprep.subr.bf16.mxu0 %v8980_v11  ;;  %2701 = vmatprep.subr.bf16.mxu1 %v8982_v12  ;;  %v9005_v55 = vcombine.low %v898_v46, %v902_v40  ;;  %v9030_v11 = vcombine.high %v922_v6, %v926_v38  ;;  %v929_v12 = vld [vmem:[#allocation4 + $0x600] sm:$0xff]  ;;  %v946_v46 = vld [vmem:[#allocation4 + $0x688] sm:$0xff] }
 0x3db   :  { %v949_v45 = vld [vmem:[#allocation4 + $0x6a0] sm:$0xff]  ;;  %v950_v40 = vld [vmem:[#allocation4 + $0x6a8] sm:$0xff] }
 0x3dc   :  { %2620 = vmatpush1.bf16.msra.mxu0 %v8979_v17  ;;  %2702 = vmatpush1.bf16.msra.mxu1 %v8981_v18  ;;  %v9027_v17 = vcombine.low %v921_v2, %v925_v3  ;;  %v9029_v18 = vcombine.low %v922_v6, %v926_v38  ;;  %v965_v59 = vld [vmem:[#allocation4 + $0x720] sm:$0xff]  ;;  %v970_v6 = vld [vmem:[#allocation4 + $0x748] sm:$0xff] }
 0x3dd   :  { %2621 = vmatprep.subr.bf16.mxu0 %v8988_v19  ;;  %2703 = vmatprep.subr.bf16.mxu1 %v8990_v21  ;;  %v9036_v19 = vcombine.high %v929_v12, %v933_v13  ;;  %v9038_v21 = vcombine.high %v930_v14, %v934_v15  ;;  %v969_v2 = vld [vmem:[#allocation4 + $0x740] sm:$0xff]  ;;  %v974_v38 = vld [vmem:[#allocation4 + $0x768] sm:$0xff] }
 0x3de   :  { %v973_v3 = vld [vmem:[#allocation4 + $0x760] sm:$0xff] }
 0x3e0   :  { %2622 = vmatpush1.bf16.msra.mxu0 %v8987_v29  ;;  %2704 = vmatpush1.bf16.msra.mxu1 %v8989_v32  ;;  %v9035_v29 = vcombine.low %v929_v12, %v933_v13  ;;  %v9037_v32 = vcombine.low %v930_v14, %v934_v15  ;;  %v977_v12 = vld [vmem:[#allocation4 + $0x780] sm:$0xff]  ;;  %v978_v14 = vld [vmem:[#allocation4 + $0x788] sm:$0xff] }
 0x3e1   :  { %2623 = vmatprep.subr.bf16.mxu0 %v8996_v35  ;;  %2705 = vmatprep.subr.bf16.mxu1 %v8998_v36  ;;  %v9044_v35 = vcombine.high %v937_v22, %v941_v24  ;;  %v9046_v36 = vcombine.high %v938_v25, %v942_v26  ;;  %v981_v13 = vld [vmem:[#allocation4 + $0x7a0] sm:$0xff]  ;;  %v982_v15 = vld [vmem:[#allocation4 + $0x7a8] sm:$0xff] }
 0x3e4   :  { %2624 = vmatpush1.bf16.msra.mxu0 %v8995_v43  ;;  %2706 = vmatpush1.bf16.msra.mxu1 %v8997_v47  ;;  %v9043_v43 = vcombine.low %v937_v22, %v941_v24  ;;  %v9045_v47 = vcombine.low %v938_v25, %v942_v26  ;;  %v985_v22 = vld [vmem:[#allocation4 + $0x7c0] sm:$0xff]  ;;  %v986_v25 = vld [vmem:[#allocation4 + $0x7c8] sm:$0xff] }
 0x3e5   :  { %2625 = vmatprep.subr.bf16.mxu0 %v9004_v48  ;;  %2707 = vmatprep.subr.bf16.mxu1 %v9006_v49  ;;  %v9052_v48 = vcombine.high %v945_v44, %v949_v45  ;;  %v9054_v49 = vcombine.high %v946_v46, %v950_v40  ;;  %v989_v24 = vld [vmem:[#allocation4 + $0x7e0] sm:$0xff]  ;;  %v990_v26 = vld [vmem:[#allocation4 + $0x7e8] sm:$0xff] }
 0x3e8   :  { %2626 = vmatpush1.bf16.msra.mxu0 %v9003_v54  ;;  %2708 = vmatpush1.bf16.msra.mxu1 %v9005_v55  ;;  %v9051_v54 = vcombine.low %v945_v44, %v949_v45  ;;  %v9053_v55 = vcombine.low %v946_v46, %v950_v40  ;;  %v739_v44 = vld [vmem:[#allocation4 + $0x10] sm:$0xff]  ;;  %v740_v46 = vld [vmem:[#allocation4 + $0x18] sm:$0xff] }
 0x3e9   :  { %2627 = vmatprep.subr.bf16.mxu0 %v9012_v56  ;;  %2709 = vmatprep.subr.bf16.mxu1 %v9014_v57  ;;  %v9060_v56 = vcombine.high %v953_v50, %v957_v51  ;;  %v9062_v57 = vcombine.high %v954_v52, %v958_v53  ;;  %v743_v45 = vld [vmem:[#allocation4 + $0x30] sm:$0xff]  ;;  %v744_v40 = vld [vmem:[#allocation4 + $0x38] sm:$0xff] }
 0x3ec   :  { %2628 = vmatpush1.bf16.msra.mxu0 %v9011_v62  ;;  %2710 = vmatpush1.bf16.msra.mxu1 %v9013_v63  ;;  %v9059_v62 = vcombine.low %v953_v50, %v957_v51  ;;  %v9061_v63 = vcombine.low %v954_v52, %v958_v53  ;;  %v747_v50 = vld [vmem:[#allocation4 + $0x50] sm:$0xff]  ;;  %v748_v52 = vld [vmem:[#allocation4 + $0x58] sm:$0xff] }
 0x3ed   :  { %2629 = vmatprep.subr.bf16.mxu0 %v9020_v0  ;;  %2711 = vmatprep.subr.bf16.mxu1 %v9022_v1  ;;  %v9068_v0 = vcombine.high %v961_v58, %v965_v59  ;;  %v9070_v1 = vcombine.high %v962_v60, %v966_v61  ;;  %v751_v51 = vld [vmem:[#allocation4 + $0x70] sm:$0xff]  ;;  %v752_v53 = vld [vmem:[#allocation4 + $0x78] sm:$0xff] }
 0x3f0   :  { %2630 = vmatpush1.bf16.msra.mxu0 %v9019_v8  ;;  %2712 = vmatpush1.bf16.msra.mxu1 %v9021_v42  ;;  %v9067_v8 = vcombine.low %v961_v58, %v965_v59  ;;  %v9069_v42 = vcombine.low %v962_v60, %v966_v61  ;;  %v8858_v58 = vcombine.high %v748_v52, %v752_v53  ;;  %v755_v59 = vld [vmem:[#allocation4 + $0x90] sm:$0xff]  ;;  %v756_v61 = vld [vmem:[#allocation4 + $0x98] sm:$0xff] }
 0x3f1   :  { %2631 = vmatprep.subr.bf16.mxu0 %v9028_v10  ;;  %2713 = vmatprep.subr.bf16.mxu1 %v9030_v11  ;;  %v9076_v10 = vcombine.high %v969_v2, %v973_v3  ;;  %v9078_v11 = vcombine.high %v970_v6, %v974_v38  ;;  %v759_v60 = vld [vmem:[#allocation4 + $0xb0] sm:$0xff] }
 0x3f4   :  { %2632 = vmatpush1.bf16.msra.mxu0 %v9027_v17  ;;  %2714 = vmatpush1.bf16.msra.mxu1 %v9029_v18  ;;  %v9075_v17 = vcombine.low %v969_v2, %v973_v3  ;;  %v9077_v18 = vcombine.low %v970_v6, %v974_v38  ;;  %v763_v3 = vld [vmem:[#allocation4 + $0xd0] sm:$0xff]  ;;  %v764_v38 = vld [vmem:[#allocation4 + $0xd8] sm:$0xff] }
 0x3f5   :  { %2633 = vmatprep.subr.bf16.mxu0 %v9036_v19  ;;  %2715 = vmatprep.subr.bf16.mxu1 %v9038_v21  ;;  %v9084_v19 = vcombine.high %v977_v12, %v981_v13  ;;  %v9086_v21 = vcombine.high %v978_v14, %v982_v15  ;;  %v767_v6 = vld [vmem:[#allocation4 + $0xf0] sm:$0xff] }
 0x3f8   :  { %2634 = vmatpush1.bf16.msra.mxu0 %v9035_v29  ;;  %2716 = vmatpush1.bf16.msra.mxu1 %v9037_v32  ;;  %v9083_v29 = vcombine.low %v977_v12, %v981_v13  ;;  %v9085_v32 = vcombine.low %v978_v14, %v982_v15  ;;  %v771_v13 = vld [vmem:[#allocation4 + $0x110] sm:$0xff]  ;;  %v776_v15 = vld [vmem:[#allocation4 + $0x138] sm:$0xff] }
 0x3f9   :  { %2635 = vmatprep.subr.bf16.mxu0 %v9044_v35  ;;  %2717 = vmatprep.subr.bf16.mxu1 %v9046_v36  ;;  %v9092_v35 = vcombine.high %v985_v22, %v989_v24  ;;  %v9094_v36 = vcombine.high %v986_v25, %v990_v26  ;;  %v775_v14 = vld [vmem:[#allocation4 + $0x130] sm:$0xff] }
 0x3fc   :  { %2636 = vmatpush1.bf16.msra.mxu0 %v9043_v43  ;;  %2718 = vmatpush1.bf16.msra.mxu1 %v9045_v47  ;;  %v9091_v43 = vcombine.low %v985_v22, %v989_v24  ;;  %v9093_v47 = vcombine.low %v986_v25, %v990_v26  ;;  %v779_v22 = vld [vmem:[#allocation4 + $0x150] sm:$0xff]  ;;  %v780_v25 = vld [vmem:[#allocation4 + $0x158] sm:$0xff] }
 0x3fd   :  { %2637 = vmatprep.subr.bf16.mxu0 %v9052_v48  ;;  %2719 = vmatprep.subr.bf16.mxu1 %v9054_v49  ;;  %v8848_v48 = vcombine.high %v739_v44, %v743_v45  ;;  %v8850_v49 = vcombine.high %v740_v46, %v744_v40  ;;  %v783_v24 = vld [vmem:[#allocation4 + $0x170] sm:$0xff]  ;;  %v784_v26 = vld [vmem:[#allocation4 + $0x178] sm:$0xff] }
 0x400   :  { %2638 = vmatpush1.bf16.msra.mxu0 %v9051_v54  ;;  %2720 = vmatpush1.bf16.msra.mxu1 %v9053_v55  ;;  %v8847_v54 = vcombine.low %v739_v44, %v743_v45  ;;  %v11365_v55 = vpack.c.bf16 %v11341_v7, %v11341_v7  ;;  %v787_v44 = vld [vmem:[#allocation4 + $0x190] sm:$0xff] }
 0x401   :  { %2639 = vmatprep.subr.bf16.mxu0 %v9060_v56  ;;  %2721 = vmatprep.subr.bf16.mxu1 %v9062_v57  ;;  %v8849_v56 = vcombine.low %v740_v46, %v744_v40  ;;  %v8856_v57 = vcombine.high %v747_v50, %v751_v51  ;;  %v791_v45 = vld [vmem:[#allocation4 + $0x1b0] sm:$0xff]  ;;  %v788_v46 = vld [vmem:[#allocation4 + $0x198] sm:$0xff] }
 0x402   :  { %v792_v40 = vld [vmem:[#allocation4 + $0x1b8] sm:$0xff] }
 0x404   :  { %2640 = vmatpush1.bf16.msra.mxu0 %v9059_v62  ;;  %2722 = vmatpush1.bf16.msra.mxu1 %v9061_v63  ;;  %v760_v62 = vld [vmem:[#allocation4 + $0xb8] sm:$0xff]  ;;  %v8855_v63 = vcombine.low %v747_v50, %v751_v51  ;;  %v795_v50 = vld [vmem:[#allocation4 + $0x1d0] sm:$0xff] }
 0x405   :  { %2641 = vmatprep.subr.bf16.mxu0 %v9068_v0  ;;  %2723 = vmatprep.subr.bf16.mxu1 %v9070_v1  ;;  %v8857_v0 = vcombine.low %v748_v52, %v752_v53  ;;  %v8864_v1 = vcombine.high %v755_v59, %v759_v60  ;;  %v8866_v2 = vcombine.high %v756_v61, %v760_v62  ;;  %v799_v51 = vld [vmem:[#allocation4 + $0x1f0] sm:$0xff]  ;;  %v796_v52 = vld [vmem:[#allocation4 + $0x1d8] sm:$0xff] }
 0x406   :  { %v800_v53 = vld [vmem:[#allocation4 + $0x1f8] sm:$0xff] }
 0x408   :  { %2642 = vmatpush1.bf16.msra.mxu0 %v9067_v8  ;;  %2724 = vmatpush1.bf16.msra.mxu1 %v9069_v42  ;;  %v768_v8 = vld [vmem:[#allocation4 + $0xf8] sm:$0xff]  ;;  %v8863_v42 = vcombine.low %v755_v59, %v759_v60  ;;  %v803_v59 = vld [vmem:[#allocation4 + $0x210] sm:$0xff] }
 0x409   :  { %2643 = vmatprep.subr.bf16.mxu0 %v9076_v10  ;;  %2725 = vmatprep.subr.bf16.mxu1 %v9078_v11  ;;  %v8865_v10 = vcombine.low %v756_v61, %v760_v62  ;;  %v8872_v11 = vcombine.high %v763_v3, %v767_v6  ;;  %v8874_v12 = vcombine.high %v764_v38, %v768_v8  ;;  %v807_v60 = vld [vmem:[#allocation4 + $0x230] sm:$0xff]  ;;  %v804_v61 = vld [vmem:[#allocation4 + $0x218] sm:$0xff] }
 0x40a   :  { %v808_v62 = vld [vmem:[#allocation4 + $0x238] sm:$0xff] }
 0x40c   :  { %2644 = vmatpush1.bf16.msra.mxu0 %v9075_v17  ;;  %2726 = vmatpush1.bf16.msra.mxu1 %v9077_v18  ;;  %v8871_v17 = vcombine.low %v763_v3, %v767_v6  ;;  %v8873_v18 = vcombine.low %v764_v38, %v768_v8  ;;  %v811_v3 = vld [vmem:[#allocation4 + $0x250] sm:$0xff]  ;;  %v812_v38 = vld [vmem:[#allocation4 + $0x258] sm:$0xff] }
 0x40d   :  { %2645 = vmatprep.subr.bf16.mxu0 %v9084_v19  ;;  %2727 = vmatprep.subr.bf16.mxu1 %v9086_v21  ;;  %v8880_v19 = vcombine.high %v771_v13, %v775_v14  ;;  %v815_v6 = vld [vmem:[#allocation4 + $0x270] sm:$0xff]  ;;  %v816_v8 = vld [vmem:[#allocation4 + $0x278] sm:$0xff] }
 0x410   :  { %2646 = vmatpush1.bf16.msra.mxu0 %v9083_v29  ;;  %2728 = vmatpush1.bf16.msra.mxu1 %v9085_v32  ;;  %v8879_v29 = vcombine.low %v771_v13, %v775_v14  ;;  %v819_v13 = vld [vmem:[#allocation4 + $0x290] sm:$0xff] }
 0x411   :  { %2647 = vmatprep.subr.bf16.mxu0 %v9092_v35  ;;  %2729 = vmatprep.subr.bf16.mxu1 %v9094_v36  ;;  %v8888_v35 = vcombine.high %v779_v22, %v783_v24  ;;  %v8890_v36 = vcombine.high %v780_v25, %v784_v26  ;;  %v823_v14 = vld [vmem:[#allocation4 + $0x2b0] sm:$0xff] }
 0x414   :  { %2648 = vmatpush1.bf16.msra.mxu0 %v9091_v43  ;;  %2730 = vmatpush1.bf16.msra.mxu1 %v9093_v47  ;;  %v8887_v43 = vcombine.low %v779_v22, %v783_v24  ;;  %v8889_v47 = vcombine.low %v780_v25, %v784_v26  ;;  %v827_v22 = vld [vmem:[#allocation4 + $0x2d0] sm:$0xff]  ;;  %v828_v25 = vld [vmem:[#allocation4 + $0x2d8] sm:$0xff] }
 0x415   :  { %2740 = vmatprep.subr.bf16.mxu0 %v8848_v48  ;;  %2822 = vmatprep.subr.bf16.mxu1 %v8850_v49  ;;  %v8896_v48 = vcombine.high %v787_v44, %v791_v45  ;;  %v8898_v49 = vcombine.high %v788_v46, %v792_v40  ;;  %v831_v24 = vld [vmem:[#allocation4 + $0x2f0] sm:$0xff]  ;;  %v832_v26 = vld [vmem:[#allocation4 + $0x2f8] sm:$0xff] }
 0x417   :  { %2650 = vmatmul.mubr.bf16.vlgmr.msra.gmra.mrb[4].mxu0 %v11365_v55  ;;  %2732 = vmatmul.mubr.bf16.vlgmr.msra.gmra.mrb[4].mxu1 %v11365_v55 }
 0x418   :  { %2741 = vmatpush1.bf16.msra.mxu0 %v8847_v54  ;;  %2772 = vmatprep.mubr.bf16.mxu0 %v11347_v41  ;;  %v8895_v54 = vcombine.low %v787_v44, %v791_v45  ;;  %v835_v44 = vld [vmem:[#allocation4 + $0x310] sm:$0xff] }
 0x419   :  { %2823 = vmatpush1.bf16.msra.mxu1 %v8849_v56  ;;  %2854 = vmatprep.mubr.bf16.mxu1 %v11347_v41  ;;  %v772_v41 = vld [vmem:[#allocation4 + $0x118] sm:$0xff]  ;;  %v8897_v56 = vcombine.low %v788_v46, %v792_v40  ;;  %v839_v45 = vld [vmem:[#allocation4 + $0x330] sm:$0xff] }
 0x41a   :  { %2742 = vmatprep.subr.bf16.mxu0 %v8856_v57  ;;  %2824 = vmatprep.subr.bf16.mxu1 %v8858_v58  ;;  %v8882_v21 = vcombine.high %v772_v41, %v776_v15  ;;  %v8881_v32 = vcombine.low %v772_v41, %v776_v15  ;;  %v8904_v57 = vcombine.high %v795_v50, %v799_v51  ;;  %v820_v41 = vld [vmem:[#allocation4 + $0x298] sm:$0xff] }
 0x41b   :  { %v8906_v58 = vcombine.high %v796_v52, %v800_v53  ;;  %v824_v15 = vld [vmem:[#allocation4 + $0x2b8] sm:$0xff] }
 0x41c   :  { %2743 = vmatpush1.bf16.msra.mxu0 %v8855_v63  ;;  %v8903_v63 = vcombine.low %v795_v50, %v799_v51  ;;  %v836_v46 = vld [vmem:[#allocation4 + $0x318] sm:$0xff]  ;;  %v843_v50 = vld [vmem:[#allocation4 + $0x350] sm:$0xff] }
 0x41d   :  { %2825 = vmatpush1.bf16.msra.mxu1 %v8857_v0  ;;  %2744 = vmatprep.subr.bf16.mxu0 %v8864_v1  ;;  %v8905_v0 = vcombine.low %v796_v52, %v800_v53  ;;  %v8912_v1 = vcombine.high %v803_v59, %v807_v60  ;;  %v840_v40 = vld [vmem:[#allocation4 + $0x338] sm:$0xff]  ;;  %v847_v51 = vld [vmem:[#allocation4 + $0x370] sm:$0xff] }
 0x41e   :  { %2826 = vmatprep.subr.bf16.mxu1 %v8866_v2  ;;  %v8914_v2 = vcombine.high %v804_v61, %v808_v62  ;;  %v844_v52 = vld [vmem:[#allocation4 + $0x358] sm:$0xff] }
 0x41f   :  { %v848_v53 = vld [vmem:[#allocation4 + $0x378] sm:$0xff] }
 0x420   :  { %2745 = vmatpush1.bf16.msra.mxu0 %v8863_v42  ;;  %v8911_v42 = vcombine.low %v803_v59, %v807_v60  ;;  %v851_v59 = vld [vmem:[#allocation4 + $0x390] sm:$0xff] }
 0x421   :  { %2827 = vmatpush1.bf16.msra.mxu1 %v8865_v10  ;;  %2746 = vmatprep.subr.bf16.mxu0 %v8872_v11  ;;  %v8913_v10 = vcombine.low %v804_v61, %v808_v62  ;;  %v8920_v11 = vcombine.high %v811_v3, %v815_v6  ;;  %v855_v60 = vld [vmem:[#allocation4 + $0x3b0] sm:$0xff]  ;;  %v852_v61 = vld [vmem:[#allocation4 + $0x398] sm:$0xff] }
 0x422   :  { %2828 = vmatprep.subr.bf16.mxu1 %v8874_v12  ;;  %v8922_v12 = vcombine.high %v812_v38, %v816_v8  ;;  %v856_v62 = vld [vmem:[#allocation4 + $0x3b8] sm:$0xff] }
 0x424   :  { %2747 = vmatpush1.bf16.msra.mxu0 %v8871_v17  ;;  %v8919_v17 = vcombine.low %v811_v3, %v815_v6  ;;  %v859_v3 = vld [vmem:[#allocation4 + $0x3d0] sm:$0xff] }
 0x425   :  { %2829 = vmatpush1.bf16.msra.mxu1 %v8873_v18  ;;  %2748 = vmatprep.subr.bf16.mxu0 %v8880_v19  ;;  %v8921_v18 = vcombine.low %v812_v38, %v816_v8  ;;  %v8928_v19 = vcombine.high %v819_v13, %v823_v14  ;;  %v863_v6 = vld [vmem:[#allocation4 + $0x3f0] sm:$0xff]  ;;  %v860_v38 = vld [vmem:[#allocation4 + $0x3d8] sm:$0xff] }
 0x426   :  { %2830 = vmatprep.subr.bf16.mxu1 %v8882_v21  ;;  %v8930_v21 = vcombine.high %v820_v41, %v824_v15  ;;  %v864_v8 = vld [vmem:[#allocation4 + $0x3f8] sm:$0xff] }
 0x428   :  { %2749 = vmatpush1.bf16.msra.mxu0 %v8879_v29  ;;  %v8927_v29 = vcombine.low %v819_v13, %v823_v14  ;;  %v867_v13 = vld [vmem:[#allocation4 + $0x410] sm:$0xff] }
 0x429   :  { %2831 = vmatpush1.bf16.msra.mxu1 %v8881_v32  ;;  %2750 = vmatprep.subr.bf16.mxu0 %v8888_v35  ;;  %v8929_v32 = vcombine.low %v820_v41, %v824_v15  ;;  %v8936_v35 = vcombine.high %v827_v22, %v831_v24  ;;  %v871_v14 = vld [vmem:[#allocation4 + $0x430] sm:$0xff]  ;;  %v868_v41 = vld [vmem:[#allocation4 + $0x418] sm:$0xff] }
 0x42a   :  { %2832 = vmatprep.subr.bf16.mxu1 %v8890_v36  ;;  %v8938_v36 = vcombine.high %v828_v25, %v832_v26  ;;  %v872_v15 = vld [vmem:[#allocation4 + $0x438] sm:$0xff] }
 0x42c   :  { %2751 = vmatpush1.bf16.msra.mxu0 %v8887_v43  ;;  %v8935_v43 = vcombine.low %v827_v22, %v831_v24  ;;  %v875_v22 = vld [vmem:[#allocation4 + $0x450] sm:$0xff] }
 0x42d   :  { %2833 = vmatpush1.bf16.msra.mxu1 %v8889_v47  ;;  %2752 = vmatprep.subr.bf16.mxu0 %v8896_v48  ;;  %v8937_v47 = vcombine.low %v828_v25, %v832_v26  ;;  %v8944_v48 = vcombine.high %v835_v44, %v839_v45  ;;  %v879_v24 = vld [vmem:[#allocation4 + $0x470] sm:$0xff]  ;;  %v8975_v25 = vcombine.low %v867_v13, %v871_v14  ;;  %v876_v26 = vld [vmem:[#allocation4 + $0x458] sm:$0xff] }
 0x42e   :  { %2834 = vmatprep.subr.bf16.mxu1 %v8898_v49  ;;  %v8946_v49 = vcombine.high %v836_v46, %v840_v40 }
 0x430   :  { %2753 = vmatpush1.bf16.msra.mxu0 %v8895_v54  ;;  %v8943_v54 = vcombine.low %v835_v44, %v839_v45  ;;  %v887_v44 = vld [vmem:[#allocation4 + $0x4b0] sm:$0xff] }
 0x431   :  { %2835 = vmatpush1.bf16.msra.mxu1 %v8897_v56  ;;  %2754 = vmatprep.subr.bf16.mxu0 %v8904_v57  ;;  %v8945_v56 = vcombine.low %v836_v46, %v840_v40  ;;  %v8952_v57 = vcombine.high %v843_v50, %v847_v51  ;;  %v884_v46 = vld [vmem:[#allocation4 + $0x498] sm:$0xff] }
 0x432   :  { %2836 = vmatprep.subr.bf16.mxu1 %v8906_v58  ;;  %v8954_v58 = vcombine.high %v844_v52, %v848_v53  ;;  %v888_v40 = vld [vmem:[#allocation4 + $0x4b8] sm:$0xff] }
 0x434   :  { %2755 = vmatpush1.bf16.msra.mxu0 %v8903_v63  ;;  %v8951_v63 = vcombine.low %v843_v50, %v847_v51  ;;  %v891_v50 = vld [vmem:[#allocation4 + $0x4d0] sm:$0xff] }
 0x435   :  { %2837 = vmatpush1.bf16.msra.mxu1 %v8905_v0  ;;  %2756 = vmatprep.subr.bf16.mxu0 %v8912_v1  ;;  %v8953_v0 = vcombine.low %v844_v52, %v848_v53  ;;  %v8960_v1 = vcombine.high %v851_v59, %v855_v60  ;;  %v895_v51 = vld [vmem:[#allocation4 + $0x4f0] sm:$0xff]  ;;  %v892_v52 = vld [vmem:[#allocation4 + $0x4d8] sm:$0xff] }
 0x436   :  { %2838 = vmatprep.subr.bf16.mxu1 %v8914_v2  ;;  %v8962_v2 = vcombine.high %v852_v61, %v856_v62  ;;  %v896_v53 = vld [vmem:[#allocation4 + $0x4f8] sm:$0xff] }
 0x438   :  { %2757 = vmatpush1.bf16.msra.mxu0 %v8911_v42  ;;  %v8959_v42 = vcombine.low %v851_v59, %v855_v60  ;;  %v903_v59 = vld [vmem:[#allocation4 + $0x530] sm:$0xff]  ;;  %v900_v60 = vld [vmem:[#allocation4 + $0x518] sm:$0xff] }
 0x439   :  { %2839 = vmatpush1.bf16.msra.mxu1 %v8913_v10  ;;  %2758 = vmatprep.subr.bf16.mxu0 %v8920_v11  ;;  %v8961_v10 = vcombine.low %v852_v61, %v856_v62  ;;  %v8968_v11 = vcombine.high %v859_v3, %v863_v6  ;;  %v904_v61 = vld [vmem:[#allocation4 + $0x538] sm:$0xff]  ;;  %v9001_v62 = vcombine.low %v892_v52, %v896_v53 }
 0x43a   :  { %2840 = vmatprep.subr.bf16.mxu1 %v8922_v12  ;;  %v8970_v12 = vcombine.high %v860_v38, %v864_v8 }
 0x43c   :  { %2759 = vmatpush1.bf16.msra.mxu0 %v8919_v17  ;;  %v8967_v17 = vcombine.low %v859_v3, %v863_v6  ;;  %v908_v3 = vld [vmem:[#allocation4 + $0x558] sm:$0xff] }
 0x43d   :  { %2841 = vmatpush1.bf16.msra.mxu1 %v8921_v18  ;;  %2760 = vmatprep.subr.bf16.mxu0 %v8928_v19  ;;  %v8969_v18 = vcombine.low %v860_v38, %v864_v8  ;;  %v8976_v19 = vcombine.high %v867_v13, %v871_v14  ;;  %v912_v6 = vld [vmem:[#allocation4 + $0x578] sm:$0xff]  ;;  %v9009_v8 = vcombine.low %v900_v60, %v904_v61 }
 0x43e   :  { %2842 = vmatprep.subr.bf16.mxu1 %v8930_v21  ;;  %v8978_v21 = vcombine.high %v868_v41, %v872_v15  ;;  %v916_v13 = vld [vmem:[#allocation4 + $0x598] sm:$0xff] }
 0x43f   :  { %v920_v14 = vld [vmem:[#allocation4 + $0x5b8] sm:$0xff] }
 0x440   :  { %2761 = vmatpush1.bf16.msra.mxu0 %v8927_v29  ;;  %v880_v29 = vld [vmem:[#allocation4 + $0x478] sm:$0xff] }
 0x441   :  { %2843 = vmatpush1.bf16.msra.mxu1 %v8929_v32  ;;  %2762 = vmatprep.subr.bf16.mxu0 %v8936_v35  ;;  %v8977_v32 = vcombine.low %v868_v41, %v872_v15  ;;  %v8984_v35 = vcombine.high %v875_v22, %v879_v24  ;;  %v8986_v45 = vcombine.high %v876_v26, %v880_v29 }
 0x442   :  { %2844 = vmatprep.subr.bf16.mxu1 %v8938_v36  ;;  %v883_v36 = vld [vmem:[#allocation4 + $0x490] sm:$0xff]  ;;  %v9017_v15 = vcombine.low %v908_v3, %v912_v6 }
 0x444   :  { %2763 = vmatpush1.bf16.msra.mxu0 %v8935_v43  ;;  %v8983_v43 = vcombine.low %v875_v22, %v879_v24  ;;  %v924_v22 = vld [vmem:[#allocation4 + $0x5d8] sm:$0xff] }
 0x445   :  { %2845 = vmatpush1.bf16.msra.mxu1 %v8937_v47  ;;  %2764 = vmatprep.subr.bf16.mxu0 %v8944_v48  ;;  %v8985_v47 = vcombine.low %v876_v26, %v880_v29  ;;  %v8992_v48 = vcombine.high %v883_v36, %v887_v44  ;;  %v928_v24 = vld [vmem:[#allocation4 + $0x5f8] sm:$0xff]  ;;  %v9025_v26 = vcombine.low %v916_v13, %v920_v14 }
 0x446   :  { %2846 = vmatprep.subr.bf16.mxu1 %v8946_v49  ;;  %v8994_v49 = vcombine.high %v884_v46, %v888_v40 }
 0x448   :  { %2765 = vmatpush1.bf16.msra.mxu0 %v8943_v54  ;;  %v8991_v54 = vcombine.low %v883_v36, %v887_v44  ;;  %v935_v36 = vld [vmem:[#allocation4 + $0x630] sm:$0xff]  ;;  %v932_v44 = vld [vmem:[#allocation4 + $0x618] sm:$0xff] }
 0x449   :  { %2847 = vmatpush1.bf16.msra.mxu1 %v8945_v56  ;;  %2766 = vmatprep.subr.bf16.mxu0 %v8952_v57  ;;  %v9000_v56 = vcombine.high %v891_v50, %v895_v51  ;;  %v9002_v57 = vcombine.high %v892_v52, %v896_v53 }
 0x44a   :  { %2848 = vmatprep.subr.bf16.mxu1 %v8954_v58  ;;  %v899_v58 = vld [vmem:[#allocation4 + $0x510] sm:$0xff] }
 0x44b   :  { %v9007_v38 = vcombine.low %v899_v58, %v903_v59 }
 0x44c   :  { %2767 = vmatpush1.bf16.msra.mxu0 %v8951_v63  ;;  %v9008_v63 = vcombine.high %v899_v58, %v903_v59  ;;  %v948_v58 = vld [vmem:[#allocation4 + $0x698] sm:$0xff] }
 0x44d   :  { %2849 = vmatpush1.bf16.msra.mxu1 %v8953_v0  ;;  %2768 = vmatprep.subr.bf16.mxu0 %v8960_v1  ;;  %v9010_v0 = vcombine.high %v900_v60, %v904_v61  ;;  %v907_v1 = vld [vmem:[#allocation4 + $0x550] sm:$0xff]  ;;  %v952_v59 = vld [vmem:[#allocation4 + $0x6b8] sm:$0xff] }
 0x44e   :  { %2850 = vmatprep.subr.bf16.mxu1 %v8962_v2  ;;  %v911_v2 = vld [vmem:[#allocation4 + $0x570] sm:$0xff] }
 0x44f   :  { %v9015_v41 = vcombine.low %v907_v1, %v911_v2 }
 0x450   :  { %2769 = vmatpush1.bf16.msra.mxu0 %v8959_v42  ;;  %v9016_v42 = vcombine.high %v907_v1, %v911_v2  ;;  %v956_v1 = vld [vmem:[#allocation4 + $0x6d8] sm:$0xff] }
 0x451   :  { %2851 = vmatpush1.bf16.msra.mxu1 %v8961_v10  ;;  %2770 = vmatprep.subr.bf16.mxu0 %v8968_v11  ;;  %v9018_v10 = vcombine.high %v908_v3, %v912_v6  ;;  %v915_v11 = vld [vmem:[#allocation4 + $0x590] sm:$0xff]  ;;  %v960_v2 = vld [vmem:[#allocation4 + $0x6f8] sm:$0xff]  ;;  %v9057_v6 = vcombine.low %v948_v58, %v952_v59 }
 0x452   :  { %2852 = vmatprep.subr.bf16.mxu1 %v8970_v12  ;;  %v919_v12 = vld [vmem:[#allocation4 + $0x5b0] sm:$0xff] }
 0x454   :  { %2771 = vmatpush1.bf16.msra.mxu0 %v8967_v17  ;;  %v9024_v17 = vcombine.high %v915_v11, %v919_v12 }
 0x455   :  { %2853 = vmatpush1.bf16.msra.mxu1 %v8969_v18  ;;  %2781 = vmatprep.subr.bf16.mxu0 %v8976_v19  ;;  %v9026_v18 = vcombine.high %v916_v13, %v920_v14  ;;  %v923_v19 = vld [vmem:[#allocation4 + $0x5d0] sm:$0xff]  ;;  %v9065_v14 = vcombine.low %v956_v1, %v960_v2 }
 0x456   :  { %2863 = vmatprep.subr.bf16.mxu1 %v8978_v21  ;;  %v927_v21 = vld [vmem:[#allocation4 + $0x5f0] sm:$0xff] }
 0x457   :  { %2773 = vmatmul.mubr.bf16.vlgmr.msra.gmra.mrb[8].mxu0 %v11351_v9  ;;  %v9032_v29 = vcombine.high %v923_v19, %v927_v21 }
 0x458   :  { %2855 = vmatmul.mubr.bf16.vlgmr.msra.gmra.mrb[8].mxu1 %v11351_v9  ;;  %2782 = vmatpush1.bf16.msra.mxu0 %v8975_v25  ;;  %v8993_v9 = vcombine.low %v884_v46, %v888_v40  ;;  %v9023_v25 = vcombine.low %v915_v11, %v919_v12  ;;  %v9031_v46 = vcombine.low %v923_v19, %v927_v21  ;;  %v964_v11 = vld [vmem:[#allocation4 + $0x718] sm:$0xff] }
 0x459   :  { %2813 = vmatprep.mubr.bf16.mxu0 %v11359_v16  ;;  %2864 = vmatpush1.bf16.msra.mxu1 %v8977_v32  ;;  %v9034_v32 = vcombine.high %v924_v22, %v928_v24  ;;  %v9033_v40 = vcombine.low %v924_v22, %v928_v24  ;;  %v968_v12 = vld [vmem:[#allocation4 + $0x738] sm:$0xff] }
 0x45a   :  { %2895 = vmatprep.mubr.bf16.mxu1 %v11359_v16  ;;  %2783 = vmatprep.subr.bf16.mxu0 %v8984_v35  ;;  %v8999_v16 = vcombine.low %v891_v50, %v895_v51  ;;  %v931_v35 = vld [vmem:[#allocation4 + $0x610] sm:$0xff]  ;;  %v940_v50 = vld [vmem:[#allocation4 + $0x658] sm:$0xff]  ;;  %v9073_v24 = vcombine.low %v964_v11, %v968_v12 }
 0x45b   :  { %2865 = vmatprep.subr.bf16.mxu1 %v8986_v45  ;;  %v936_v45 = vld [vmem:[#allocation4 + $0x638] sm:$0xff]  ;;  %v9039_v52 = vcombine.low %v931_v35, %v935_v36 }
 0x45c   :  { %2784 = vmatpush1.bf16.msra.mxu0 %v8983_v43  ;;  %v9040_v43 = vcombine.high %v931_v35, %v935_v36  ;;  %v944_v51 = vld [vmem:[#allocation4 + $0x678] sm:$0xff]  ;;  %v9041_v53 = vcombine.low %v932_v44, %v936_v45 }
 0x45d   :  { %2866 = vmatpush1.bf16.msra.mxu1 %v8985_v47  ;;  %2785 = vmatprep.subr.bf16.mxu0 %v8992_v48  ;;  %v9042_v47 = vcombine.high %v932_v44, %v936_v45  ;;  %v939_v48 = vld [vmem:[#allocation4 + $0x650] sm:$0xff]  ;;  %v9049_v61 = vcombine.low %v940_v50, %v944_v51  ;;  %v972_v19 = vld [vmem:[#allocation4 + $0x758] sm:$0xff] }
 0x45e   :  { %2867 = vmatprep.subr.bf16.mxu1 %v8994_v49  ;;  %v943_v49 = vld [vmem:[#allocation4 + $0x670] sm:$0xff]  ;;  %v976_v21 = vld [vmem:[#allocation4 + $0x778] sm:$0xff] }
 0x45f   :  { %v9047_v60 = vcombine.low %v939_v48, %v943_v49  ;;  %v980_v35 = vld [vmem:[#allocation4 + $0x798] sm:$0xff]  ;;  %v9081_v45 = vcombine.low %v972_v19, %v976_v21 }
 0x460   :  { %2786 = vmatpush1.bf16.msra.mxu0 %v8991_v54  ;;  %v9048_v54 = vcombine.high %v939_v48, %v943_v49  ;;  %v984_v36 = vld [vmem:[#allocation4 + $0x7b8] sm:$0xff] }
 0x461   :  { %2868 = vmatpush1.bf16.msra.mxu1 %v8993_v9  ;;  %2787 = vmatprep.subr.bf16.mxu0 %v9000_v56  ;;  %v9050_v9 = vcombine.high %v940_v50, %v944_v51  ;;  %v947_v56 = vld [vmem:[#allocation4 + $0x690] sm:$0xff]  ;;  %v988_v48 = vld [vmem:[#allocation4 + $0x7d8] sm:$0xff]  ;;  %v9089_v51 = vcombine.low %v980_v35, %v984_v36 }
 0x462   :  { %2869 = vmatprep.subr.bf16.mxu1 %v9002_v57  ;;  %v951_v57 = vld [vmem:[#allocation4 + $0x6b0] sm:$0xff]  ;;  %v992_v49 = vld [vmem:[#allocation4 + $0x7f8] sm:$0xff] }
 0x463   :  { %v9055_v3 = vcombine.low %v947_v56, %v951_v57 }
 0x464   :  { %2788 = vmatpush1.bf16.msra.mxu0 %v8999_v16  ;;  %v9056_v16 = vcombine.high %v947_v56, %v951_v57  ;;  %v10104_v56 = vld [vmem:[#allocation6 + $0x4] ss:$16 sps:$4 sm:$0xff]  }
 0x465   :  { %2870 = vmatpush1.bf16.msra.mxu1 %v9001_v62  ;;  %2789 = vmatprep.subr.bf16.mxu0 %v9008_v63  ;;  %v9058_v62 = vcombine.high %v948_v58, %v952_v59  ;;  %v955_v63 = vld [vmem:[#allocation4 + $0x6d0] sm:$0xff] }
 0x466   :  { %2871 = vmatprep.subr.bf16.mxu1 %v9010_v0  ;;  %v959_v0 = vld [vmem:[#allocation4 + $0x6f0] sm:$0xff] }
 0x467   :  { %v9063_v13 = vcombine.low %v955_v63, %v959_v0  ;;  %v10107_v57 = vld [vmem:[#allocation6 + $0x204] ss:$16 sps:$4 sm:$0xff]   ;;  %v10102_v58 = vld [vmem:[#allocation6] ss:$16 sps:$4 sm:$0xff]  }
 0x468   :  { %2790 = vmatpush1.bf16.msra.mxu0 %v9007_v38  ;;  %v9064_v38 = vcombine.high %v955_v63, %v959_v0  ;;  %v10105_v59 = vld [vmem:[#allocation6 + $0x200] ss:$16 sps:$4 sm:$0xff]   ;;  %v10116_v63 = vld [vmem:[#allocation6 + $0x44] ss:$16 sps:$4 sm:$0xff]  }
 0x469   :  { %2872 = vmatpush1.bf16.msra.mxu1 %v9009_v8  ;;  %2791 = vmatprep.subr.bf16.mxu0 %v9016_v42  ;;  %v9066_v8 = vcombine.high %v956_v1, %v960_v2  ;;  %v963_v42 = vld [vmem:[#allocation4 + $0x710] sm:$0xff] }
 0x46a   :  { %2873 = vmatprep.subr.bf16.mxu1 %v9018_v10  ;;  %v967_v10 = vld [vmem:[#allocation4 + $0x730] sm:$0xff] }
 0x46b   :  { %v9071_v22 = vcombine.low %v963_v42, %v967_v10  ;;  %v10119_v0 = vld [vmem:[#allocation6 + $0x244] ss:$16 sps:$4 sm:$0xff]   ;;  %v10114_v1 = vld [vmem:[#allocation6 + $0x40] ss:$16 sps:$4 sm:$0xff]  }
 0x46c   :  { %2792 = vmatpush1.bf16.msra.mxu0 %v9015_v41  ;;  %v9072_v41 = vcombine.high %v963_v42, %v967_v10  ;;  %v10117_v2 = vld [vmem:[#allocation6 + $0x240] ss:$16 sps:$4 sm:$0xff]   ;;  %v10131_v42 = vld [vmem:[#allocation6 + $0x284] ss:$16 sps:$4 sm:$0xff]  }
 0x46d   :  { %2874 = vmatpush1.bf16.msra.mxu1 %v9017_v15  ;;  %2793 = vmatprep.subr.bf16.mxu0 %v9024_v17  ;;  %v9074_v15 = vcombine.high %v964_v11, %v968_v12  ;;  %v971_v17 = vld [vmem:[#allocation4 + $0x750] sm:$0xff] }
 0x46e   :  { %2875 = vmatprep.subr.bf16.mxu1 %v9026_v18  ;;  %v975_v18 = vld [vmem:[#allocation4 + $0x770] sm:$0xff] }
 0x46f   :  { %v9079_v44 = vcombine.low %v971_v17, %v975_v18  ;;  %v10126_v10 = vld [vmem:[#allocation6 + $0x80] ss:$16 sps:$4 sm:$0xff]   ;;  %v10134_v12 = vld [vmem:[#allocation6 + $0xa4] ss:$16 sps:$4 sm:$0xff]  }
 0x470   :  { %2794 = vmatpush1.bf16.msra.mxu0 %v9023_v25  ;;  %v9080_v25 = vcombine.high %v971_v17, %v975_v18  ;;  %v10129_v11 = vld [vmem:[#allocation6 + $0x280] ss:$16 sps:$4 sm:$0xff]   ;;  %v10143_v17 = vld [vmem:[#allocation6 + $0x2c4] ss:$16 sps:$4 sm:$0xff]  }
 0x471   :  { %2876 = vmatpush1.bf16.msra.mxu1 %v9025_v26  ;;  %2795 = vmatprep.subr.bf16.mxu0 %v9032_v29  ;;  %v9082_v26 = vcombine.high %v972_v19, %v976_v21  ;;  %v979_v29 = vld [vmem:[#allocation4 + $0x790] sm:$0xff] }
 0x472   :  { %2877 = vmatprep.subr.bf16.mxu1 %v9034_v32  ;;  %v983_v32 = vld [vmem:[#allocation4 + $0x7b0] sm:$0xff] }
 0x473   :  { %v9087_v50 = vcombine.low %v979_v29, %v983_v32  ;;  %v10138_v18 = vld [vmem:[#allocation6 + $0xc0] ss:$16 sps:$4 sm:$0xff]   ;;  %v10146_v21 = vld [vmem:[#allocation6 + $0xe4] ss:$16 sps:$4 sm:$0xff]  }
 0x474   :  { %2796 = vmatpush1.bf16.msra.mxu0 %v9031_v46  ;;  %v9088_v46 = vcombine.high %v979_v29, %v983_v32  ;;  %v10141_v19 = vld [vmem:[#allocation6 + $0x2c0] ss:$16 sps:$4 sm:$0xff]   ;;  %v10155_v29 = vld [vmem:[#allocation6 + $0x304] ss:$16 sps:$4 sm:$0xff]  }
 0x475   :  { %2878 = vmatpush1.bf16.msra.mxu1 %v9033_v40  ;;  %2797 = vmatprep.subr.bf16.mxu0 %v9040_v43  ;;  %v9090_v40 = vcombine.high %v980_v35, %v984_v36  ;;  %v987_v43 = vld [vmem:[#allocation4 + $0x7d0] sm:$0xff] }
 0x476   :  { %2879 = vmatprep.subr.bf16.mxu1 %v9042_v47  ;;  %v991_v47 = vld [vmem:[#allocation4 + $0x7f0] sm:$0xff] }
 0x477   :  { %v10150_v32 = vld [vmem:[#allocation6 + $0x100] ss:$16 sps:$4 sm:$0xff]   ;;  %v10158_v36 = vld [vmem:[#allocation6 + $0x124] ss:$16 sps:$4 sm:$0xff]  }
 0x478   :  { %2798 = vmatpush1.bf16.msra.mxu0 %v9039_v52  ;;  %v9096_v52 = vcombine.high %v987_v43, %v991_v47  ;;  %v10153_v35 = vld [vmem:[#allocation6 + $0x300] ss:$16 sps:$4 sm:$0xff]  }
 0x479   :  { %2880 = vmatpush1.bf16.msra.mxu1 %v9041_v53  ;;  %2799 = vmatprep.subr.bf16.mxu0 %v9048_v54  ;;  %v9098_v53 = vcombine.high %v988_v48, %v992_v49  ;;  %v9095_v54 = vcombine.low %v987_v43, %v991_v47  ;;  %v10167_v43 = vld [vmem:[#allocation6 + $0x344] ss:$16 sps:$4 sm:$0xff]   ;;  %v10162_v47 = vld [vmem:[#allocation6 + $0x140] ss:$16 sps:$4 sm:$0xff]  }
 0x47a   :  { %2881 = vmatprep.subr.bf16.mxu1 %v9050_v9  ;;  %v9097_v9 = vcombine.low %v988_v48, %v992_v49  ;;  %v10165_v48 = vld [vmem:[#allocation6 + $0x340] ss:$16 sps:$4 sm:$0xff]   ;;  %v10170_v49 = vld [vmem:[#allocation6 + $0x164] ss:$16 sps:$4 sm:$0xff]  }
 0x47c   :  { %2800 = vmatpush1.bf16.msra.mxu0 %v9047_v60  ;;  %v10110_v60 = vld [vmem:[#allocation6 + $0x24] ss:$16 sps:$4 sm:$0xff]  }
 0x47d   :  { %2882 = vmatpush1.bf16.msra.mxu1 %v9049_v61  ;;  %2801 = vmatprep.subr.bf16.mxu0 %v9056_v16  ;;  %v10113_v61 = vld [vmem:[#allocation6 + $0x224] ss:$16 sps:$4 sm:$0xff]   ;;  %v10108_v16 = vld [vmem:[#allocation6 + $0x20] ss:$16 sps:$4 sm:$0xff]  }
 0x47e   :  { %2883 = vmatprep.subr.bf16.mxu1 %v9058_v62  ;;  %v10111_v62 = vld [vmem:[#allocation6 + $0x220] ss:$16 sps:$4 sm:$0xff]  }
 0x480   :  { %2802 = vmatpush1.bf16.msra.mxu0 %v9055_v3  ;;  %v10122_v3 = vld [vmem:[#allocation6 + $0x64] ss:$16 sps:$4 sm:$0xff]  }
 0x481   :  { %2884 = vmatpush1.bf16.msra.mxu1 %v9057_v6  ;;  %2803 = vmatprep.subr.bf16.mxu0 %v9064_v38  ;;  %v10125_v6 = vld [vmem:[#allocation6 + $0x264] ss:$16 sps:$4 sm:$0xff]   ;;  %v10120_v38 = vld [vmem:[#allocation6 + $0x60] ss:$16 sps:$4 sm:$0xff]  }
 0x482   :  { %2885 = vmatprep.subr.bf16.mxu1 %v9066_v8  ;;  %v10128_v8 = vld [vmem:[#allocation6 + $0x84] ss:$16 sps:$4 sm:$0xff]  }
 0x484   :  { %2804 = vmatpush1.bf16.msra.mxu0 %v9063_v13  ;;  %v10137_v13 = vld [vmem:[#allocation6 + $0x2a4] ss:$16 sps:$4 sm:$0xff]  }
 0x485   :  { %2886 = vmatpush1.bf16.msra.mxu1 %v9065_v14  ;;  %2805 = vmatprep.subr.bf16.mxu0 %v9072_v41  ;;  %v10132_v14 = vld [vmem:[#allocation6 + $0xa0] ss:$16 sps:$4 sm:$0xff]  }
 0x486   :  { %2887 = vmatprep.subr.bf16.mxu1 %v9074_v15  ;;  %v10135_v41 = vld [vmem:[#allocation6 + $0x2a0] ss:$16 sps:$4 sm:$0xff]   ;;  %v10140_v15 = vld [vmem:[#allocation6 + $0xc4] ss:$16 sps:$4 sm:$0xff]  }
 0x488   :  { %2806 = vmatpush1.bf16.msra.mxu0 %v9071_v22  ;;  %v10149_v22 = vld [vmem:[#allocation6 + $0x2e4] ss:$16 sps:$4 sm:$0xff]  }
 0x489   :  { %2888 = vmatpush1.bf16.msra.mxu1 %v9073_v24  ;;  %2807 = vmatprep.subr.bf16.mxu0 %v9080_v25  ;;  %v10144_v24 = vld [vmem:[#allocation6 + $0xe0] ss:$16 sps:$4 sm:$0xff]  }
 0x48a   :  { %2889 = vmatprep.subr.bf16.mxu1 %v9082_v26  ;;  %v10147_v25 = vld [vmem:[#allocation6 + $0x2e0] ss:$16 sps:$4 sm:$0xff]   ;;  %v10152_v26 = vld [vmem:[#allocation6 + $0x104] ss:$16 sps:$4 sm:$0xff]  }
 0x48c   :  { %2808 = vmatpush1.bf16.msra.mxu0 %v9079_v44  ;;  %v10161_v44 = vld [vmem:[#allocation6 + $0x324] ss:$16 sps:$4 sm:$0xff]  }
 0x48d   :  { %2890 = vmatpush1.bf16.msra.mxu1 %v9081_v45  ;;  %2809 = vmatprep.subr.bf16.mxu0 %v9088_v46  ;;  %v10156_v45 = vld [vmem:[#allocation6 + $0x120] ss:$16 sps:$4 sm:$0xff]  }
 0x48e   :  { %2891 = vmatprep.subr.bf16.mxu1 %v9090_v40  ;;  %v10159_v46 = vld [vmem:[#allocation6 + $0x320] ss:$16 sps:$4 sm:$0xff]   ;;  %v10164_v40 = vld [vmem:[#allocation6 + $0x144] ss:$16 sps:$4 sm:$0xff]  }
 0x490   :  { %2810 = vmatpush1.bf16.msra.mxu0 %v9087_v50  ;;  %v10173_v50 = vld [vmem:[#allocation6 + $0x364] ss:$16 sps:$4 sm:$0xff]  }
 0x491   :  { %2892 = vmatpush1.bf16.msra.mxu1 %v9089_v51  ;;  %2811 = vmatprep.subr.bf16.mxu0 %v9096_v52  ;;  %v10168_v51 = vld [vmem:[#allocation6 + $0x160] ss:$16 sps:$4 sm:$0xff]  }
 0x492   :  { %2893 = vmatprep.subr.bf16.mxu1 %v9098_v53  ;;  %v10171_v52 = vld [vmem:[#allocation6 + $0x360] ss:$16 sps:$4 sm:$0xff]   ;;  %v10176_v53 = vld [vmem:[#allocation6 + $0x184] ss:$16 sps:$4 sm:$0xff]  }
 0x494   :  { %2812 = vmatpush1.bf16.msra.mxu0 %v9095_v54  ;;  %v10179_v54 = vld [vmem:[#allocation6 + $0x384] ss:$16 sps:$4 sm:$0xff]  }
 0x495   :  { %2894 = vmatpush1.bf16.msra.mxu1 %v9097_v9  ;;  %4237 = vmatprep.subr.bf16.mxu0 %v10104_v56  ;;  %v10174_v9 = vld [vmem:[#allocation6 + $0x180] ss:$16 sps:$4 sm:$0xff]  }
 0x496   :  { %4278 = vmatprep.subr.bf16.mxu1 %v10107_v57  ;;  %v10177_v56 = vld [vmem:[#allocation6 + $0x380] ss:$16 sps:$4 sm:$0xff]   ;;  %v10182_v57 = vld [vmem:[#allocation6 + $0x1a4] ss:$16 sps:$4 sm:$0xff]  }
 0x497   :  { %2814 = vmatmul.mubr.bf16.vlgmr.msra.gmra.mrb[8].mxu0 %v11365_v55 }
 0x498   :  { %2896 = vmatmul.mubr.bf16.vlgmr.msra.gmra.mrb[8].mxu1 %v11365_v55  ;;  %4238 = vmatpush1.bf16.msra.mxu0 %v10102_v58  ;;  %v10123_v55 = vld [vmem:[#allocation6 + $0x260] ss:$16 sps:$4 sm:$0xff]   ;;  %v10185_v58 = vld [vmem:[#allocation6 + $0x3a4] ss:$16 sps:$4 sm:$0xff]  }
 0x499   :  { %4279 = vmatpush1.bf16.msra.mxu1 %v10105_v59  ;;  %4239 = vmatprep.subr.bf16.mxu0 %v10110_v60  ;;  %v10180_v59 = vld [vmem:[#allocation6 + $0x1a0] ss:$16 sps:$4 sm:$0xff]  }
 0x49a   :  { %4280 = vmatprep.subr.bf16.mxu1 %v10113_v61  ;;  %v10183_v60 = vld [vmem:[#allocation6 + $0x3a0] ss:$16 sps:$4 sm:$0xff]   ;;  %v10188_v61 = vld [vmem:[#allocation6 + $0x1c4] ss:$16 sps:$4 sm:$0xff]  }
 0x49c   :  { %4240 = vmatpush1.bf16.msra.mxu0 %v10108_v16  ;;  %v10191_v16 = vld [vmem:[#allocation6 + $0x3c4] ss:$16 sps:$4 sm:$0xff]  }
 0x49d   :  { %4281 = vmatpush1.bf16.msra.mxu1 %v10111_v62  ;;  %4241 = vmatprep.subr.bf16.mxu0 %v10116_v63  ;;  %v10186_v62 = vld [vmem:[#allocation6 + $0x1c0] ss:$16 sps:$4 sm:$0xff]  }
 0x49e   :  { %4282 = vmatprep.subr.bf16.mxu1 %v10119_v0  ;;  %v10189_v63 = vld [vmem:[#allocation6 + $0x3c0] ss:$16 sps:$4 sm:$0xff]   ;;  %v10194_v0 = vld [vmem:[#allocation6 + $0x1e4] ss:$16 sps:$4 sm:$0xff]  }
 0x4a0   :  { %4242 = vmatpush1.bf16.msra.mxu0 %v10114_v1  ;;  %v10197_v1 = vld [vmem:[#allocation6 + $0x3e4] ss:$16 sps:$4 sm:$0xff]  }
 0x4a1   :  { %4283 = vmatpush1.bf16.msra.mxu1 %v10117_v2  ;;  %4243 = vmatprep.subr.bf16.mxu0 %v10122_v3  ;;  %v10192_v2 = vld [vmem:[#allocation6 + $0x1e0] ss:$16 sps:$4 sm:$0xff]  }
 0x4a2   :  { %4284 = vmatprep.subr.bf16.mxu1 %v10125_v6  ;;  %v10195_v3 = vld [vmem:[#allocation6 + $0x3e0] ss:$16 sps:$4 sm:$0xff]   ;;  %v10200_v6 = vld [vmem:[#allocation6 + $0x404] ss:$16 sps:$4 sm:$0xff]  }
 0x4a4   :  { %4244 = vmatpush1.bf16.msra.mxu0 %v10120_v38  ;;  %v10203_v38 = vld [vmem:[#allocation6 + $0x604] ss:$16 sps:$4 sm:$0xff]  }
 0x4a5   :  { %4285 = vmatpush1.bf16.msra.mxu1 %v10123_v55  ;;  %4245 = vmatprep.subr.bf16.mxu0 %v10128_v8  ;;  %v11380_v55 = vld [vmem:[%s11622_s6] sm:$0xff] }
 0x4a6   :  { %4286 = vmatprep.subr.bf16.mxu1 %v10131_v42  ;;  %v1259_v8 = vrot.slane %v11380_v55, %v11269_v28  ;;  %v1267_v42 = vrot.slane %v11380_v55, %v11278_v31 }
 0x4a8   :  { %4246 = vmatpush1.bf16.msra.mxu0 %v10126_v10  ;;  %v1263_v10 = vrot.slane %v11380_v55, %v11275_v30 }
 0x4a9   :  { %4287 = vmatpush1.bf16.msra.mxu1 %v10129_v11  ;;  %4247 = vmatprep.subr.bf16.mxu0 %v10134_v12  ;;  %v1271_v11 = vrot.slane %v11380_v55, %v11283_v33 }
 0x4aa   :  { %4288 = vmatprep.subr.bf16.mxu1 %v10137_v13 }
 0x4ac   :  { %4248 = vmatpush1.bf16.msra.mxu0 %v10132_v14 }
 0x4ad   :  { %4289 = vmatpush1.bf16.msra.mxu1 %v10135_v41  ;;  %4249 = vmatprep.subr.bf16.mxu0 %v10140_v15 }
 0x4ae   :  { %4290 = vmatprep.subr.bf16.mxu1 %v10143_v17 }
 0x4b0   :  { %4250 = vmatpush1.bf16.msra.mxu0 %v10138_v18 }
 0x4b1   :  { %4291 = vmatpush1.bf16.msra.mxu1 %v10141_v19  ;;  %4251 = vmatprep.subr.bf16.mxu0 %v10146_v21 }
 0x4b2   :  { %4292 = vmatprep.subr.bf16.mxu1 %v10149_v22 }
 0x4b4   :  { %4252 = vmatpush1.bf16.msra.mxu0 %v10144_v24 }
 0x4b5   :  { %4293 = vmatpush1.bf16.msra.mxu1 %v10147_v25  ;;  %4253 = vmatprep.subr.bf16.mxu0 %v10152_v26 }
 0x4b6   :  { %4294 = vmatprep.subr.bf16.mxu1 %v10155_v29 }
 0x4b8   :  { %4254 = vmatpush1.bf16.msra.mxu0 %v10150_v32 }
 0x4b9   :  { %4295 = vmatpush1.bf16.msra.mxu1 %v10153_v35  ;;  %4255 = vmatprep.subr.bf16.mxu0 %v10158_v36 }
 0x4ba   :  { %4296 = vmatprep.subr.bf16.mxu1 %v10161_v44 }
 0x4bc   :  { %4256 = vmatpush1.bf16.msra.mxu0 %v10156_v45 }
 0x4bd   :  { %4297 = vmatpush1.bf16.msra.mxu1 %v10159_v46  ;;  %4257 = vmatprep.subr.bf16.mxu0 %v10164_v40 }
 0x4be   :  { %4298 = vmatprep.subr.bf16.mxu1 %v10167_v43 }
 0x4c0   :  { %4258 = vmatpush1.bf16.msra.mxu0 %v10162_v47  ;;  %v10198_v47 = vld [vmem:[#allocation6 + $0x400] ss:$16 sps:$4 sm:$0xff]  }
 0x4c1   :  { %4299 = vmatpush1.bf16.msra.mxu1 %v10165_v48  ;;  %4259 = vmatprep.subr.bf16.mxu0 %v10170_v49  ;;  %v10201_v48 = vld [vmem:[#allocation6 + $0x600] ss:$16 sps:$4 sm:$0xff]  }
 0x4c2   :  { %4300 = vmatprep.subr.bf16.mxu1 %v10173_v50 }
 0x4c4   :  { %4260 = vmatpush1.bf16.msra.mxu0 %v10168_v51  ;;  %v10206_v51 = vld [vmem:[#allocation6 + $0x424] ss:$16 sps:$4 sm:$0xff]  }
 0x4c5   :  { %4301 = vmatpush1.bf16.msra.mxu1 %v10171_v52  ;;  %4261 = vmatprep.subr.bf16.mxu0 %v10176_v53  ;;  %v10209_v52 = vld [vmem:[#allocation6 + $0x624] ss:$16 sps:$4 sm:$0xff]   ;;  %v10204_v53 = vld [vmem:[#allocation6 + $0x420] ss:$16 sps:$4 sm:$0xff]  }
 0x4c6   :  { %4302 = vmatprep.subr.bf16.mxu1 %v10179_v54  ;;  %v10207_v54 = vld [vmem:[#allocation6 + $0x620] ss:$16 sps:$4 sm:$0xff]  }
 0x4c8   :  { %4262 = vmatpush1.bf16.msra.mxu0 %v10174_v9  ;;  %v10212_v9 = vld [vmem:[#allocation6 + $0x444] ss:$16 sps:$4 sm:$0xff]  }
 0x4c9   :  { %4303 = vmatpush1.bf16.msra.mxu1 %v10177_v56  ;;  %4263 = vmatprep.subr.bf16.mxu0 %v10182_v57  ;;  %v10215_v56 = vld [vmem:[#allocation6 + $0x644] ss:$16 sps:$4 sm:$0xff]   ;;  %v10210_v57 = vld [vmem:[#allocation6 + $0x440] ss:$16 sps:$4 sm:$0xff]  }
 0x4ca   :  { %4304 = vmatprep.subr.bf16.mxu1 %v10185_v58  ;;  %v10213_v58 = vld [vmem:[#allocation6 + $0x640] ss:$16 sps:$4 sm:$0xff]  }
 0x4cc   :  { %4264 = vmatpush1.bf16.msra.mxu0 %v10180_v59  ;;  %v10218_v59 = vld [vmem:[#allocation6 + $0x464] ss:$16 sps:$4 sm:$0xff]  }
 0x4cd   :  { %4305 = vmatpush1.bf16.msra.mxu1 %v10183_v60  ;;  %4265 = vmatprep.subr.bf16.mxu0 %v10188_v61  ;;  %v10221_v60 = vld [vmem:[#allocation6 + $0x664] ss:$16 sps:$4 sm:$0xff]   ;;  %v10216_v61 = vld [vmem:[#allocation6 + $0x460] ss:$16 sps:$4 sm:$0xff]  }
 0x4ce   :  { %4306 = vmatprep.subr.bf16.mxu1 %v10191_v16  ;;  %v10219_v16 = vld [vmem:[#allocation6 + $0x660] ss:$16 sps:$4 sm:$0xff]  }
 0x4d0   :  { %4266 = vmatpush1.bf16.msra.mxu0 %v10186_v62  ;;  %v10224_v62 = vld [vmem:[#allocation6 + $0x484] ss:$16 sps:$4 sm:$0xff]  }
 0x4d1   :  { %4307 = vmatpush1.bf16.msra.mxu1 %v10189_v63  ;;  %4267 = vmatprep.subr.bf16.mxu0 %v10194_v0  ;;  %v10227_v63 = vld [vmem:[#allocation6 + $0x684] ss:$16 sps:$4 sm:$0xff]   ;;  %v10222_v0 = vld [vmem:[#allocation6 + $0x480] ss:$16 sps:$4 sm:$0xff]  }
 0x4d2   :  { %4308 = vmatprep.subr.bf16.mxu1 %v10197_v1  ;;  %v10225_v1 = vld [vmem:[#allocation6 + $0x680] ss:$16 sps:$4 sm:$0xff]  }
 0x4d4   :  { %4268 = vmatpush1.bf16.msra.mxu0 %v10192_v2  ;;  %v10230_v2 = vld [vmem:[#allocation6 + $0x4a4] ss:$16 sps:$4 sm:$0xff]  }
 0x4d5   :  { %4309 = vmatpush1.bf16.msra.mxu1 %v10195_v3  ;;  %4319 = vmatprep.subr.bf16.mxu0 %v10200_v6  ;;  %v10233_v3 = vld [vmem:[#allocation6 + $0x6a4] ss:$16 sps:$4 sm:$0xff]   ;;  %v10228_v6 = vld [vmem:[#allocation6 + $0x4a0] ss:$16 sps:$4 sm:$0xff]  }
 0x4d6   :  { %4360 = vmatprep.subr.bf16.mxu1 %v10203_v38  ;;  %v10231_v38 = vld [vmem:[#allocation6 + $0x6a0] ss:$16 sps:$4 sm:$0xff]  }
 0x4ea   :  { %v2651_v12 = vpop.f32.mrb[4].mxu0  ;;  %v2733_v13 = vpop.f32.mrb[4].mxu1 }
 0x4eb   :  { %v9944_v14 = vadd.f32 %v2651_v12, %v1259_v8  ;;  %v9946_v41 = vadd.f32 %v2733_v13, %v1267_v42  ;;  %v2653_v15 = vpop.f32.mrb[5].mxu0  ;;  %v2735_v17 = vpop.f32.mrb[5].mxu1  ;;  %v10236_v8 = vld [vmem:[#allocation6 + $0x4c4] ss:$16 sps:$4 sm:$0xff]  }
 0x4ec   :  { %v9945_v18 = vadd.f32 %v2653_v15, %v1263_v10  ;;  %v9947_v19 = vadd.f32 %v2735_v17, %v1271_v11  ;;  %v2655_v21 = vpop.f32.mrb[6].mxu0  ;;  %v2737_v22 = vpop.f32.mrb[6].mxu1  ;;  %v10239_v42 = vld [vmem:[#allocation6 + $0x6c4] ss:$16 sps:$4 sm:$0xff]   ;;  %v10234_v10 = vld [vmem:[#allocation6 + $0x4c0] ss:$16 sps:$4 sm:$0xff]  }
 0x4ed   :  { %vm2904_vm3 = vcmp.ge.f32.partialorder %v9944_v14, 0.0  ;;  %v2912_v24 = vmul.f32 0.01, %v9944_v14  ;;  %vm2906_vm4 = vcmp.ge.f32.partialorder %v9946_v41, 0.0  ;;  %v2914_v25 = vmul.f32 0.01, %v9946_v41 }
 0x4ee   :  { %vm2905_vm5 = vcmp.ge.f32.partialorder %v9945_v18, 0.0  ;;  %v2913_v26 = vmul.f32 0.01, %v9945_v18  ;;  %vm2907_vm6 = vcmp.ge.f32.partialorder %v9947_v19, 0.0  ;;  %v2915_v29 = vmul.f32 0.01, %v9947_v19 }
 0x4ef   :  { %v2920_v32 = vsel %vm2904_vm3, %v9944_v14, %v2912_v24  ;;  %v2922_v35 = vsel %vm2906_vm4, %v9946_v41, %v2914_v25  ;;  %v2656_v36 = vpop.f32.mrb[7].mxu0  ;;  %v2738_v44 = vpop.f32.mrb[7].mxu1  ;;  %v10237_v11 = vld [vmem:[#allocation6 + $0x6c0] ss:$16 sps:$4 sm:$0xff]   ;;  %v10242_v12 = vld [vmem:[#allocation6 + $0x4e4] ss:$16 sps:$4 sm:$0xff]  }
 0x4f0   :  { %v2921_v45 = vsel %vm2905_vm5, %v9945_v18, %v2913_v26  ;;  %v2923_v46 = vsel %vm2907_vm6, %v9947_v19, %v2915_v29  ;;  %v11394_v49 = vpack.c.bf16 %v2920_v32, %v2920_v32  ;;  %v11396_v50 = vpack.c.bf16 %v2922_v35, %v2922_v35  ;;  %v10245_v13 = vld [vmem:[#allocation6 + $0x6e4] ss:$16 sps:$4 sm:$0xff]   ;;  %v10240_v14 = vld [vmem:[#allocation6 + $0x4e0] ss:$16 sps:$4 sm:$0xff]  }
 0x4f1   :  { %v11390_v40 = vpack.c.bf16 %v2921_v45, %v2921_v45  ;;  %v11392_v43 = vpack.c.bf16 %v2923_v46, %v2923_v46  ;;  %v10243_v41 = vld [vmem:[#allocation6 + $0x6e0] ss:$16 sps:$4 sm:$0xff]   ;;  %v10248_v15 = vld [vmem:[#allocation6 + $0x504] ss:$16 sps:$4 sm:$0xff]   ;;  %vm8748_vm3 = vcmp.lt.s32.totalorder %v11239_v34, 3  ;;  %vm8759_vm4 = vcmp.eq.s32.totalorder %v11239_v34, 3 }
 0x4f2   :  { %v10251_v17 = vld [vmem:[#allocation6 + $0x704] ss:$16 sps:$4 sm:$0xff]   ;;  %v10246_v18 = vld [vmem:[#allocation6 + $0x500] ss:$16 sps:$4 sm:$0xff]   ;;  %vm8766_vm5 = vcmp.eq.s32.totalorder %v11239_v34, 4  ;;  %vm8768_vm6 = vcmp.eq.s32.totalorder %v11239_v34, 5 }
 0x4f3   :  { %4269 = vmatprep.mubr.bf16.mxu0 %v11390_v40  ;;  %4310 = vmatprep.mubr.bf16.mxu1 %v11392_v43  ;;  %v10249_v19 = vld [vmem:[#allocation6 + $0x700] ss:$16 sps:$4 sm:$0xff]   ;;  %v10254_v21 = vld [vmem:[#allocation6 + $0x524] ss:$16 sps:$4 sm:$0xff]  }
 0x4f4   :  { %4270 = vmatmul.mubr.bf16.vlgmr.msra.gmra.mrb[12].mxu0 %v11394_v49  ;;  %4311 = vmatmul.mubr.bf16.vlgmr.msra.gmra.mrb[12].mxu1 %v11396_v50  ;;  %v10257_v22 = vld [vmem:[#allocation6 + $0x724] ss:$16 sps:$4 sm:$0xff]   ;;  %v10252_v24 = vld [vmem:[#allocation6 + $0x520] ss:$16 sps:$4 sm:$0xff]  }
 0x4f5   :  { %4320 = vmatpush1.bf16.msra.mxu0 %v10198_v47  ;;  %4361 = vmatpush1.bf16.msra.mxu1 %v10201_v48  ;;  %v10255_v25 = vld [vmem:[#allocation6 + $0x720] ss:$16 sps:$4 sm:$0xff]   ;;  %v10260_v26 = vld [vmem:[#allocation6 + $0x544] ss:$16 sps:$4 sm:$0xff]  }
 0x4f6   :  { %4321 = vmatprep.subr.bf16.mxu0 %v10206_v51  ;;  %4362 = vmatprep.subr.bf16.mxu1 %v10209_v52  ;;  %v10263_v29 = vld [vmem:[#allocation6 + $0x744] ss:$16 sps:$4 sm:$0xff]   ;;  %v10258_v32 = vld [vmem:[#allocation6 + $0x540] ss:$16 sps:$4 sm:$0xff]  }
 0x4f7   :  { %v10261_v35 = vld [vmem:[#allocation6 + $0x740] ss:$16 sps:$4 sm:$0xff]   ;;  %v10266_v36 = vld [vmem:[#allocation6 + $0x564] ss:$16 sps:$4 sm:$0xff]  }
 0x4f8   :  { %v10269_v44 = vld [vmem:[#allocation6 + $0x764] ss:$16 sps:$4 sm:$0xff]   ;;  %v10264_v45 = vld [vmem:[#allocation6 + $0x560] ss:$16 sps:$4 sm:$0xff]  }
 0x4f9   :  { %4322 = vmatpush1.bf16.msra.mxu0 %v10204_v53  ;;  %4363 = vmatpush1.bf16.msra.mxu1 %v10207_v54  ;;  %v10267_v46 = vld [vmem:[#allocation6 + $0x760] ss:$16 sps:$4 sm:$0xff]   ;;  %v10272_v47 = vld [vmem:[#allocation6 + $0x584] ss:$16 sps:$4 sm:$0xff]  }
 0x4fa   :  { %4323 = vmatprep.subr.bf16.mxu0 %v10212_v9  ;;  %4364 = vmatprep.subr.bf16.mxu1 %v10215_v56  ;;  %v10275_v48 = vld [vmem:[#allocation6 + $0x784] ss:$16 sps:$4 sm:$0xff]   ;;  %v10270_v51 = vld [vmem:[#allocation6 + $0x580] ss:$16 sps:$4 sm:$0xff]  }
 0x4fb   :  { %v10273_v52 = vld [vmem:[#allocation6 + $0x780] ss:$16 sps:$4 sm:$0xff]   ;;  %v10278_v53 = vld [vmem:[#allocation6 + $0x5a4] ss:$16 sps:$4 sm:$0xff]  }
 0x4fc   :  { %v10281_v54 = vld [vmem:[#allocation6 + $0x7a4] ss:$16 sps:$4 sm:$0xff]   ;;  %v10276_v9 = vld [vmem:[#allocation6 + $0x5a0] ss:$16 sps:$4 sm:$0xff]  }
 0x4fd   :  { %4324 = vmatpush1.bf16.msra.mxu0 %v10210_v57  ;;  %4365 = vmatpush1.bf16.msra.mxu1 %v10213_v58  ;;  %v10279_v56 = vld [vmem:[#allocation6 + $0x7a0] ss:$16 sps:$4 sm:$0xff]   ;;  %v10284_v57 = vld [vmem:[#allocation6 + $0x5c4] ss:$16 sps:$4 sm:$0xff]  }
 0x4fe   :  { %4325 = vmatprep.subr.bf16.mxu0 %v10218_v59  ;;  %4366 = vmatprep.subr.bf16.mxu1 %v10221_v60  ;;  %v10287_v58 = vld [vmem:[#allocation6 + $0x7c4] ss:$16 sps:$4 sm:$0xff]   ;;  %v10282_v59 = vld [vmem:[#allocation6 + $0x5c0] ss:$16 sps:$4 sm:$0xff]  }
 0x4ff   :  { %v10285_v60 = vld [vmem:[#allocation6 + $0x7c0] ss:$16 sps:$4 sm:$0xff]  }
 0x501   :  { %4326 = vmatpush1.bf16.msra.mxu0 %v10216_v61  ;;  %4367 = vmatpush1.bf16.msra.mxu1 %v10219_v16  ;;  %v10290_v61 = vld [vmem:[#allocation6 + $0x5e4] ss:$16 sps:$4 sm:$0xff]  }
 0x502   :  { %4327 = vmatprep.subr.bf16.mxu0 %v10224_v62  ;;  %4368 = vmatprep.subr.bf16.mxu1 %v10227_v63  ;;  %v10293_v16 = vld [vmem:[#allocation6 + $0x7e4] ss:$16 sps:$4 sm:$0xff]   ;;  %v10288_v62 = vld [vmem:[#allocation6 + $0x5e0] ss:$16 sps:$4 sm:$0xff]  }
 0x503   :  { %v10291_v63 = vld [vmem:[#allocation6 + $0x7e0] ss:$16 sps:$4 sm:$0xff]  }
 0x505   :  { %4328 = vmatpush1.bf16.msra.mxu0 %v10222_v0  ;;  %4369 = vmatpush1.bf16.msra.mxu1 %v10225_v1  ;;  %v10296_v0 = vld [vmem:[#allocation6 + $0xc] ss:$16 sps:$4 sm:$0xff]  }
 0x506   :  { %4329 = vmatprep.subr.bf16.mxu0 %v10230_v2  ;;  %4370 = vmatprep.subr.bf16.mxu1 %v10233_v3  ;;  %v10299_v1 = vld [vmem:[#allocation6 + $0x20c] ss:$16 sps:$4 sm:$0xff]   ;;  %v1274_v2 = vsub.s32 4, %v11266_v27  ;;  %v1282_v3 = vsub.s32 6, %v11266_v27 }
 0x509   :  { %4330 = vmatpush1.bf16.msra.mxu0 %v10228_v6  ;;  %4371 = vmatpush1.bf16.msra.mxu1 %v10231_v38  ;;  %v1278_v6 = vsub.s32 5, %v11266_v27  ;;  %v1286_v38 = vsub.s32 7, %v11266_v27 }
 0x50a   :  { %4331 = vmatprep.subr.bf16.mxu0 %v10236_v8  ;;  %4372 = vmatprep.subr.bf16.mxu1 %v10239_v42  ;;  %v1275_v8 = vrot.slane %v11380_v55, %v1274_v2  ;;  %v1283_v42 = vrot.slane %v11380_v55, %v1282_v3 }
 0x50d   :  { %4332 = vmatpush1.bf16.msra.mxu0 %v10234_v10  ;;  %4373 = vmatpush1.bf16.msra.mxu1 %v10237_v11  ;;  %v1279_v10 = vrot.slane %v11380_v55, %v1278_v6  ;;  %v1287_v11 = vrot.slane %v11380_v55, %v1286_v38 }
 0x50e   :  { %4333 = vmatprep.subr.bf16.mxu0 %v10242_v12  ;;  %4374 = vmatprep.subr.bf16.mxu1 %v10245_v13 }
 0x511   :  { %4334 = vmatpush1.bf16.msra.mxu0 %v10240_v14  ;;  %4375 = vmatpush1.bf16.msra.mxu1 %v10243_v41 }
 0x512   :  { %4335 = vmatprep.subr.bf16.mxu0 %v10248_v15  ;;  %4376 = vmatprep.subr.bf16.mxu1 %v10251_v17 }
 0x515   :  { %4336 = vmatpush1.bf16.msra.mxu0 %v10246_v18  ;;  %4377 = vmatpush1.bf16.msra.mxu1 %v10249_v19 }
 0x516   :  { %4337 = vmatprep.subr.bf16.mxu0 %v10254_v21  ;;  %4378 = vmatprep.subr.bf16.mxu1 %v10257_v22 }
 0x519   :  { %4338 = vmatpush1.bf16.msra.mxu0 %v10252_v24  ;;  %4379 = vmatpush1.bf16.msra.mxu1 %v10255_v25 }
 0x51a   :  { %4339 = vmatprep.subr.bf16.mxu0 %v10260_v26  ;;  %4380 = vmatprep.subr.bf16.mxu1 %v10263_v29 }
 0x51d   :  { %4340 = vmatpush1.bf16.msra.mxu0 %v10258_v32  ;;  %4381 = vmatpush1.bf16.msra.mxu1 %v10261_v35 }
 0x51e   :  { %4341 = vmatprep.subr.bf16.mxu0 %v10266_v36  ;;  %4382 = vmatprep.subr.bf16.mxu1 %v10269_v44 }
 0x521   :  { %4342 = vmatpush1.bf16.msra.mxu0 %v10264_v45  ;;  %4383 = vmatpush1.bf16.msra.mxu1 %v10267_v46 }
 0x522   :  { %4343 = vmatprep.subr.bf16.mxu0 %v10272_v47  ;;  %4384 = vmatprep.subr.bf16.mxu1 %v10275_v48  ;;  %v10294_v47 = vld [vmem:[#allocation6 + $0x8] ss:$16 sps:$4 sm:$0xff]  }
 0x525   :  { %4344 = vmatpush1.bf16.msra.mxu0 %v10270_v51  ;;  %4385 = vmatpush1.bf16.msra.mxu1 %v10273_v52  ;;  %v10297_v52 = vld [vmem:[#allocation6 + $0x208] ss:$16 sps:$4 sm:$0xff]  }
 0x526   :  { %4345 = vmatprep.subr.bf16.mxu0 %v10278_v53  ;;  %4386 = vmatprep.subr.bf16.mxu1 %v10281_v54  ;;  %v10302_v54 = vld [vmem:[#allocation6 + $0x2c] ss:$16 sps:$4 sm:$0xff]  }
 0x529   :  { %4346 = vmatpush1.bf16.msra.mxu0 %v10276_v9  ;;  %4387 = vmatpush1.bf16.msra.mxu1 %v10279_v56  ;;  %v10305_v9 = vld [vmem:[#allocation6 + $0x22c] ss:$16 sps:$4 sm:$0xff]   ;;  %v10300_v56 = vld [vmem:[#allocation6 + $0x28] ss:$16 sps:$4 sm:$0xff]  }
 0x52a   :  { %4347 = vmatprep.subr.bf16.mxu0 %v10284_v57  ;;  %4388 = vmatprep.subr.bf16.mxu1 %v10287_v58  ;;  %v10303_v57 = vld [vmem:[#allocation6 + $0x228] ss:$16 sps:$4 sm:$0xff]   ;;  %v10308_v58 = vld [vmem:[#allocation6 + $0x4c] ss:$16 sps:$4 sm:$0xff]  }
 0x52d   :  { %4348 = vmatpush1.bf16.msra.mxu0 %v10282_v59  ;;  %4389 = vmatpush1.bf16.msra.mxu1 %v10285_v60  ;;  %v10311_v59 = vld [vmem:[#allocation6 + $0x24c] ss:$16 sps:$4 sm:$0xff]   ;;  %v10306_v60 = vld [vmem:[#allocation6 + $0x48] ss:$16 sps:$4 sm:$0xff]  }
 0x52e   :  { %4349 = vmatprep.subr.bf16.mxu0 %v10290_v61  ;;  %4390 = vmatprep.subr.bf16.mxu1 %v10293_v16  ;;  %v10309_v61 = vld [vmem:[#allocation6 + $0x248] ss:$16 sps:$4 sm:$0xff]   ;;  %v10314_v16 = vld [vmem:[#allocation6 + $0x6c] ss:$16 sps:$4 sm:$0xff]  }
 0x531   :  { %4350 = vmatpush1.bf16.msra.mxu0 %v10288_v62  ;;  %4391 = vmatpush1.bf16.msra.mxu1 %v10291_v63  ;;  %v10317_v62 = vld [vmem:[#allocation6 + $0x26c] ss:$16 sps:$4 sm:$0xff]   ;;  %v10312_v63 = vld [vmem:[#allocation6 + $0x68] ss:$16 sps:$4 sm:$0xff]  }
 0x532   :  { %4401 = vmatprep.subr.bf16.mxu0 %v10296_v0  ;;  %4442 = vmatprep.subr.bf16.mxu1 %v10299_v1  ;;  %v10320_v0 = vld [vmem:[#allocation6 + $0x8c] ss:$16 sps:$4 sm:$0xff]  }
 0x533   :  { %v10323_v1 = vld [vmem:[#allocation6 + $0x28c] ss:$16 sps:$4 sm:$0xff]  }
 0x56a   :  { %v2815_v12 = vpop.f32.mrb[8].mxu0 }
 0x56b   :  { %v9948_v13 = vadd.f32 %v2815_v12, %v1275_v8  ;;  %v2897_v14 = vpop.f32.mrb[8].mxu1  ;;  %v2817_v41 = vpop.f32.mrb[9].mxu0  ;;  %v10321_v8 = vld [vmem:[#allocation6 + $0x288] ss:$16 sps:$4 sm:$0xff]  }
 0x56c   :  { %v9950_v15 = vadd.f32 %v2897_v14, %v1283_v42  ;;  %v9949_v17 = vadd.f32 %v2817_v41, %v1279_v10  ;;  %v2899_v18 = vpop.f32.mrb[9].mxu1  ;;  %v2819_v19 = vpop.f32.mrb[10].mxu0  ;;  %v10326_v42 = vld [vmem:[#allocation6 + $0xac] ss:$16 sps:$4 sm:$0xff]   ;;  %v10327_v12 = vld [vmem:[#allocation6 + $0x2a8] ss:$16 sps:$4 sm:$0xff]  }
 0x56d   :  { %vm2908_vm7 = vcmp.ge.f32.partialorder %v9948_v13, 0.0  ;;  %v2916_v21 = vmul.f32 0.01, %v9948_v13  ;;  %v9951_v22 = vadd.f32 %v2899_v18, %v1287_v11  ;;  %v2901_v24 = vpop.f32.mrb[10].mxu1  ;;  %v2820_v25 = vpop.f32.mrb[11].mxu0 }
 0x56e   :  { %vm2910_vm8 = vcmp.ge.f32.partialorder %v9950_v15, 0.0  ;;  %v2918_v26 = vmul.f32 0.01, %v9950_v15  ;;  %vm2909_vm9 = vcmp.ge.f32.partialorder %v9949_v17, 0.0  ;;  %v2917_v29 = vmul.f32 0.01, %v9949_v17 }
 0x56f   :  { %v2924_v32 = vsel %vm2908_vm7, %v9948_v13, %v2916_v21  ;;  %vm2911_vm10 = vcmp.ge.f32.partialorder %v9951_v22, 0.0  ;;  %v2919_v55 = vmul.f32 0.01, %v9951_v22  ;;  %v2902_v35 = vpop.f32.mrb[11].mxu1  ;;  %v10329_v10 = vld [vmem:[#allocation6 + $0x2ac] ss:$16 sps:$4 sm:$0xff]  }
 0x570   :  { %v2926_v36 = vsel %vm2910_vm8, %v9950_v15, %v2918_v26  ;;  %v2925_v44 = vsel %vm2909_vm9, %v9949_v17, %v2917_v29  ;;  %v11420_v48 = vpack.c.bf16 %v2924_v32, %v2924_v32  ;;  %v10324_v11 = vld [vmem:[#allocation6 + $0xa8] ss:$16 sps:$4 sm:$0xff]   ;;  %v10332_v13 = vld [vmem:[#allocation6 + $0xcc] ss:$16 sps:$4 sm:$0xff]  }
 0x571   :  { %v11418_v45 = vpack.c.bf16 %v2925_v44, %v2925_v44  ;;  %v2927_v46 = vsel %vm2911_vm10, %v9951_v22, %v2919_v55  ;;  %v11424_v53 = vpack.c.bf16 %v2926_v36, %v2926_v36  ;;  %v10335_v14 = vld [vmem:[#allocation6 + $0x2cc] ss:$16 sps:$4 sm:$0xff]   ;;  %v10330_v41 = vld [vmem:[#allocation6 + $0xc8] ss:$16 sps:$4 sm:$0xff]  }
 0x572   :  { %v11422_v51 = vpack.c.bf16 %v2927_v46, %v2927_v46  ;;  %v10333_v15 = vld [vmem:[#allocation6 + $0x2c8] ss:$16 sps:$4 sm:$0xff]   ;;  %v10338_v17 = vld [vmem:[#allocation6 + $0xec] ss:$16 sps:$4 sm:$0xff]  }
 0x573   :  { %4351 = vmatprep.mubr.bf16.mxu0 %v11418_v45  ;;  %v10341_v18 = vld [vmem:[#allocation6 + $0x2ec] ss:$16 sps:$4 sm:$0xff]   ;;  %v10336_v19 = vld [vmem:[#allocation6 + $0xe8] ss:$16 sps:$4 sm:$0xff]  }
 0x574   :  { %4392 = vmatprep.mubr.bf16.mxu1 %v11422_v51  ;;  %4352 = vmatmul.mubr.bf16.vlgmr.msra.gmra.mrb[16].mxu0 %v11420_v48  ;;  %v10339_v21 = vld [vmem:[#allocation6 + $0x2e8] ss:$16 sps:$4 sm:$0xff]   ;;  %v10344_v22 = vld [vmem:[#allocation6 + $0x10c] ss:$16 sps:$4 sm:$0xff]  }
 0x575   :  { %4393 = vmatmul.mubr.bf16.vlgmr.msra.gmra.mrb[16].mxu1 %v11424_v53  ;;  %4402 = vmatpush1.bf16.msra.mxu0 %v10294_v47  ;;  %v10347_v24 = vld [vmem:[#allocation6 + $0x30c] ss:$16 sps:$4 sm:$0xff]   ;;  %v10342_v25 = vld [vmem:[#allocation6 + $0x108] ss:$16 sps:$4 sm:$0xff]  }
 0x576   :  { %4443 = vmatpush1.bf16.msra.mxu1 %v10297_v52  ;;  %4433 = vmatprep.mubr.bf16.mxu0 %v11390_v40  ;;  %v10315_v40 = vld [vmem:[#allocation6 + $0x268] ss:$16 sps:$4 sm:$0xff]   ;;  %v10350_v29 = vld [vmem:[#allocation6 + $0x12c] ss:$16 sps:$4 sm:$0xff]  }
 0x577   :  { %4474 = vmatprep.mubr.bf16.mxu1 %v11392_v43  ;;  %4403 = vmatprep.subr.bf16.mxu0 %v10302_v54  ;;  %v10318_v43 = vld [vmem:[#allocation6 + $0x88] ss:$16 sps:$4 sm:$0xff]   ;;  %v10353_v32 = vld [vmem:[#allocation6 + $0x32c] ss:$16 sps:$4 sm:$0xff]  }
 0x578   :  { %4444 = vmatprep.subr.bf16.mxu1 %v10305_v9  ;;  %v10345_v26 = vld [vmem:[#allocation6 + $0x308] ss:$16 sps:$4 sm:$0xff]   ;;  %v10356_v36 = vld [vmem:[#allocation6 + $0x14c] ss:$16 sps:$4 sm:$0xff]  }
 0x579   :  { %4404 = vmatpush1.bf16.msra.mxu0 %v10300_v56  ;;  %v10348_v55 = vld [vmem:[#allocation6 + $0x128] ss:$16 sps:$4 sm:$0xff]   ;;  %v10359_v44 = vld [vmem:[#allocation6 + $0x34c] ss:$16 sps:$4 sm:$0xff]  }
 0x57a   :  { %4445 = vmatpush1.bf16.msra.mxu1 %v10303_v57  ;;  %4405 = vmatprep.subr.bf16.mxu0 %v10308_v58  ;;  %v10351_v35 = vld [vmem:[#allocation6 + $0x328] ss:$16 sps:$4 sm:$0xff]   ;;  %v10362_v52 = vld [vmem:[#allocation6 + $0x16c] ss:$16 sps:$4 sm:$0xff]  }
 0x57b   :  { %4446 = vmatprep.subr.bf16.mxu1 %v10311_v59  ;;  %v10354_v46 = vld [vmem:[#allocation6 + $0x148] ss:$16 sps:$4 sm:$0xff]   ;;  %v10365_v54 = vld [vmem:[#allocation6 + $0x36c] ss:$16 sps:$4 sm:$0xff]  }
 0x57c   :  { %v10357_v47 = vld [vmem:[#allocation6 + $0x348] ss:$16 sps:$4 sm:$0xff]   ;;  %v10368_v57 = vld [vmem:[#allocation6 + $0x18c] ss:$16 sps:$4 sm:$0xff]  }
 0x57d   :  { %4406 = vmatpush1.bf16.msra.mxu0 %v10306_v60  ;;  %v10360_v9 = vld [vmem:[#allocation6 + $0x168] ss:$16 sps:$4 sm:$0xff]   ;;  %v10371_v58 = vld [vmem:[#allocation6 + $0x38c] ss:$16 sps:$4 sm:$0xff]  }
 0x57e   :  { %4447 = vmatpush1.bf16.msra.mxu1 %v10309_v61  ;;  %4407 = vmatprep.subr.bf16.mxu0 %v10314_v16  ;;  %v10363_v56 = vld [vmem:[#allocation6 + $0x368] ss:$16 sps:$4 sm:$0xff]   ;;  %v10374_v61 = vld [vmem:[#allocation6 + $0x1ac] ss:$16 sps:$4 sm:$0xff]  }
 0x57f   :  { %4448 = vmatprep.subr.bf16.mxu1 %v10317_v62  ;;  %v10366_v59 = vld [vmem:[#allocation6 + $0x188] ss:$16 sps:$4 sm:$0xff]   ;;  %v10377_v16 = vld [vmem:[#allocation6 + $0x3ac] ss:$16 sps:$4 sm:$0xff]  }
 0x580   :  { %v10369_v60 = vld [vmem:[#allocation6 + $0x388] ss:$16 sps:$4 sm:$0xff]  }
 0x581   :  { %4408 = vmatpush1.bf16.msra.mxu0 %v10312_v63  ;;  %v10372_v62 = vld [vmem:[#allocation6 + $0x1a8] ss:$16 sps:$4 sm:$0xff]  }
 0x582   :  { %4449 = vmatpush1.bf16.msra.mxu1 %v10315_v40  ;;  %4409 = vmatprep.subr.bf16.mxu0 %v10320_v0  ;;  %v10375_v63 = vld [vmem:[#allocation6 + $0x3a8] ss:$16 sps:$4 sm:$0xff]   ;;  %v10380_v40 = vld [vmem:[#allocation6 + $0x1cc] ss:$16 sps:$4 sm:$0xff]  }
 0x583   :  { %4450 = vmatprep.subr.bf16.mxu1 %v10323_v1  ;;  %v10383_v0 = vld [vmem:[#allocation6 + $0x3cc] ss:$16 sps:$4 sm:$0xff]   ;;  %v10378_v1 = vld [vmem:[#allocation6 + $0x1c8] ss:$16 sps:$4 sm:$0xff]  }
 0x585   :  { %4410 = vmatpush1.bf16.msra.mxu0 %v10318_v43  ;;  %v10381_v43 = vld [vmem:[#allocation6 + $0x3c8] ss:$16 sps:$4 sm:$0xff]  }
 0x586   :  { %4451 = vmatpush1.bf16.msra.mxu1 %v10321_v8  ;;  %4411 = vmatprep.subr.bf16.mxu0 %v10326_v42  ;;  %v10386_v8 = vld [vmem:[#allocation6 + $0x1ec] ss:$16 sps:$4 sm:$0xff]  }
 0x587   :  { %4452 = vmatprep.subr.bf16.mxu1 %v10329_v10  ;;  %v10389_v42 = vld [vmem:[#allocation6 + $0x3ec] ss:$16 sps:$4 sm:$0xff]   ;;  %v10384_v10 = vld [vmem:[#allocation6 + $0x1e8] ss:$16 sps:$4 sm:$0xff]  }
 0x589   :  { %4412 = vmatpush1.bf16.msra.mxu0 %v10324_v11  ;;  %v10387_v11 = vld [vmem:[#allocation6 + $0x3e8] ss:$16 sps:$4 sm:$0xff]  }
 0x58a   :  { %4453 = vmatpush1.bf16.msra.mxu1 %v10327_v12  ;;  %4413 = vmatprep.subr.bf16.mxu0 %v10332_v13  ;;  %v10392_v12 = vld [vmem:[#allocation6 + $0x40c] ss:$16 sps:$4 sm:$0xff]  }
 0x58b   :  { %4454 = vmatprep.subr.bf16.mxu1 %v10335_v14  ;;  %v10395_v13 = vld [vmem:[#allocation6 + $0x60c] ss:$16 sps:$4 sm:$0xff]   ;;  %v10390_v14 = vld [vmem:[#allocation6 + $0x408] ss:$16 sps:$4 sm:$0xff]  }
 0x58d   :  { %4414 = vmatpush1.bf16.msra.mxu0 %v10330_v41  ;;  %v10393_v41 = vld [vmem:[#allocation6 + $0x608] ss:$16 sps:$4 sm:$0xff]  }
 0x58e   :  { %4455 = vmatpush1.bf16.msra.mxu1 %v10333_v15  ;;  %4415 = vmatprep.subr.bf16.mxu0 %v10338_v17  ;;  %v10398_v15 = vld [vmem:[#allocation6 + $0x42c] ss:$16 sps:$4 sm:$0xff]  }
 0x58f   :  { %4456 = vmatprep.subr.bf16.mxu1 %v10341_v18  ;;  %v10401_v17 = vld [vmem:[#allocation6 + $0x62c] ss:$16 sps:$4 sm:$0xff]   ;;  %v10396_v18 = vld [vmem:[#allocation6 + $0x428] ss:$16 sps:$4 sm:$0xff]  }
 0x591   :  { %4416 = vmatpush1.bf16.msra.mxu0 %v10336_v19  ;;  %v10399_v19 = vld [vmem:[#allocation6 + $0x628] ss:$16 sps:$4 sm:$0xff]  }
 0x592   :  { %4457 = vmatpush1.bf16.msra.mxu1 %v10339_v21  ;;  %4417 = vmatprep.subr.bf16.mxu0 %v10344_v22  ;;  %v10404_v21 = vld [vmem:[#allocation6 + $0x44c] ss:$16 sps:$4 sm:$0xff]  }
 0x593   :  { %4458 = vmatprep.subr.bf16.mxu1 %v10347_v24  ;;  %v10407_v22 = vld [vmem:[#allocation6 + $0x64c] ss:$16 sps:$4 sm:$0xff]   ;;  %v10402_v24 = vld [vmem:[#allocation6 + $0x448] ss:$16 sps:$4 sm:$0xff]  }
 0x595   :  { %4418 = vmatpush1.bf16.msra.mxu0 %v10342_v25  ;;  %v10410_v25 = vld [vmem:[#allocation6 + $0x46c] ss:$16 sps:$4 sm:$0xff]  }
 0x596   :  { %4459 = vmatpush1.bf16.msra.mxu1 %v10345_v26  ;;  %4419 = vmatprep.subr.bf16.mxu0 %v10350_v29  ;;  %v10408_v26 = vld [vmem:[#allocation6 + $0x468] ss:$16 sps:$4 sm:$0xff]   ;;  %v10416_v29 = vld [vmem:[#allocation6 + $0x48c] ss:$16 sps:$4 sm:$0xff]  }
 0x597   :  { %4460 = vmatprep.subr.bf16.mxu1 %v10353_v32  ;;  %v10419_v32 = vld [vmem:[#allocation6 + $0x68c] ss:$16 sps:$4 sm:$0xff]  }
 0x599   :  { %4420 = vmatpush1.bf16.msra.mxu0 %v10348_v55  ;;  %v11439_v55 = vld [vmem:[%s11624_s8] sm:$0xf] }
 0x59a   :  { %4461 = vmatpush1.bf16.msra.mxu1 %v10351_v35  ;;  %4421 = vmatprep.subr.bf16.mxu0 %v10356_v36  ;;  %v10417_v35 = vld [vmem:[#allocation6 + $0x688] ss:$16 sps:$4 sm:$0xff]   ;;  %v10422_v36 = vld [vmem:[#allocation6 + $0x4ac] ss:$16 sps:$4 sm:$0xff]  }
 0x59b   :  { %4462 = vmatprep.subr.bf16.mxu1 %v10359_v44  ;;  %v10425_v44 = vld [vmem:[#allocation6 + $0x6ac] ss:$16 sps:$4 sm:$0xff]  }
 0x59d   :  { %4422 = vmatpush1.bf16.msra.mxu0 %v10354_v46  ;;  %v2940_v46 = vrot.slane %v11439_v55, %v11269_v28 }
 0x59e   :  { %4463 = vmatpush1.bf16.msra.mxu1 %v10357_v47  ;;  %4423 = vmatprep.subr.bf16.mxu0 %v10362_v52  ;;  %v10420_v47 = vld [vmem:[#allocation6 + $0x4a8] ss:$16 sps:$4 sm:$0xff]   ;;  %v2944_v52 = vrot.slane %v11439_v55, %v11275_v30 }
 0x59f   :  { %4464 = vmatprep.subr.bf16.mxu1 %v10365_v54  ;;  %v10423_v54 = vld [vmem:[#allocation6 + $0x6a8] ss:$16 sps:$4 sm:$0xff]  }
 0x5a1   :  { %4424 = vmatpush1.bf16.msra.mxu0 %v10360_v9  ;;  %v10428_v9 = vld [vmem:[#allocation6 + $0x4cc] ss:$16 sps:$4 sm:$0xff]  }
 0x5a2   :  { %4465 = vmatpush1.bf16.msra.mxu1 %v10363_v56  ;;  %4425 = vmatprep.subr.bf16.mxu0 %v10368_v57 }
 0x5a3   :  { %4466 = vmatprep.subr.bf16.mxu1 %v10371_v58  ;;  %v10431_v58 = vld [vmem:[#allocation6 + $0x6cc] ss:$16 sps:$4 sm:$0xff]  }
 0x5a5   :  { %4426 = vmatpush1.bf16.msra.mxu0 %v10366_v59 }
 0x5a6   :  { %4467 = vmatpush1.bf16.msra.mxu1 %v10369_v60  ;;  %4427 = vmatprep.subr.bf16.mxu0 %v10374_v61 }
 0x5a7   :  { %4468 = vmatprep.subr.bf16.mxu1 %v10377_v16 }
 0x5a9   :  { %4428 = vmatpush1.bf16.msra.mxu0 %v10372_v62 }
 0x5aa   :  { %4469 = vmatpush1.bf16.msra.mxu1 %v10375_v63  ;;  %4429 = vmatprep.subr.bf16.mxu0 %v10380_v40  ;;  %v10426_v40 = vld [vmem:[#allocation6 + $0x4c8] ss:$16 sps:$4 sm:$0xff]  }
 0x5ab   :  { %4470 = vmatprep.subr.bf16.mxu1 %v10383_v0 }
 0x5ad   :  { %4430 = vmatpush1.bf16.msra.mxu0 %v10378_v1 }
 0x5ae   :  { %4471 = vmatpush1.bf16.msra.mxu1 %v10381_v43  ;;  %4431 = vmatprep.subr.bf16.mxu0 %v10386_v8  ;;  %v10429_v8 = vld [vmem:[#allocation6 + $0x6c8] ss:$16 sps:$4 sm:$0xff]  }
 0x5af   :  { %4472 = vmatprep.subr.bf16.mxu1 %v10389_v42  ;;  %v10434_v42 = vld [vmem:[#allocation6 + $0x4ec] ss:$16 sps:$4 sm:$0xff]  }
 0x5b1   :  { %4432 = vmatpush1.bf16.msra.mxu0 %v10384_v10 }
 0x5b2   :  { %4473 = vmatpush1.bf16.msra.mxu1 %v10387_v11  ;;  %4483 = vmatprep.subr.bf16.mxu0 %v10392_v12  ;;  %v10437_v11 = vld [vmem:[#allocation6 + $0x6ec] ss:$16 sps:$4 sm:$0xff]   ;;  %v10432_v12 = vld [vmem:[#allocation6 + $0x4e8] ss:$16 sps:$4 sm:$0xff]  }
 0x5b3   :  { %4524 = vmatprep.subr.bf16.mxu1 %v10395_v13  ;;  %v10435_v13 = vld [vmem:[#allocation6 + $0x6e8] ss:$16 sps:$4 sm:$0xff]  }
 0x5b4   :  { %4434 = vmatmul.mubr.bf16.vlgmr.msra.gmra.mrb[20].mxu0 %v11394_v49  ;;  %v10405_v49 = vld [vmem:[#allocation6 + $0x648] ss:$16 sps:$4 sm:$0xff]  }
 0x5b5   :  { %4475 = vmatmul.mubr.bf16.vlgmr.msra.gmra.mrb[20].mxu1 %v11396_v50  ;;  %4484 = vmatpush1.bf16.msra.mxu0 %v10390_v14  ;;  %v10413_v50 = vld [vmem:[#allocation6 + $0x66c] ss:$16 sps:$4 sm:$0xff]  }
 0x5b6   :  { %4515 = vmatprep.mubr.bf16.mxu0 %v11418_v45  ;;  %4525 = vmatpush1.bf16.msra.mxu1 %v10393_v41  ;;  %v10411_v45 = vld [vmem:[#allocation6 + $0x668] ss:$16 sps:$4 sm:$0xff]   ;;  %v10440_v14 = vld [vmem:[#allocation6 + $0x50c] ss:$16 sps:$4 sm:$0xff]  }
 0x5b7   :  { %4556 = vmatprep.mubr.bf16.mxu1 %v11422_v51  ;;  %4485 = vmatprep.subr.bf16.mxu0 %v10398_v15  ;;  %v10414_v51 = vld [vmem:[#allocation6 + $0x488] ss:$16 sps:$4 sm:$0xff]   ;;  %v10443_v41 = vld [vmem:[#allocation6 + $0x70c] ss:$16 sps:$4 sm:$0xff]  }
 0x5b8   :  { %4526 = vmatprep.subr.bf16.mxu1 %v10401_v17  ;;  %v10438_v15 = vld [vmem:[#allocation6 + $0x508] ss:$16 sps:$4 sm:$0xff]  }
 0x5b9   :  { %4486 = vmatpush1.bf16.msra.mxu0 %v10396_v18  ;;  %v10441_v17 = vld [vmem:[#allocation6 + $0x708] ss:$16 sps:$4 sm:$0xff]   ;;  %v10446_v18 = vld [vmem:[#allocation6 + $0x52c] ss:$16 sps:$4 sm:$0xff]  }
 0x5ba   :  { %4527 = vmatpush1.bf16.msra.mxu1 %v10399_v19  ;;  %4487 = vmatprep.subr.bf16.mxu0 %v10404_v21  ;;  %v10449_v19 = vld [vmem:[#allocation6 + $0x72c] ss:$16 sps:$4 sm:$0xff]   ;;  %v10444_v21 = vld [vmem:[#allocation6 + $0x528] ss:$16 sps:$4 sm:$0xff]  }
 0x5bb   :  { %4528 = vmatprep.subr.bf16.mxu1 %v10407_v22  ;;  %v10447_v22 = vld [vmem:[#allocation6 + $0x728] ss:$16 sps:$4 sm:$0xff]  }
 0x5bd   :  { %4488 = vmatpush1.bf16.msra.mxu0 %v10402_v24  ;;  %v10452_v24 = vld [vmem:[#allocation6 + $0x54c] ss:$16 sps:$4 sm:$0xff]  }
 0x5be   :  { %4529 = vmatpush1.bf16.msra.mxu1 %v10405_v49  ;;  %4489 = vmatprep.subr.bf16.mxu0 %v10410_v25  ;;  %v10455_v49 = vld [vmem:[#allocation6 + $0x74c] ss:$16 sps:$4 sm:$0xff]   ;;  %v10450_v25 = vld [vmem:[#allocation6 + $0x548] ss:$16 sps:$4 sm:$0xff]  }
 0x5bf   :  { %4530 = vmatprep.subr.bf16.mxu1 %v10413_v50  ;;  %v10453_v50 = vld [vmem:[#allocation6 + $0x748] ss:$16 sps:$4 sm:$0xff]  }
 0x5c1   :  { %4490 = vmatpush1.bf16.msra.mxu0 %v10408_v26  ;;  %v10458_v26 = vld [vmem:[#allocation6 + $0x56c] ss:$16 sps:$4 sm:$0xff]  }
 0x5c2   :  { %4531 = vmatpush1.bf16.msra.mxu1 %v10411_v45  ;;  %4491 = vmatprep.subr.bf16.mxu0 %v10416_v29  ;;  %v10461_v45 = vld [vmem:[#allocation6 + $0x76c] ss:$16 sps:$4 sm:$0xff]   ;;  %v10456_v29 = vld [vmem:[#allocation6 + $0x568] ss:$16 sps:$4 sm:$0xff]  }
 0x5c3   :  { %4532 = vmatprep.subr.bf16.mxu1 %v10419_v32  ;;  %v10459_v32 = vld [vmem:[#allocation6 + $0x768] ss:$16 sps:$4 sm:$0xff]  }
 0x5c5   :  { %4492 = vmatpush1.bf16.msra.mxu0 %v10414_v51  ;;  %v10464_v51 = vld [vmem:[#allocation6 + $0x58c] ss:$16 sps:$4 sm:$0xff]  }
 0x5c6   :  { %4533 = vmatpush1.bf16.msra.mxu1 %v10417_v35  ;;  %4493 = vmatprep.subr.bf16.mxu0 %v10422_v36  ;;  %v10467_v35 = vld [vmem:[#allocation6 + $0x78c] ss:$16 sps:$4 sm:$0xff]   ;;  %v10462_v36 = vld [vmem:[#allocation6 + $0x588] ss:$16 sps:$4 sm:$0xff]  }
 0x5c7   :  { %v4271_v56 = vpop.f32.mrb[12].mxu0  ;;  %v4312_v57 = vpop.f32.mrb[12].mxu1  ;;  %4534 = vmatprep.subr.bf16.mxu1 %v10425_v44  ;;  %v10465_v44 = vld [vmem:[#allocation6 + $0x788] ss:$16 sps:$4 sm:$0xff]  }
 0x5c8   :  { %v4272_v59 = vadd.f32 %v4271_v56, %v2940_v46  ;;  %v4273_v60 = vpop.f32.mrb[13].mxu0  ;;  %v4314_v61 = vpop.f32.mrb[13].mxu1  ;;  %v10470_v46 = vld [vmem:[#allocation6 + $0x5ac] ss:$16 sps:$4 sm:$0xff]  }
 0x5c9   :  { %v4274_v16 = vadd.f32 %v4273_v60, %v2944_v52  ;;  %4494 = vmatpush1.bf16.msra.mxu0 %v10420_v47  ;;  %v4275_v62 = vpop.f32.mrb[14].mxu0  ;;  %v4316_v63 = vpop.f32.mrb[14].mxu1  ;;  %v10473_v47 = vld [vmem:[#allocation6 + $0x7ac] ss:$16 sps:$4 sm:$0xff]   ;;  %v10468_v52 = vld [vmem:[#allocation6 + $0x5a8] ss:$16 sps:$4 sm:$0xff]  }
 0x5ca   :  { %v11445_v0 = vadd.f32 %v4312_v57, %v4272_v59  ;;  %4535 = vmatpush1.bf16.msra.mxu1 %v10423_v54  ;;  %v4276_v1 = vpop.f32.mrb[15].mxu0  ;;  %v4317_v43 = vpop.f32.mrb[15].mxu1  ;;  %4495 = vmatprep.subr.bf16.mxu0 %v10428_v9  ;;  %v10471_v54 = vld [vmem:[#allocation6 + $0x7a8] ss:$16 sps:$4 sm:$0xff]   ;;  %v10476_v9 = vld [vmem:[#allocation6 + $0x5cc] ss:$16 sps:$4 sm:$0xff]  }
 0x5cb   :  { %v11447_v10 = vadd.f32 %v4314_v61, %v4274_v16  ;;  %4536 = vmatprep.subr.bf16.mxu1 %v10431_v58  ;;  %v10479_v56 = vld [vmem:[#allocation6 + $0x7cc] ss:$16 sps:$4 sm:$0xff]   ;;  %v10474_v57 = vld [vmem:[#allocation6 + $0x5c8] ss:$16 sps:$4 sm:$0xff]   ;;  %v4569_v61 = vld [vmem:[#allocation7] sm:$0xff] }
 0x5cc   :  { %v10477_v58 = vld [vmem:[#allocation6 + $0x7c8] ss:$16 sps:$4 sm:$0xff]   ;;  %v10482_v59 = vld [vmem:[#allocation6 + $0x5ec] ss:$16 sps:$4 sm:$0xff]   ;;  %v4573_v16 = vld [vmem:[#allocation7 + $0x20] sm:$0xff] }
 0x5cd   :  { %4496 = vmatpush1.bf16.msra.mxu0 %v10426_v40  ;;  %v10485_v60 = vld [vmem:[#allocation6 + $0x7ec] ss:$16 sps:$4 sm:$0xff]   ;;  %v10480_v40 = vld [vmem:[#allocation6 + $0x5e8] ss:$16 sps:$4 sm:$0xff]   ;;  %v9356_v43 = vcombine.high %v4569_v61, %v4573_v16 }
 0x5ce   :  { %4537 = vmatpush1.bf16.msra.mxu1 %v10429_v8  ;;  %4497 = vmatprep.subr.bf16.mxu0 %v10434_v42  ;;  %v4570_v62 = vld [vmem:[#allocation7 + $0x8] sm:$0xff]  ;;  %v4577_v42 = vld [vmem:[#allocation7 + $0x40] sm:$0xff] }
 0x5cf   :  { %4538 = vmatprep.subr.bf16.mxu1 %v10437_v11  ;;  %v4574_v63 = vld [vmem:[#allocation7 + $0x28] sm:$0xff]  ;;  %v4581_v11 = vld [vmem:[#allocation7 + $0x60] sm:$0xff] }
 0x5d0   :  { %v10483_v1 = vld [vmem:[#allocation6 + $0x7e8] ss:$16 sps:$4 sm:$0xff]   ;;  %v9358_v8 = vcombine.high %v4570_v62, %v4574_v63 }
 0x5d1   :  { %4498 = vmatpush1.bf16.msra.mxu0 %v10432_v12  ;;  %v4578_v12 = vld [vmem:[#allocation7 + $0x48] sm:$0xff] }
 0x5d2   :  { %4539 = vmatpush1.bf16.msra.mxu1 %v10435_v13  ;;  %4499 = vmatprep.subr.bf16.mxu0 %v10440_v14  ;;  %v4582_v13 = vld [vmem:[#allocation7 + $0x68] sm:$0xff]  ;;  %v9355_v14 = vcombine.low %v4569_v61, %v4573_v16 }
 0x5d3   :  { %4540 = vmatprep.subr.bf16.mxu1 %v10443_v41  ;;  %v9357_v41 = vcombine.low %v4570_v62, %v4574_v63 }
 0x5d5   :  { %4500 = vmatpush1.bf16.msra.mxu0 %v10438_v15  ;;  %v9364_v15 = vcombine.high %v4577_v42, %v4581_v11 }
 0x5d6   :  { %4541 = vmatpush1.bf16.msra.mxu1 %v10441_v17  ;;  %4501 = vmatprep.subr.bf16.mxu0 %v10446_v18  ;;  %v9366_v17 = vcombine.high %v4578_v12, %v4582_v13  ;;  %v4585_v18 = vld [vmem:[#allocation7 + $0x80] sm:$0xff] }
 0x5d7   :  { %4542 = vmatprep.subr.bf16.mxu1 %v10449_v19  ;;  %v4589_v19 = vld [vmem:[#allocation7 + $0xa0] sm:$0xff] }
 0x5d9   :  { %4502 = vmatpush1.bf16.msra.mxu0 %v10444_v21  ;;  %v4586_v21 = vld [vmem:[#allocation7 + $0x88] sm:$0xff] }
 0x5da   :  { %4543 = vmatpush1.bf16.msra.mxu1 %v10447_v22  ;;  %4503 = vmatprep.subr.bf16.mxu0 %v10452_v24  ;;  %v4590_v22 = vld [vmem:[#allocation7 + $0xa8] sm:$0xff]  ;;  %v9363_v24 = vcombine.low %v4577_v42, %v4581_v11 }
 0x5db   :  { %4544 = vmatprep.subr.bf16.mxu1 %v10455_v49  ;;  %v9365_v49 = vcombine.low %v4578_v12, %v4582_v13 }
 0x5dd   :  { %4504 = vmatpush1.bf16.msra.mxu0 %v10450_v25  ;;  %v9372_v25 = vcombine.high %v4585_v18, %v4589_v19 }
 0x5de   :  { %4545 = vmatpush1.bf16.msra.mxu1 %v10453_v50  ;;  %4505 = vmatprep.subr.bf16.mxu0 %v10458_v26  ;;  %v9374_v50 = vcombine.high %v4586_v21, %v4590_v22  ;;  %v4593_v26 = vld [vmem:[#allocation7 + $0xc0] sm:$0xff] }
 0x5df   :  { %4546 = vmatprep.subr.bf16.mxu1 %v10461_v45  ;;  %v4597_v45 = vld [vmem:[#allocation7 + $0xe0] sm:$0xff] }
 0x5e1   :  { %4506 = vmatpush1.bf16.msra.mxu0 %v10456_v29  ;;  %v4594_v29 = vld [vmem:[#allocation7 + $0xc8] sm:$0xff] }
 0x5e2   :  { %4547 = vmatpush1.bf16.msra.mxu1 %v10459_v32  ;;  %4507 = vmatprep.subr.bf16.mxu0 %v10464_v51  ;;  %v4598_v32 = vld [vmem:[#allocation7 + $0xe8] sm:$0xff]  ;;  %v9371_v51 = vcombine.low %v4585_v18, %v4589_v19 }
 0x5e3   :  { %4548 = vmatprep.subr.bf16.mxu1 %v10467_v35  ;;  %v9380_v35 = vcombine.high %v4593_v26, %v4597_v45 }
 0x5e5   :  { %4508 = vmatpush1.bf16.msra.mxu0 %v10462_v36  ;;  %v4601_v36 = vld [vmem:[#allocation7 + $0x100] sm:$0xff] }
 0x5e6   :  { %4549 = vmatpush1.bf16.msra.mxu1 %v10465_v44  ;;  %4509 = vmatprep.subr.bf16.mxu0 %v10470_v46  ;;  %v4605_v44 = vld [vmem:[#allocation7 + $0x120] sm:$0xff]  ;;  %v4602_v46 = vld [vmem:[#allocation7 + $0x108] sm:$0xff] }
 0x5e7   :  { %4550 = vmatprep.subr.bf16.mxu1 %v10473_v47  ;;  %v4606_v47 = vld [vmem:[#allocation7 + $0x128] sm:$0xff]  ;;  %v9387_v61 = vcombine.low %v4601_v36, %v4605_v44 }
 0x5e8   :  { %v9389_v16 = vcombine.low %v4602_v46, %v4606_v47 }
 0x5e9   :  { %4510 = vmatpush1.bf16.msra.mxu0 %v10468_v52  ;;  %v9379_v52 = vcombine.low %v4593_v26, %v4597_v45 }
 0x5ea   :  { %4551 = vmatpush1.bf16.msra.mxu1 %v10471_v54  ;;  %4511 = vmatprep.subr.bf16.mxu0 %v10476_v9  ;;  %v9381_v54 = vcombine.low %v4594_v29, %v4598_v32  ;;  %v9388_v9 = vcombine.high %v4601_v36, %v4605_v44 }
 0x5eb   :  { %4552 = vmatprep.subr.bf16.mxu1 %v10479_v56  ;;  %v9390_v56 = vcombine.high %v4602_v46, %v4606_v47 }
 0x5ed   :  { %4512 = vmatpush1.bf16.msra.mxu0 %v10474_v57  ;;  %v4609_v57 = vld [vmem:[#allocation7 + $0x140] sm:$0xff] }
 0x5ee   :  { %4553 = vmatpush1.bf16.msra.mxu1 %v10477_v58  ;;  %4513 = vmatprep.subr.bf16.mxu0 %v10482_v59  ;;  %v4613_v58 = vld [vmem:[#allocation7 + $0x160] sm:$0xff]  ;;  %v4610_v59 = vld [vmem:[#allocation7 + $0x148] sm:$0xff] }
 0x5ef   :  { %4554 = vmatprep.subr.bf16.mxu1 %v10485_v60  ;;  %v4614_v60 = vld [vmem:[#allocation7 + $0x168] sm:$0xff]  ;;  %v9396_v62 = vcombine.high %v4609_v57, %v4613_v58  ;;  %v9395_v42 = vcombine.low %v4609_v57, %v4613_v58 }
 0x5f0   :  { %v9398_v63 = vcombine.high %v4610_v59, %v4614_v60  ;;  %v9397_v11 = vcombine.low %v4610_v59, %v4614_v60 }
 0x5f1   :  { %4514 = vmatpush1.bf16.msra.mxu0 %v10480_v40  ;;  %v4617_v40 = vld [vmem:[#allocation7 + $0x180] sm:$0xff] }
 0x5f2   :  { %4555 = vmatpush1.bf16.msra.mxu1 %v10483_v1  ;;  %6408 = vmatprep.subr.bf16.mxu0 %v9356_v43  ;;  %v4621_v1 = vld [vmem:[#allocation7 + $0x1a0] sm:$0xff]  ;;  %v4618_v43 = vld [vmem:[#allocation7 + $0x188] sm:$0xff] }
 0x5f3   :  { %6490 = vmatprep.subr.bf16.mxu1 %v9358_v8  ;;  %v4622_v8 = vld [vmem:[#allocation7 + $0x1a8] sm:$0xff]  ;;  %v9404_v12 = vcombine.high %v4617_v40, %v4621_v1  ;;  %v9403_v18 = vcombine.low %v4617_v40, %v4621_v1 }
 0x5f4   :  { %4516 = vmatmul.mubr.bf16.vlgmr.msra.gmra.mrb[24].mxu0 %v11420_v48  ;;  %v9373_v48 = vcombine.low %v4586_v21, %v4590_v22  ;;  %v9406_v13 = vcombine.high %v4618_v43, %v4622_v8  ;;  %v9405_v19 = vcombine.low %v4618_v43, %v4622_v8 }
 0x5f5   :  { %4557 = vmatmul.mubr.bf16.vlgmr.msra.gmra.mrb[24].mxu1 %v11424_v53  ;;  %6409 = vmatpush1.bf16.msra.mxu0 %v9355_v14  ;;  %v9382_v53 = vcombine.high %v4594_v29, %v4598_v32  ;;  %v4625_v14 = vld [vmem:[#allocation7 + $0x1c0] sm:$0xff] }
 0x5f6   :  { %6491 = vmatpush1.bf16.msra.mxu1 %v9357_v41  ;;  %6410 = vmatprep.subr.bf16.mxu0 %v9364_v15  ;;  %v4629_v41 = vld [vmem:[#allocation7 + $0x1e0] sm:$0xff]  ;;  %v4626_v15 = vld [vmem:[#allocation7 + $0x1c8] sm:$0xff] }
 0x5f7   :  { %6492 = vmatprep.subr.bf16.mxu1 %v9366_v17  ;;  %v4630_v17 = vld [vmem:[#allocation7 + $0x1e8] sm:$0xff]  ;;  %v9412_v21 = vcombine.high %v4625_v14, %v4629_v41  ;;  %v9411_v26 = vcombine.low %v4625_v14, %v4629_v41 }
 0x5f8   :  { %v9414_v22 = vcombine.high %v4626_v15, %v4630_v17  ;;  %v9413_v45 = vcombine.low %v4626_v15, %v4630_v17 }
 0x5f9   :  { %6411 = vmatpush1.bf16.msra.mxu0 %v9363_v24  ;;  %v4633_v24 = vld [vmem:[#allocation7 + $0x200] sm:$0xff] }
 0x5fa   :  { %6493 = vmatpush1.bf16.msra.mxu1 %v9365_v49  ;;  %6412 = vmatprep.subr.bf16.mxu0 %v9372_v25  ;;  %v4637_v49 = vld [vmem:[#allocation7 + $0x220] sm:$0xff]  ;;  %v4634_v25 = vld [vmem:[#allocation7 + $0x208] sm:$0xff] }
 0x5fb   :  { %6494 = vmatprep.subr.bf16.mxu1 %v9374_v50  ;;  %v4638_v50 = vld [vmem:[#allocation7 + $0x228] sm:$0xff]  ;;  %v9420_v29 = vcombine.high %v4633_v24, %v4637_v49  ;;  %v9419_v36 = vcombine.low %v4633_v24, %v4637_v49 }
 0x5fc   :  { %v9422_v32 = vcombine.high %v4634_v25, %v4638_v50  ;;  %v9421_v44 = vcombine.low %v4634_v25, %v4638_v50 }
 0x5fd   :  { %6413 = vmatpush1.bf16.msra.mxu0 %v9371_v51  ;;  %v4641_v51 = vld [vmem:[#allocation7 + $0x240] sm:$0xff] }
 0x5fe   :  { %6495 = vmatpush1.bf16.msra.mxu1 %v9373_v48  ;;  %6414 = vmatprep.subr.bf16.mxu0 %v9380_v35  ;;  %v4645_v48 = vld [vmem:[#allocation7 + $0x260] sm:$0xff]  ;;  %v4642_v35 = vld [vmem:[#allocation7 + $0x248] sm:$0xff] }
 0x5ff   :  { %6496 = vmatprep.subr.bf16.mxu1 %v9382_v53  ;;  %v4646_v53 = vld [vmem:[#allocation7 + $0x268] sm:$0xff]  ;;  %v9428_v46 = vcombine.high %v4641_v51, %v4645_v48  ;;  %v9427_v57 = vcombine.low %v4641_v51, %v4645_v48 }
 0x600   :  { %v9430_v47 = vcombine.high %v4642_v35, %v4646_v53  ;;  %v9429_v58 = vcombine.low %v4642_v35, %v4646_v53 }
 0x601   :  { %6415 = vmatpush1.bf16.msra.mxu0 %v9379_v52  ;;  %v4649_v52 = vld [vmem:[#allocation7 + $0x280] sm:$0xff] }
 0x602   :  { %6497 = vmatpush1.bf16.msra.mxu1 %v9381_v54  ;;  %6416 = vmatprep.subr.bf16.mxu0 %v9388_v9  ;;  %v4653_v54 = vld [vmem:[#allocation7 + $0x2a0] sm:$0xff]  ;;  %v4650_v9 = vld [vmem:[#allocation7 + $0x288] sm:$0xff] }
 0x603   :  { %6498 = vmatprep.subr.bf16.mxu1 %v9390_v56  ;;  %v4654_v56 = vld [vmem:[#allocation7 + $0x2a8] sm:$0xff]  ;;  %v9436_v59 = vcombine.high %v4649_v52, %v4653_v54  ;;  %v9435_v40 = vcombine.low %v4649_v52, %v4653_v54 }
 0x604   :  { %v9438_v60 = vcombine.high %v4650_v9, %v4654_v56  ;;  %v9437_v1 = vcombine.low %v4650_v9, %v4654_v56 }
 0x605   :  { %6417 = vmatpush1.bf16.msra.mxu0 %v9387_v61  ;;  %v4657_v61 = vld [vmem:[#allocation7 + $0x2c0] sm:$0xff] }
 0x606   :  { %6499 = vmatpush1.bf16.msra.mxu1 %v9389_v16  ;;  %6418 = vmatprep.subr.bf16.mxu0 %v9396_v62  ;;  %v4661_v16 = vld [vmem:[#allocation7 + $0x2e0] sm:$0xff]  ;;  %v4658_v62 = vld [vmem:[#allocation7 + $0x2c8] sm:$0xff] }
 0x607   :  { %6500 = vmatprep.subr.bf16.mxu1 %v9398_v63  ;;  %v4662_v63 = vld [vmem:[#allocation7 + $0x2e8] sm:$0xff]  ;;  %v9444_v43 = vcombine.high %v4657_v61, %v4661_v16  ;;  %v9443_v14 = vcombine.low %v4657_v61, %v4661_v16 }
 0x608   :  { %v9446_v8 = vcombine.high %v4658_v62, %v4662_v63  ;;  %v9445_v41 = vcombine.low %v4658_v62, %v4662_v63 }
 0x609   :  { %6419 = vmatpush1.bf16.msra.mxu0 %v9395_v42  ;;  %v4665_v42 = vld [vmem:[#allocation7 + $0x300] sm:$0xff] }
 0x60a   :  { %6501 = vmatpush1.bf16.msra.mxu1 %v9397_v11  ;;  %6420 = vmatprep.subr.bf16.mxu0 %v9404_v12  ;;  %v4669_v11 = vld [vmem:[#allocation7 + $0x320] sm:$0xff]  ;;  %v4666_v12 = vld [vmem:[#allocation7 + $0x308] sm:$0xff] }
 0x60b   :  { %6502 = vmatprep.subr.bf16.mxu1 %v9406_v13  ;;  %v4670_v13 = vld [vmem:[#allocation7 + $0x328] sm:$0xff]  ;;  %v9452_v15 = vcombine.high %v4665_v42, %v4669_v11  ;;  %v9451_v24 = vcombine.low %v4665_v42, %v4669_v11 }
 0x60c   :  { %v9454_v17 = vcombine.high %v4666_v12, %v4670_v13  ;;  %v9453_v49 = vcombine.low %v4666_v12, %v4670_v13 }
 0x60d   :  { %6421 = vmatpush1.bf16.msra.mxu0 %v9403_v18  ;;  %v4673_v18 = vld [vmem:[#allocation7 + $0x340] sm:$0xff] }
 0x60e   :  { %6503 = vmatpush1.bf16.msra.mxu1 %v9405_v19  ;;  %6422 = vmatprep.subr.bf16.mxu0 %v9412_v21  ;;  %v4677_v19 = vld [vmem:[#allocation7 + $0x360] sm:$0xff]  ;;  %v4674_v21 = vld [vmem:[#allocation7 + $0x348] sm:$0xff] }
 0x60f   :  { %6504 = vmatprep.subr.bf16.mxu1 %v9414_v22  ;;  %v4678_v22 = vld [vmem:[#allocation7 + $0x368] sm:$0xff]  ;;  %v9460_v25 = vcombine.high %v4673_v18, %v4677_v19  ;;  %v9459_v51 = vcombine.low %v4673_v18, %v4677_v19  ;;  %v4705_v19 = vld [vmem:[#allocation7 + $0x440] sm:$0xff] }
 0x610   :  { %v9462_v50 = vcombine.high %v4674_v21, %v4678_v22  ;;  %v9461_v48 = vcombine.low %v4674_v21, %v4678_v22  ;;  %v4709_v22 = vld [vmem:[#allocation7 + $0x460] sm:$0xff] }
 0x611   :  { %6423 = vmatpush1.bf16.msra.mxu0 %v9411_v26  ;;  %v4681_v26 = vld [vmem:[#allocation7 + $0x380] sm:$0xff] }
 0x612   :  { %6505 = vmatpush1.bf16.msra.mxu1 %v9413_v45  ;;  %6424 = vmatprep.subr.bf16.mxu0 %v9420_v29  ;;  %v4685_v45 = vld [vmem:[#allocation7 + $0x3a0] sm:$0xff]  ;;  %v4682_v29 = vld [vmem:[#allocation7 + $0x388] sm:$0xff] }
 0x613   :  { %6506 = vmatprep.subr.bf16.mxu1 %v9422_v32  ;;  %v4686_v32 = vld [vmem:[#allocation7 + $0x3a8] sm:$0xff]  ;;  %v9468_v35 = vcombine.high %v4681_v26, %v4685_v45  ;;  %v9467_v52 = vcombine.low %v4681_v26, %v4685_v45  ;;  %v4717_v26 = vld [vmem:[#allocation7 + $0x4a0] sm:$0xff] }
 0x614   :  { %v9470_v53 = vcombine.high %v4682_v29, %v4686_v32  ;;  %v9469_v54 = vcombine.low %v4682_v29, %v4686_v32  ;;  %v11467_v32 = vld [vmem:[#allocation7 + $0x10] sm:$0xff] }
 0x615   :  { %6425 = vmatpush1.bf16.msra.mxu0 %v9419_v36  ;;  %v4689_v36 = vld [vmem:[#allocation7 + $0x3c0] sm:$0xff] }
 0x616   :  { %6507 = vmatpush1.bf16.msra.mxu1 %v9421_v44  ;;  %6426 = vmatprep.subr.bf16.mxu0 %v9428_v46  ;;  %v4693_v44 = vld [vmem:[#allocation7 + $0x3e0] sm:$0xff]  ;;  %v4690_v46 = vld [vmem:[#allocation7 + $0x3c8] sm:$0xff] }
 0x617   :  { %6508 = vmatprep.subr.bf16.mxu1 %v9430_v47  ;;  %v4694_v47 = vld [vmem:[#allocation7 + $0x3e8] sm:$0xff]  ;;  %v9476_v9 = vcombine.high %v4689_v36, %v4693_v44  ;;  %v9475_v61 = vcombine.low %v4689_v36, %v4693_v44  ;;  %v11477_v36 = vld [vmem:[#allocation7 + $0x38] sm:$0xff] }
 0x618   :  { %v9478_v56 = vcombine.high %v4690_v46, %v4694_v47  ;;  %v9477_v16 = vcombine.low %v4690_v46, %v4694_v47  ;;  %v9491_v46 = vcombine.low %v4705_v19, %v4709_v22 }
 0x619   :  { %6427 = vmatpush1.bf16.msra.mxu0 %v9427_v57  ;;  %v4697_v57 = vld [vmem:[#allocation7 + $0x400] sm:$0xff] }
 0x61a   :  { %6509 = vmatpush1.bf16.msra.mxu1 %v9429_v58  ;;  %6428 = vmatprep.subr.bf16.mxu0 %v9436_v59  ;;  %v4701_v58 = vld [vmem:[#allocation7 + $0x420] sm:$0xff]  ;;  %v4698_v59 = vld [vmem:[#allocation7 + $0x408] sm:$0xff] }
 0x61b   :  { %6510 = vmatprep.subr.bf16.mxu1 %v9438_v60  ;;  %v4702_v60 = vld [vmem:[#allocation7 + $0x428] sm:$0xff]  ;;  %v9484_v62 = vcombine.high %v4697_v57, %v4701_v58 }
 0x61c   :  { %v9486_v63 = vcombine.high %v4698_v59, %v4702_v60 }
 0x61d   :  { %6429 = vmatpush1.bf16.msra.mxu0 %v9435_v40 }
 0x61e   :  { %6511 = vmatpush1.bf16.msra.mxu1 %v9437_v1  ;;  %6430 = vmatprep.subr.bf16.mxu0 %v9444_v43 }
 0x61f   :  { %6512 = vmatprep.subr.bf16.mxu1 %v9446_v8 }
 0x621   :  { %6431 = vmatpush1.bf16.msra.mxu0 %v9443_v14 }
 0x622   :  { %6513 = vmatpush1.bf16.msra.mxu1 %v9445_v41  ;;  %6432 = vmatprep.subr.bf16.mxu0 %v9452_v15 }
 0x623   :  { %6514 = vmatprep.subr.bf16.mxu1 %v9454_v17 }
 0x625   :  { %6433 = vmatpush1.bf16.msra.mxu0 %v9451_v24  ;;  %v4710_v24 = vld [vmem:[#allocation7 + $0x468] sm:$0xff] }
 0x626   :  { %6515 = vmatpush1.bf16.msra.mxu1 %v9453_v49  ;;  %6434 = vmatprep.subr.bf16.mxu0 %v9460_v25  ;;  %v9483_v49 = vcombine.low %v4697_v57, %v4701_v58  ;;  %v9485_v25 = vcombine.low %v4698_v59, %v4702_v60  ;;  %v4722_v57 = vld [vmem:[#allocation7 + $0x4c8] sm:$0xff] }
 0x627   :  { %6516 = vmatprep.subr.bf16.mxu1 %v9462_v50  ;;  %v4713_v50 = vld [vmem:[#allocation7 + $0x480] sm:$0xff]  ;;  %v4726_v58 = vld [vmem:[#allocation7 + $0x4e8] sm:$0xff] }
 0x628   :  { %v9499_v59 = vcombine.low %v4713_v50, %v4717_v26 }
 0x629   :  { %6435 = vmatpush1.bf16.msra.mxu0 %v9459_v51  ;;  %v11471_v51 = vld [vmem:[#allocation7 + $0x18] sm:$0xff] }
 0x62a   :  { %6517 = vmatpush1.bf16.msra.mxu1 %v9461_v48  ;;  %6436 = vmatprep.subr.bf16.mxu0 %v9468_v35  ;;  %v4714_v48 = vld [vmem:[#allocation7 + $0x488] sm:$0xff]  ;;  %v9361_v44 = vcombine.low %v11471_v51, %v11477_v36 }
 0x62b   :  { %6518 = vmatprep.subr.bf16.mxu1 %v9470_v53  ;;  %v4718_v35 = vld [vmem:[#allocation7 + $0x4a8] sm:$0xff] }
 0x62c   :  { %v9501_v60 = vcombine.low %v4714_v48, %v4718_v35 }
 0x62d   :  { %6437 = vmatpush1.bf16.msra.mxu0 %v9467_v52  ;;  %v9500_v52 = vcombine.high %v4713_v50, %v4717_v26 }
 0x62e   :  { %6519 = vmatpush1.bf16.msra.mxu1 %v9469_v54  ;;  %6438 = vmatprep.subr.bf16.mxu0 %v9476_v9  ;;  %v9502_v54 = vcombine.high %v4714_v48, %v4718_v35  ;;  %v4721_v9 = vld [vmem:[#allocation7 + $0x4c0] sm:$0xff] }
 0x62f   :  { %6520 = vmatprep.subr.bf16.mxu1 %v9478_v56  ;;  %v4725_v56 = vld [vmem:[#allocation7 + $0x4e0] sm:$0xff] }
 0x630   :  { %v4753_v48 = vld [vmem:[#allocation7 + $0x5c0] sm:$0xff] }
 0x631   :  { %6439 = vmatpush1.bf16.msra.mxu0 %v9475_v61  ;;  %v9508_v61 = vcombine.high %v4721_v9, %v4725_v56  ;;  %v4757_v35 = vld [vmem:[#allocation7 + $0x5e0] sm:$0xff] }
 0x632   :  { %6521 = vmatpush1.bf16.msra.mxu1 %v9477_v16  ;;  %6449 = vmatprep.subr.bf16.mxu0 %v9484_v62  ;;  %v9510_v16 = vcombine.high %v4722_v57, %v4726_v58  ;;  %v4729_v62 = vld [vmem:[#allocation7 + $0x500] sm:$0xff] }
 0x633   :  { %6531 = vmatprep.subr.bf16.mxu1 %v9486_v63  ;;  %v4733_v63 = vld [vmem:[#allocation7 + $0x520] sm:$0xff] }
 0x647   :  { %v4353_v40 = vpop.f32.mrb[16].mxu0 }
 0x648   :  { %v4354_v1 = vadd.f32 %v4353_v40, %v11445_v0  ;;  %v4394_v43 = vpop.f32.mrb[16].mxu1  ;;  %v4355_v8 = vpop.f32.mrb[17].mxu0  ;;  %v4706_v0 = vld [vmem:[#allocation7 + $0x448] sm:$0xff] }
 0x649   :  { %v4356_v42 = vadd.f32 %v4355_v8, %v11447_v10  ;;  %v4396_v11 = vpop.f32.mrb[17].mxu1  ;;  %v4357_v12 = vpop.f32.mrb[18].mxu0  ;;  %v9494_v29 = vcombine.high %v4706_v0, %v4710_v24  ;;  %v9493_v47 = vcombine.low %v4706_v0, %v4710_v24  ;;  %v4730_v40 = vld [vmem:[#allocation7 + $0x508] sm:$0xff]  ;;  %v9509_v8 = vcombine.low %v4722_v57, %v4726_v58  ;;  %v4745_v0 = vld [vmem:[#allocation7 + $0x580] sm:$0xff] }
 0x64a   :  { %v4395_v13 = vadd.f32 %v4394_v43, %v4354_v1  ;;  %v4398_v14 = vpop.f32.mrb[18].mxu1  ;;  %v4358_v41 = vpop.f32.mrb[19].mxu0  ;;  %v4734_v1 = vld [vmem:[#allocation7 + $0x528] sm:$0xff]  ;;  %v9507_v43 = vcombine.low %v4721_v9, %v4725_v56  ;;  %v4737_v12 = vld [vmem:[#allocation7 + $0x540] sm:$0xff]  ;;  %v9540_v9 = vcombine.high %v4753_v48, %v4757_v35 }
 0x64b   :  { %v4397_v15 = vadd.f32 %v4396_v11, %v4356_v42  ;;  %v4399_v17 = vpop.f32.mrb[19].mxu1  ;;  %v9516_v42 = vcombine.high %v4729_v62, %v4733_v63  ;;  %v9518_v11 = vcombine.high %v4730_v40, %v4734_v1  ;;  %v4738_v14 = vld [vmem:[#allocation7 + $0x548] sm:$0xff]  ;;  %v4749_v24 = vld [vmem:[#allocation7 + $0x5a0] sm:$0xff] }
 0x64c   :  { %v11454_v18 = vadd.f32 %v4395_v13, %v11339_v5  ;;  %v9492_v5 = vcombine.high %v4705_v19, %v4709_v22  ;;  %v4741_v13 = vld [vmem:[#allocation7 + $0x560] sm:$0xff]  ;;  %v4742_v41 = vld [vmem:[#allocation7 + $0x568] sm:$0xff]  ;;  %v9517_v17 = vcombine.low %v4730_v40, %v4734_v1 }
 0x64d   :  { %v11457_v21 = vadd.f32 %v4397_v15, %v11337_v4  ;;  %v11469_v4 = vld [vmem:[#allocation7 + $0x30] sm:$0xff]  ;;  %v9515_v15 = vcombine.low %v4729_v62, %v4733_v63  ;;  %v9524_v19 = vcombine.high %v4737_v12, %v4741_v13  ;;  %v9526_v22 = vcombine.high %v4738_v14, %v4742_v41  ;;  %v4761_v57 = vld [vmem:[#allocation7 + $0x600] sm:$0xff] }
 0x64e   :  { %v11465_v45 = vpack.c.bf16 %v11454_v18, %v11454_v18  ;;  %v9359_v53 = vcombine.low %v11467_v32, %v11469_v4  ;;  %v9523_v50 = vcombine.low %v4737_v12, %v4741_v13  ;;  %v9525_v26 = vcombine.low %v4738_v14, %v4742_v41  ;;  %v4765_v58 = vld [vmem:[#allocation7 + $0x620] sm:$0xff] }
 0x64f   :  { %v11461_v10 = vpack.c.bf16 %v11457_v21, %v11457_v21  ;;  %v9548_v62 = vcombine.high %v4761_v57, %v4765_v58  ;;  %v4769_v40 = vld [vmem:[#allocation7 + $0x640] sm:$0xff] }
 0x650   :  { %v4773_v1 = vld [vmem:[#allocation7 + $0x660] sm:$0xff] }
 0x651   :  { %6440 = vmatprep.mubr.bf16.mxu0 %v11461_v10  ;;  %6522 = vmatprep.mubr.bf16.mxu1 %v11461_v10  ;;  %v9556_v12 = vcombine.high %v4769_v40, %v4773_v1  ;;  %v4777_v14 = vld [vmem:[#allocation7 + $0x680] sm:$0xff] }
 0x652   :  { %6441 = vmatmul.mubr.bf16.vlgmr.msra.gmra.mrb[28].mxu0 %v11465_v45  ;;  %6523 = vmatmul.mubr.bf16.vlgmr.msra.gmra.mrb[28].mxu1 %v11465_v45  ;;  %v4781_v41 = vld [vmem:[#allocation7 + $0x6a0] sm:$0xff] }
 0x653   :  { %6450 = vmatpush1.bf16.msra.mxu0 %v9483_v49  ;;  %6532 = vmatpush1.bf16.msra.mxu1 %v9485_v25  ;;  %v4746_v49 = vld [vmem:[#allocation7 + $0x588] sm:$0xff] }
 0x654   :  { %6451 = vmatprep.subr.bf16.mxu0 %v9492_v5  ;;  %6533 = vmatprep.subr.bf16.mxu1 %v9494_v29  ;;  %v4750_v25 = vld [vmem:[#allocation7 + $0x5a8] sm:$0xff]  ;;  %v9532_v5 = vcombine.high %v4745_v0, %v4749_v24 }
 0x655   :  { %v9534_v29 = vcombine.high %v4746_v49, %v4750_v25 }
 0x657   :  { %6452 = vmatpush1.bf16.msra.mxu0 %v9491_v46  ;;  %6534 = vmatpush1.bf16.msra.mxu1 %v9493_v47  ;;  %v4754_v46 = vld [vmem:[#allocation7 + $0x5c8] sm:$0xff] }
 0x658   :  { %6453 = vmatprep.subr.bf16.mxu0 %v9500_v52  ;;  %6535 = vmatprep.subr.bf16.mxu1 %v9502_v54  ;;  %v4758_v47 = vld [vmem:[#allocation7 + $0x5e8] sm:$0xff]  ;;  %v9531_v52 = vcombine.low %v4745_v0, %v4749_v24  ;;  %v9533_v54 = vcombine.low %v4746_v49, %v4750_v25  ;;  %v9564_v0 = vcombine.high %v4777_v14, %v4781_v41  ;;  %v4785_v49 = vld [vmem:[#allocation7 + $0x6c0] sm:$0xff] }
 0x659   :  { %v9542_v56 = vcombine.high %v4754_v46, %v4758_v47  ;;  %v4789_v25 = vld [vmem:[#allocation7 + $0x6e0] sm:$0xff] }
 0x65b   :  { %6454 = vmatpush1.bf16.msra.mxu0 %v9499_v59  ;;  %6536 = vmatpush1.bf16.msra.mxu1 %v9501_v60  ;;  %v4762_v59 = vld [vmem:[#allocation7 + $0x608] sm:$0xff] }
 0x65c   :  { %6455 = vmatprep.subr.bf16.mxu0 %v9508_v61  ;;  %6537 = vmatprep.subr.bf16.mxu1 %v9510_v16  ;;  %v4766_v60 = vld [vmem:[#allocation7 + $0x628] sm:$0xff]  ;;  %v9539_v61 = vcombine.low %v4753_v48, %v4757_v35  ;;  %v9541_v16 = vcombine.low %v4754_v46, %v4758_v47  ;;  %v9572_v48 = vcombine.high %v4785_v49, %v4789_v25  ;;  %v4793_v46 = vld [vmem:[#allocation7 + $0x700] sm:$0xff] }
 0x65d   :  { %v9550_v63 = vcombine.high %v4762_v59, %v4766_v60  ;;  %v4797_v47 = vld [vmem:[#allocation7 + $0x720] sm:$0xff] }
 0x65f   :  { %6456 = vmatpush1.bf16.msra.mxu0 %v9507_v43  ;;  %6538 = vmatpush1.bf16.msra.mxu1 %v9509_v8  ;;  %v4770_v43 = vld [vmem:[#allocation7 + $0x648] sm:$0xff] }
 0x660   :  { %6457 = vmatprep.subr.bf16.mxu0 %v9516_v42  ;;  %6539 = vmatprep.subr.bf16.mxu1 %v9518_v11  ;;  %v4774_v8 = vld [vmem:[#allocation7 + $0x668] sm:$0xff]  ;;  %v9547_v42 = vcombine.low %v4761_v57, %v4765_v58  ;;  %v9549_v11 = vcombine.low %v4762_v59, %v4766_v60  ;;  %v9580_v57 = vcombine.high %v4793_v46, %v4797_v47  ;;  %v4801_v59 = vld [vmem:[#allocation7 + $0x740] sm:$0xff] }
 0x661   :  { %v9558_v13 = vcombine.high %v4770_v43, %v4774_v8  ;;  %v4805_v60 = vld [vmem:[#allocation7 + $0x760] sm:$0xff] }
 0x663   :  { %6458 = vmatpush1.bf16.msra.mxu0 %v9515_v15  ;;  %6540 = vmatpush1.bf16.msra.mxu1 %v9517_v17  ;;  %v4778_v15 = vld [vmem:[#allocation7 + $0x688] sm:$0xff] }
 0x664   :  { %6459 = vmatprep.subr.bf16.mxu0 %v9524_v19  ;;  %6541 = vmatprep.subr.bf16.mxu1 %v9526_v22  ;;  %v4782_v17 = vld [vmem:[#allocation7 + $0x6a8] sm:$0xff]  ;;  %v9555_v19 = vcombine.low %v4769_v40, %v4773_v1  ;;  %v9557_v22 = vcombine.low %v4770_v43, %v4774_v8  ;;  %v9588_v40 = vcombine.high %v4801_v59, %v4805_v60  ;;  %v4809_v43 = vld [vmem:[#allocation7 + $0x780] sm:$0xff] }
 0x665   :  { %v9566_v24 = vcombine.high %v4778_v15, %v4782_v17  ;;  %v4813_v8 = vld [vmem:[#allocation7 + $0x7a0] sm:$0xff] }
 0x667   :  { %6460 = vmatpush1.bf16.msra.mxu0 %v9523_v50  ;;  %6542 = vmatpush1.bf16.msra.mxu1 %v9525_v26  ;;  %v4786_v50 = vld [vmem:[#allocation7 + $0x6c8] sm:$0xff] }
 0x668   :  { %6461 = vmatprep.subr.bf16.mxu0 %v9532_v5  ;;  %6543 = vmatprep.subr.bf16.mxu1 %v9534_v29  ;;  %v4790_v26 = vld [vmem:[#allocation7 + $0x6e8] sm:$0xff]  ;;  %v9563_v5 = vcombine.low %v4777_v14, %v4781_v41  ;;  %v9565_v29 = vcombine.low %v4778_v15, %v4782_v17  ;;  %v2948_v14 = vrot.slane %v11439_v55, %v11278_v31  ;;  %v4817_v17 = vld [vmem:[#allocation7 + $0x7c0] sm:$0xff] }
 0x669   :  { %v9574_v35 = vcombine.high %v4786_v50, %v4790_v26  ;;  %v9596_v41 = vcombine.high %v4809_v43, %v4813_v8 }
 0x66b   :  { %6462 = vmatpush1.bf16.msra.mxu0 %v9531_v52  ;;  %6544 = vmatpush1.bf16.msra.mxu1 %v9533_v54  ;;  %v4794_v52 = vld [vmem:[#allocation7 + $0x708] sm:$0xff] }
 0x66c   :  { %6463 = vmatprep.subr.bf16.mxu0 %v9540_v9  ;;  %6545 = vmatprep.subr.bf16.mxu1 %v9542_v56  ;;  %v4798_v54 = vld [vmem:[#allocation7 + $0x728] sm:$0xff]  ;;  %v9571_v9 = vcombine.low %v4785_v49, %v4789_v25  ;;  %v9573_v56 = vcombine.low %v4786_v50, %v4790_v26  ;;  %v9595_v25 = vcombine.low %v4809_v43, %v4813_v8 }
 0x66d   :  { %v9582_v58 = vcombine.high %v4794_v52, %v4798_v54 }
 0x66f   :  { %6464 = vmatpush1.bf16.msra.mxu0 %v9539_v61  ;;  %6546 = vmatpush1.bf16.msra.mxu1 %v9541_v16  ;;  %v4802_v61 = vld [vmem:[#allocation7 + $0x748] sm:$0xff] }
 0x670   :  { %6465 = vmatprep.subr.bf16.mxu0 %v9548_v62  ;;  %6547 = vmatprep.subr.bf16.mxu1 %v9550_v63  ;;  %v4806_v16 = vld [vmem:[#allocation7 + $0x768] sm:$0xff]  ;;  %v9579_v62 = vcombine.low %v4793_v46, %v4797_v47  ;;  %v9581_v63 = vcombine.low %v4794_v52, %v4798_v54 }
 0x671   :  { %v9590_v1 = vcombine.high %v4802_v61, %v4806_v16 }
 0x673   :  { %6466 = vmatpush1.bf16.msra.mxu0 %v9547_v42  ;;  %6548 = vmatpush1.bf16.msra.mxu1 %v9549_v11  ;;  %v4810_v42 = vld [vmem:[#allocation7 + $0x788] sm:$0xff] }
 0x674   :  { %6467 = vmatprep.subr.bf16.mxu0 %v9556_v12  ;;  %6549 = vmatprep.subr.bf16.mxu1 %v9558_v13  ;;  %v4814_v11 = vld [vmem:[#allocation7 + $0x7a8] sm:$0xff]  ;;  %v9587_v12 = vcombine.low %v4801_v59, %v4805_v60  ;;  %v9589_v13 = vcombine.low %v4802_v61, %v4806_v16  ;;  %v9360_v60 = vcombine.high %v11467_v32, %v11469_v4 }
 0x675   :  { %v9598_v15 = vcombine.high %v4810_v42, %v4814_v11  ;;  %v9597_v50 = vcombine.low %v4810_v42, %v4814_v11  ;;  %v9362_v61 = vcombine.high %v11471_v51, %v11477_v36  ;;  %v4603_v36 = vld [vmem:[#allocation7 + $0x110] sm:$0xff] }
 0x677   :  { %6468 = vmatpush1.bf16.msra.mxu0 %v9555_v19  ;;  %6550 = vmatpush1.bf16.msra.mxu1 %v9557_v22  ;;  %v2952_v19 = vrot.slane %v11439_v55, %v11283_v33  ;;  %v4821_v22 = vld [vmem:[#allocation7 + $0x7e0] sm:$0xff] }
 0x678   :  { %6469 = vmatprep.subr.bf16.mxu0 %v9564_v0  ;;  %6551 = vmatprep.subr.bf16.mxu1 %v9566_v24  ;;  %v4818_v0 = vld [vmem:[#allocation7 + $0x7c8] sm:$0xff] }
 0x679   :  { %v4822_v24 = vld [vmem:[#allocation7 + $0x7e8] sm:$0xff] }
 0x67a   :  { %v9605_v59 = vcombine.low %v4818_v0, %v4822_v24 }
 0x67b   :  { %6470 = vmatpush1.bf16.msra.mxu0 %v9563_v5  ;;  %6552 = vmatpush1.bf16.msra.mxu1 %v9565_v29 }
 0x67c   :  { %6471 = vmatprep.subr.bf16.mxu0 %v9572_v48  ;;  %6553 = vmatprep.subr.bf16.mxu1 %v9574_v35  ;;  %v9604_v48 = vcombine.high %v4817_v17, %v4821_v22  ;;  %v9606_v35 = vcombine.high %v4818_v0, %v4822_v24  ;;  %v4584_v0 = vld [vmem:[#allocation7 + $0x78] sm:$0xff] }
 0x67f   :  { %6472 = vmatpush1.bf16.msra.mxu0 %v9571_v9  ;;  %6554 = vmatpush1.bf16.msra.mxu1 %v9573_v56 }
 0x680   :  { %6473 = vmatprep.subr.bf16.mxu0 %v9580_v57  ;;  %6555 = vmatprep.subr.bf16.mxu1 %v9582_v58  ;;  %v9603_v58 = vcombine.low %v4817_v17, %v4821_v22  ;;  %v4579_v17 = vld [vmem:[#allocation7 + $0x50] sm:$0xff]  ;;  %v4580_v22 = vld [vmem:[#allocation7 + $0x58] sm:$0xff] }
 0x683   :  { %6474 = vmatpush1.bf16.msra.mxu0 %v9579_v62  ;;  %6556 = vmatpush1.bf16.msra.mxu1 %v9581_v63 }
 0x684   :  { %6475 = vmatprep.subr.bf16.mxu0 %v9588_v40  ;;  %6557 = vmatprep.subr.bf16.mxu1 %v9590_v1 }
 0x687   :  { %v4435_v49 = vpop.f32.mrb[20].mxu0  ;;  %6476 = vmatpush1.bf16.msra.mxu0 %v9587_v12  ;;  %6558 = vmatpush1.bf16.msra.mxu1 %v9589_v13 }
 0x688   :  { %v4436_v26 = vadd.f32 %v4435_v49, %v2948_v14  ;;  %v4476_v5 = vpop.f32.mrb[20].mxu1  ;;  %v4437_v29 = vpop.f32.mrb[21].mxu0  ;;  %6477 = vmatprep.subr.bf16.mxu0 %v9596_v41  ;;  %6559 = vmatprep.subr.bf16.mxu1 %v9598_v15 }
 0x689   :  { %v4438_v46 = vadd.f32 %v4437_v29, %v2952_v19  ;;  %v4478_v47 = vpop.f32.mrb[21].mxu1  ;;  %v4439_v52 = vpop.f32.mrb[22].mxu0  ;;  %v4583_v19 = vld [vmem:[#allocation7 + $0x70] sm:$0xff] }
 0x68a   :  { %v4477_v54 = vadd.f32 %v4476_v5, %v4436_v26  ;;  %v4480_v55 = vpop.f32.mrb[22].mxu1  ;;  %v4440_v9 = vpop.f32.mrb[23].mxu0  ;;  %v4588_v26 = vld [vmem:[#allocation7 + $0x98] sm:$0xff]  ;;  %v9367_v29 = vcombine.low %v4579_v17, %v4583_v19  ;;  %v4599_v52 = vld [vmem:[#allocation7 + $0xf0] sm:$0xff] }
 0x68b   :  { %v4479_v56 = vadd.f32 %v4478_v47, %v4438_v46  ;;  %v4481_v57 = vpop.f32.mrb[23].mxu1  ;;  %6478 = vmatpush1.bf16.msra.mxu0 %v9595_v25  ;;  %6560 = vmatpush1.bf16.msra.mxu1 %v9597_v50  ;;  %v4587_v25 = vld [vmem:[#allocation7 + $0x90] sm:$0xff]  ;;  %v4592_v5 = vld [vmem:[#allocation7 + $0xb8] sm:$0xff] }
 0x68c   :  { %6479 = vmatprep.subr.bf16.mxu0 %v9604_v48  ;;  %6561 = vmatprep.subr.bf16.mxu1 %v9606_v35  ;;  %v4591_v50 = vld [vmem:[#allocation7 + $0xb0] sm:$0xff]  ;;  %v9369_v48 = vcombine.low %v4580_v22, %v4584_v0  ;;  %v9378_v46 = vcombine.high %v4588_v26, %v4592_v5  ;;  %v4600_v55 = vld [vmem:[#allocation7 + $0xf8] sm:$0xff]  ;;  %v9377_v4 = vcombine.low %v4588_v26, %v4592_v5 }
 0x68d   :  { %v9376_v35 = vcombine.high %v4587_v25, %v4591_v50  ;;  %v4595_v47 = vld [vmem:[#allocation7 + $0xd0] sm:$0xff]  ;;  %v9375_v32 = vcombine.low %v4587_v25, %v4591_v50  ;;  %v4604_v9 = vld [vmem:[#allocation7 + $0x118] sm:$0xff] }
 0x68e   :  { %v9384_v51 = vcombine.high %v4595_v47, %v4599_v52  ;;  %v4628_v25 = vld [vmem:[#allocation7 + $0x1d8] sm:$0xff] }
 0x68f   :  { %6480 = vmatpush1.bf16.msra.mxu0 %v9603_v58  ;;  %6562 = vmatpush1.bf16.msra.mxu1 %v9605_v59 }
 0x690   :  { %6572 = vmatprep.subr.bf16.mxu0 %v9360_v60  ;;  %6654 = vmatprep.subr.bf16.mxu1 %v9362_v61  ;;  %v4611_v60 = vld [vmem:[#allocation7 + $0x150] sm:$0xff] }
 0x691   :  { %v4615_v61 = vld [vmem:[#allocation7 + $0x170] sm:$0xff] }
 0x6c7   :  { %v4517_v16 = vpop.f32.mrb[24].mxu0 }
 0x6c8   :  { %v4518_v62 = vadd.f32 %v4517_v16, %v4477_v54  ;;  %v4558_v63 = vpop.f32.mrb[24].mxu1  ;;  %v4519_v40 = vpop.f32.mrb[25].mxu0  ;;  %v4596_v54 = vld [vmem:[#allocation7 + $0xd8] sm:$0xff] }
 0x6c9   :  { %v4520_v1 = vadd.f32 %v4519_v40, %v4479_v56  ;;  %v4560_v43 = vpop.f32.mrb[25].mxu1  ;;  %v4521_v8 = vpop.f32.mrb[26].mxu0  ;;  %v9383_v56 = vcombine.low %v4595_v47, %v4599_v52  ;;  %v9385_v57 = vcombine.low %v4596_v54, %v4600_v55  ;;  %v4612_v16 = vld [vmem:[#allocation7 + $0x158] sm:$0xff] }
 0x6ca   :  { %v4559_v42 = vadd.f32 %v4558_v63, %v4518_v62  ;;  %v4562_v11 = vpop.f32.mrb[26].mxu1  ;;  %v4522_v12 = vpop.f32.mrb[27].mxu0  ;;  %v4616_v62 = vld [vmem:[#allocation7 + $0x178] sm:$0xff]  ;;  %v4619_v8 = vld [vmem:[#allocation7 + $0x190] sm:$0xff] }
 0x6cb   :  { %v4561_v13 = vadd.f32 %v4560_v43, %v4520_v1  ;;  %v4563_v14 = vpop.f32.mrb[27].mxu1  ;;  %v9400_v1 = vcombine.high %v4611_v60, %v4615_v61  ;;  %v9402_v43 = vcombine.high %v4612_v16, %v4616_v62  ;;  %v4620_v11 = vld [vmem:[#allocation7 + $0x198] sm:$0xff] }
 0x6cc   :  { %v11492_v41 = vadd.f32 %v4559_v42, %v11341_v7  ;;  %v9368_v7 = vcombine.high %v4579_v17, %v4583_v19  ;;  %v4623_v42 = vld [vmem:[#allocation7 + $0x1b0] sm:$0xff]  ;;  %v4624_v12 = vld [vmem:[#allocation7 + $0x1b8] sm:$0xff]  ;;  %v9401_v14 = vcombine.low %v4612_v16, %v4616_v62 }
 0x6cd   :  { %v11495_v15 = vadd.f32 %v4561_v13, %v11343_v39  ;;  %v9370_v39 = vcombine.high %v4580_v22, %v4584_v0  ;;  %v9399_v13 = vcombine.low %v4611_v60, %v4615_v61  ;;  %v9408_v17 = vcombine.high %v4619_v8, %v4623_v42  ;;  %v4627_v22 = vld [vmem:[#allocation7 + $0x1d0] sm:$0xff] }
 0x6ce   :  { %v11503_v49 = vpack.c.bf16 %v11492_v41, %v11492_v41  ;;  %v9410_v19 = vcombine.high %v4620_v11, %v4624_v12  ;;  %v4631_v0 = vld [vmem:[#allocation7 + $0x1f0] sm:$0xff]  ;;  %v9409_v50 = vcombine.low %v4620_v11, %v4624_v12 }
 0x6cf   :  { %v11499_v24 = vpack.c.bf16 %v11495_v15, %v11495_v15  ;;  %v9416_v26 = vcombine.high %v4627_v22, %v4631_v0  ;;  %v9415_v47 = vcombine.low %v4627_v22, %v4631_v0 }
 0x6d1   :  { %6481 = vmatprep.mubr.bf16.mxu0 %v11499_v24  ;;  %6563 = vmatprep.mubr.bf16.mxu1 %v11499_v24 }
 0x6d2   :  { %6482 = vmatmul.mubr.bf16.vlgmr.msra.gmra.mrb[28].mxu0 %v11503_v49  ;;  %6564 = vmatmul.mubr.bf16.vlgmr.msra.gmra.mrb[28].mxu1 %v11503_v49 }
 0x6d3   :  { %6573 = vmatpush1.bf16.msra.mxu0 %v9359_v53  ;;  %6655 = vmatpush1.bf16.msra.mxu1 %v9361_v44  ;;  %v9386_v53 = vcombine.high %v4596_v54, %v4600_v55  ;;  %v4607_v44 = vld [vmem:[#allocation7 + $0x130] sm:$0xff] }
 0x6d4   :  { %6604 = vmatprep.mubr.bf16.mxu0 %v11461_v10  ;;  %6686 = vmatprep.mubr.bf16.mxu1 %v11461_v10  ;;  %v4608_v10 = vld [vmem:[#allocation7 + $0x138] sm:$0xff]  ;;  %v9392_v58 = vcombine.high %v4603_v36, %v4607_v44  ;;  %v9391_v63 = vcombine.low %v4603_v36, %v4607_v44 }
 0x6d5   :  { %6574 = vmatprep.subr.bf16.mxu0 %v9368_v7  ;;  %6656 = vmatprep.subr.bf16.mxu1 %v9370_v39  ;;  %v9394_v59 = vcombine.high %v4604_v9, %v4608_v10  ;;  %v9393_v40 = vcombine.low %v4604_v9, %v4608_v10  ;;  %v4632_v7 = vld [vmem:[#allocation7 + $0x1f8] sm:$0xff]  ;;  %v9407_v39 = vcombine.low %v4619_v8, %v4623_v42 }
 0x6d6   :  { %v9418_v5 = vcombine.high %v4628_v25, %v4632_v7  ;;  %v9417_v52 = vcombine.low %v4628_v25, %v4632_v7 }
 0x6d7   :  { %6575 = vmatpush1.bf16.msra.mxu0 %v9367_v29  ;;  %6657 = vmatpush1.bf16.msra.mxu1 %v9369_v48  ;;  %v4635_v29 = vld [vmem:[#allocation7 + $0x210] sm:$0xff] }
 0x6d8   :  { %6576 = vmatprep.subr.bf16.mxu0 %v9376_v35  ;;  %6658 = vmatprep.subr.bf16.mxu1 %v9378_v46  ;;  %v4639_v48 = vld [vmem:[#allocation7 + $0x230] sm:$0xff]  ;;  %v4636_v35 = vld [vmem:[#allocation7 + $0x218] sm:$0xff] }
 0x6d9   :  { %v4640_v46 = vld [vmem:[#allocation7 + $0x238] sm:$0xff]  ;;  %v9424_v54 = vcombine.high %v4635_v29, %v4639_v48  ;;  %v9423_v36 = vcombine.low %v4635_v29, %v4639_v48 }
 0x6da   :  { %v9426_v55 = vcombine.high %v4636_v35, %v4640_v46  ;;  %v9425_v44 = vcombine.low %v4636_v35, %v4640_v46 }
 0x6db   :  { %6577 = vmatpush1.bf16.msra.mxu0 %v9375_v32  ;;  %6659 = vmatpush1.bf16.msra.mxu1 %v9377_v4  ;;  %v4643_v32 = vld [vmem:[#allocation7 + $0x250] sm:$0xff] }
 0x6dc   :  { %6578 = vmatprep.subr.bf16.mxu0 %v9384_v51  ;;  %6660 = vmatprep.subr.bf16.mxu1 %v9386_v53  ;;  %v4647_v4 = vld [vmem:[#allocation7 + $0x270] sm:$0xff]  ;;  %v4644_v51 = vld [vmem:[#allocation7 + $0x258] sm:$0xff] }
 0x6dd   :  { %v4648_v53 = vld [vmem:[#allocation7 + $0x278] sm:$0xff]  ;;  %v9432_v9 = vcombine.high %v4643_v32, %v4647_v4  ;;  %v9431_v60 = vcombine.low %v4643_v32, %v4647_v4 }
 0x6de   :  { %v9434_v10 = vcombine.high %v4644_v51, %v4648_v53  ;;  %v9433_v61 = vcombine.low %v4644_v51, %v4648_v53 }
 0x6df   :  { %6579 = vmatpush1.bf16.msra.mxu0 %v9383_v56  ;;  %6661 = vmatpush1.bf16.msra.mxu1 %v9385_v57  ;;  %v4651_v56 = vld [vmem:[#allocation7 + $0x290] sm:$0xff] }
 0x6e0   :  { %6580 = vmatprep.subr.bf16.mxu0 %v9392_v58  ;;  %6662 = vmatprep.subr.bf16.mxu1 %v9394_v59  ;;  %v4655_v57 = vld [vmem:[#allocation7 + $0x2b0] sm:$0xff]  ;;  %v4652_v58 = vld [vmem:[#allocation7 + $0x298] sm:$0xff] }
 0x6e1   :  { %v4656_v59 = vld [vmem:[#allocation7 + $0x2b8] sm:$0xff]  ;;  %v9440_v16 = vcombine.high %v4651_v56, %v4655_v57  ;;  %v9439_v8 = vcombine.low %v4651_v56, %v4655_v57 }
 0x6e2   :  { %v9442_v62 = vcombine.high %v4652_v58, %v4656_v59  ;;  %v9441_v42 = vcombine.low %v4652_v58, %v4656_v59 }
 0x6e3   :  { %6581 = vmatpush1.bf16.msra.mxu0 %v9391_v63  ;;  %6663 = vmatpush1.bf16.msra.mxu1 %v9393_v40  ;;  %v4659_v63 = vld [vmem:[#allocation7 + $0x2d0] sm:$0xff] }
 0x6e4   :  { %6582 = vmatprep.subr.bf16.mxu0 %v9400_v1  ;;  %6664 = vmatprep.subr.bf16.mxu1 %v9402_v43  ;;  %v4663_v40 = vld [vmem:[#allocation7 + $0x2f0] sm:$0xff]  ;;  %v4660_v1 = vld [vmem:[#allocation7 + $0x2d8] sm:$0xff] }
 0x6e5   :  { %v4664_v43 = vld [vmem:[#allocation7 + $0x2f8] sm:$0xff]  ;;  %v9448_v11 = vcombine.high %v4659_v63, %v4663_v40  ;;  %v9447_v22 = vcombine.low %v4659_v63, %v4663_v40 }
 0x6e6   :  { %v9450_v12 = vcombine.high %v4660_v1, %v4664_v43  ;;  %v9449_v0 = vcombine.low %v4660_v1, %v4664_v43 }
 0x6e7   :  { %6583 = vmatpush1.bf16.msra.mxu0 %v9399_v13  ;;  %6665 = vmatpush1.bf16.msra.mxu1 %v9401_v14  ;;  %v4667_v13 = vld [vmem:[#allocation7 + $0x310] sm:$0xff] }
 0x6e8   :  { %6584 = vmatprep.subr.bf16.mxu0 %v9408_v17  ;;  %6666 = vmatprep.subr.bf16.mxu1 %v9410_v19  ;;  %v4671_v14 = vld [vmem:[#allocation7 + $0x330] sm:$0xff]  ;;  %v4668_v17 = vld [vmem:[#allocation7 + $0x318] sm:$0xff] }
 0x6e9   :  { %v4672_v19 = vld [vmem:[#allocation7 + $0x338] sm:$0xff]  ;;  %v9456_v25 = vcombine.high %v4667_v13, %v4671_v14  ;;  %v9455_v29 = vcombine.low %v4667_v13, %v4671_v14 }
 0x6ea   :  { %v9458_v7 = vcombine.high %v4668_v17, %v4672_v19  ;;  %v9457_v48 = vcombine.low %v4668_v17, %v4672_v19 }
 0x6eb   :  { %6585 = vmatpush1.bf16.msra.mxu0 %v9407_v39  ;;  %6667 = vmatpush1.bf16.msra.mxu1 %v9409_v50  ;;  %v4675_v39 = vld [vmem:[#allocation7 + $0x350] sm:$0xff] }
 0x6ec   :  { %6586 = vmatprep.subr.bf16.mxu0 %v9416_v26  ;;  %6668 = vmatprep.subr.bf16.mxu1 %v9418_v5  ;;  %v4679_v50 = vld [vmem:[#allocation7 + $0x370] sm:$0xff]  ;;  %v4676_v26 = vld [vmem:[#allocation7 + $0x358] sm:$0xff] }
 0x6ed   :  { %v4680_v5 = vld [vmem:[#allocation7 + $0x378] sm:$0xff]  ;;  %v9464_v35 = vcombine.high %v4675_v39, %v4679_v50  ;;  %v9463_v32 = vcombine.low %v4675_v39, %v4679_v50 }
 0x6ee   :  { %v9466_v46 = vcombine.high %v4676_v26, %v4680_v5  ;;  %v9465_v4 = vcombine.low %v4676_v26, %v4680_v5 }
 0x6ef   :  { %6587 = vmatpush1.bf16.msra.mxu0 %v9415_v47  ;;  %6669 = vmatpush1.bf16.msra.mxu1 %v9417_v52  ;;  %v4683_v47 = vld [vmem:[#allocation7 + $0x390] sm:$0xff] }
 0x6f0   :  { %6588 = vmatprep.subr.bf16.mxu0 %v9424_v54  ;;  %6670 = vmatprep.subr.bf16.mxu1 %v9426_v55  ;;  %v4687_v52 = vld [vmem:[#allocation7 + $0x3b0] sm:$0xff]  ;;  %v4684_v54 = vld [vmem:[#allocation7 + $0x398] sm:$0xff] }
 0x6f1   :  { %v4688_v55 = vld [vmem:[#allocation7 + $0x3b8] sm:$0xff]  ;;  %v9472_v51 = vcombine.high %v4683_v47, %v4687_v52  ;;  %v9471_v56 = vcombine.low %v4683_v47, %v4687_v52 }
 0x6f2   :  { %v9474_v53 = vcombine.high %v4684_v54, %v4688_v55  ;;  %v9473_v57 = vcombine.low %v4684_v54, %v4688_v55  ;;  %v4731_v55 = vld [vmem:[#allocation7 + $0x510] sm:$0xff] }
 0x6f3   :  { %6589 = vmatpush1.bf16.msra.mxu0 %v9423_v36  ;;  %6671 = vmatpush1.bf16.msra.mxu1 %v9425_v44  ;;  %v4691_v36 = vld [vmem:[#allocation7 + $0x3d0] sm:$0xff] }
 0x6f4   :  { %6590 = vmatprep.subr.bf16.mxu0 %v9432_v9  ;;  %6672 = vmatprep.subr.bf16.mxu1 %v9434_v10  ;;  %v4695_v44 = vld [vmem:[#allocation7 + $0x3f0] sm:$0xff]  ;;  %v4692_v9 = vld [vmem:[#allocation7 + $0x3d8] sm:$0xff] }
 0x6f5   :  { %v4696_v10 = vld [vmem:[#allocation7 + $0x3f8] sm:$0xff]  ;;  %v9480_v58 = vcombine.high %v4691_v36, %v4695_v44  ;;  %v9479_v63 = vcombine.low %v4691_v36, %v4695_v44 }
 0x6f6   :  { %v9482_v59 = vcombine.high %v4692_v9, %v4696_v10  ;;  %v9481_v40 = vcombine.low %v4692_v9, %v4696_v10  ;;  %v4739_v9 = vld [vmem:[#allocation7 + $0x550] sm:$0xff] }
 0x6f7   :  { %6591 = vmatpush1.bf16.msra.mxu0 %v9431_v60  ;;  %6673 = vmatpush1.bf16.msra.mxu1 %v9433_v61  ;;  %v4699_v60 = vld [vmem:[#allocation7 + $0x410] sm:$0xff] }
 0x6f8   :  { %6592 = vmatprep.subr.bf16.mxu0 %v9440_v16  ;;  %6674 = vmatprep.subr.bf16.mxu1 %v9442_v62  ;;  %v4703_v61 = vld [vmem:[#allocation7 + $0x430] sm:$0xff]  ;;  %v4700_v16 = vld [vmem:[#allocation7 + $0x418] sm:$0xff] }
 0x6f9   :  { %v4704_v62 = vld [vmem:[#allocation7 + $0x438] sm:$0xff]  ;;  %v9488_v1 = vcombine.high %v4699_v60, %v4703_v61  ;;  %v9487_v13 = vcombine.low %v4699_v60, %v4703_v61  ;;  %v4743_v10 = vld [vmem:[#allocation7 + $0x570] sm:$0xff] }
 0x6fa   :  { %v9490_v43 = vcombine.high %v4700_v16, %v4704_v62  ;;  %v9489_v14 = vcombine.low %v4700_v16, %v4704_v62  ;;  %v9528_v60 = vcombine.high %v4739_v9, %v4743_v10  ;;  %v4747_v16 = vld [vmem:[#allocation7 + $0x590] sm:$0xff] }
 0x6fb   :  { %6593 = vmatpush1.bf16.msra.mxu0 %v9439_v8  ;;  %6675 = vmatpush1.bf16.msra.mxu1 %v9441_v42  ;;  %v4707_v8 = vld [vmem:[#allocation7 + $0x450] sm:$0xff] }
 0x6fc   :  { %6594 = vmatprep.subr.bf16.mxu0 %v9448_v11  ;;  %6676 = vmatprep.subr.bf16.mxu1 %v9450_v12  ;;  %v4711_v42 = vld [vmem:[#allocation7 + $0x470] sm:$0xff]  ;;  %v4708_v11 = vld [vmem:[#allocation7 + $0x458] sm:$0xff] }
 0x6fd   :  { %v4712_v12 = vld [vmem:[#allocation7 + $0x478] sm:$0xff]  ;;  %v9496_v17 = vcombine.high %v4707_v8, %v4711_v42  ;;  %v9495_v39 = vcombine.low %v4707_v8, %v4711_v42  ;;  %v4751_v62 = vld [vmem:[#allocation7 + $0x5b0] sm:$0xff] }
 0x6fe   :  { %v9498_v19 = vcombine.high %v4708_v11, %v4712_v12  ;;  %v9497_v50 = vcombine.low %v4708_v11, %v4712_v12  ;;  %v9536_v8 = vcombine.high %v4747_v16, %v4751_v62  ;;  %v4755_v11 = vld [vmem:[#allocation7 + $0x5d0] sm:$0xff] }
 0x6ff   :  { %6595 = vmatpush1.bf16.msra.mxu0 %v9447_v22  ;;  %6677 = vmatpush1.bf16.msra.mxu1 %v9449_v0  ;;  %v4715_v22 = vld [vmem:[#allocation7 + $0x490] sm:$0xff] }
 0x700   :  { %6596 = vmatprep.subr.bf16.mxu0 %v9456_v25  ;;  %6678 = vmatprep.subr.bf16.mxu1 %v9458_v7  ;;  %v4719_v0 = vld [vmem:[#allocation7 + $0x4b0] sm:$0xff]  ;;  %v4716_v25 = vld [vmem:[#allocation7 + $0x498] sm:$0xff] }
 0x701   :  { %v4720_v7 = vld [vmem:[#allocation7 + $0x4b8] sm:$0xff]  ;;  %v9504_v26 = vcombine.high %v4715_v22, %v4719_v0  ;;  %v4759_v12 = vld [vmem:[#allocation7 + $0x5f0] sm:$0xff] }
 0x702   :  { %v9506_v5 = vcombine.high %v4716_v25, %v4720_v7  ;;  %v9505_v47 = vcombine.low %v4716_v25, %v4720_v7  ;;  %v4763_v25 = vld [vmem:[#allocation7 + $0x610] sm:$0xff] }
 0x703   :  { %6597 = vmatpush1.bf16.msra.mxu0 %v9455_v29  ;;  %6679 = vmatpush1.bf16.msra.mxu1 %v9457_v48  ;;  %v4723_v29 = vld [vmem:[#allocation7 + $0x4d0] sm:$0xff] }
 0x704   :  { %6598 = vmatprep.subr.bf16.mxu0 %v9464_v35  ;;  %6680 = vmatprep.subr.bf16.mxu1 %v9466_v46  ;;  %v4727_v48 = vld [vmem:[#allocation7 + $0x4f0] sm:$0xff]  ;;  %v4724_v35 = vld [vmem:[#allocation7 + $0x4d8] sm:$0xff] }
 0x705   :  { %v4728_v46 = vld [vmem:[#allocation7 + $0x4f8] sm:$0xff]  ;;  %v9512_v52 = vcombine.high %v4723_v29, %v4727_v48  ;;  %v4767_v7 = vld [vmem:[#allocation7 + $0x630] sm:$0xff] }
 0x706   :  { %v9514_v54 = vcombine.high %v4724_v35, %v4728_v46 }
 0x707   :  { %6599 = vmatpush1.bf16.msra.mxu0 %v9463_v32  ;;  %6681 = vmatpush1.bf16.msra.mxu1 %v9465_v4  ;;  %v4735_v32 = vld [vmem:[#allocation7 + $0x530] sm:$0xff]  ;;  %v4736_v4 = vld [vmem:[#allocation7 + $0x538] sm:$0xff] }
 0x708   :  { %6600 = vmatprep.subr.bf16.mxu0 %v9472_v51  ;;  %6682 = vmatprep.subr.bf16.mxu1 %v9474_v53  ;;  %v9511_v51 = vcombine.low %v4723_v29, %v4727_v48  ;;  %v9513_v53 = vcombine.low %v4724_v35, %v4728_v46  ;;  %v9520_v36 = vcombine.high %v4731_v55, %v4735_v32  ;;  %v4771_v35 = vld [vmem:[#allocation7 + $0x650] sm:$0xff] }
 0x709   :  { %v9552_v29 = vcombine.high %v4763_v25, %v4767_v7  ;;  %v4775_v46 = vld [vmem:[#allocation7 + $0x670] sm:$0xff] }
 0x70b   :  { %6601 = vmatpush1.bf16.msra.mxu0 %v9471_v56  ;;  %6683 = vmatpush1.bf16.msra.mxu1 %v9473_v57  ;;  %v4740_v56 = vld [vmem:[#allocation7 + $0x558] sm:$0xff] }
 0x70c   :  { %6602 = vmatprep.subr.bf16.mxu0 %v9480_v58  ;;  %6684 = vmatprep.subr.bf16.mxu1 %v9482_v59  ;;  %v4744_v57 = vld [vmem:[#allocation7 + $0x578] sm:$0xff]  ;;  %v9519_v58 = vcombine.low %v4731_v55, %v4735_v32  ;;  %v9560_v55 = vcombine.high %v4771_v35, %v4775_v46 }
 0x70d   :  { %v9530_v61 = vcombine.high %v4740_v56, %v4744_v57 }
 0x70f   :  { %6603 = vmatpush1.bf16.msra.mxu0 %v9479_v63  ;;  %6685 = vmatpush1.bf16.msra.mxu1 %v9481_v40  ;;  %v4748_v63 = vld [vmem:[#allocation7 + $0x598] sm:$0xff] }
 0x710   :  { %6613 = vmatprep.subr.bf16.mxu0 %v9488_v1  ;;  %6695 = vmatprep.subr.bf16.mxu1 %v9490_v43  ;;  %v4752_v40 = vld [vmem:[#allocation7 + $0x5b8] sm:$0xff]  ;;  %v9527_v1 = vcombine.low %v4739_v9, %v4743_v10  ;;  %v9529_v43 = vcombine.low %v4740_v56, %v4744_v57  ;;  %v4787_v56 = vld [vmem:[#allocation7 + $0x6d0] sm:$0xff] }
 0x711   :  { %v9538_v42 = vcombine.high %v4748_v63, %v4752_v40  ;;  %v4791_v57 = vld [vmem:[#allocation7 + $0x6f0] sm:$0xff] }
 0x712   :  { %6605 = vmatmul.mubr.bf16.vlgmr.msra.gmra.mrb[32].mxu0 %v11465_v45  ;;  %6687 = vmatmul.mubr.bf16.vlgmr.msra.gmra.mrb[32].mxu1 %v11465_v45  ;;  %v9503_v45 = vcombine.low %v4715_v22, %v4719_v0  ;;  %v9544_v22 = vcombine.high %v4755_v11, %v4759_v12 }
 0x713   :  { %6614 = vmatpush1.bf16.msra.mxu0 %v9487_v13  ;;  %6645 = vmatprep.mubr.bf16.mxu0 %v11499_v24  ;;  %v4756_v13 = vld [vmem:[#allocation7 + $0x5d8] sm:$0xff] }
 0x714   :  { %6696 = vmatpush1.bf16.msra.mxu1 %v9489_v14  ;;  %6727 = vmatprep.mubr.bf16.mxu1 %v11499_v24  ;;  %v4732_v24 = vld [vmem:[#allocation7 + $0x518] sm:$0xff] }
 0x715   :  { %6615 = vmatprep.subr.bf16.mxu0 %v9496_v17  ;;  %6697 = vmatprep.subr.bf16.mxu1 %v9498_v19  ;;  %v9522_v44 = vcombine.high %v4732_v24, %v4736_v4  ;;  %v9521_v59 = vcombine.low %v4732_v24, %v4736_v4  ;;  %v4760_v14 = vld [vmem:[#allocation7 + $0x5f8] sm:$0xff]  ;;  %v9535_v17 = vcombine.low %v4747_v16, %v4751_v62  ;;  %v4779_v24 = vld [vmem:[#allocation7 + $0x690] sm:$0xff] }
 0x716   :  { %v9537_v19 = vcombine.low %v4748_v63, %v4752_v40  ;;  %v9546_v0 = vcombine.high %v4756_v13, %v4760_v14  ;;  %v4783_v4 = vld [vmem:[#allocation7 + $0x6b0] sm:$0xff]  ;;  %v9576_v16 = vcombine.high %v4787_v56, %v4791_v57 }
 0x717   :  { %6616 = vmatpush1.bf16.msra.mxu0 %v9495_v39  ;;  %v4764_v39 = vld [vmem:[#allocation7 + $0x618] sm:$0xff]  ;;  %v9568_v9 = vcombine.high %v4779_v24, %v4783_v4  ;;  %v4795_v63 = vld [vmem:[#allocation7 + $0x710] sm:$0xff] }
 0x718   :  { %6698 = vmatpush1.bf16.msra.mxu1 %v9497_v50  ;;  %6617 = vmatprep.subr.bf16.mxu0 %v9504_v26  ;;  %v4768_v50 = vld [vmem:[#allocation7 + $0x638] sm:$0xff]  ;;  %v9543_v26 = vcombine.low %v4755_v11, %v4759_v12  ;;  %v4799_v40 = vld [vmem:[#allocation7 + $0x730] sm:$0xff] }
 0x719   :  { %6699 = vmatprep.subr.bf16.mxu1 %v9506_v5  ;;  %v9545_v5 = vcombine.low %v4756_v13, %v4760_v14  ;;  %v9554_v48 = vcombine.high %v4764_v39, %v4768_v50  ;;  %v9584_v11 = vcombine.high %v4795_v63, %v4799_v40  ;;  %v4803_v13 = vld [vmem:[#allocation7 + $0x750] sm:$0xff] }
 0x71a   :  { %v4807_v14 = vld [vmem:[#allocation7 + $0x770] sm:$0xff] }
 0x71b   :  { %6618 = vmatpush1.bf16.msra.mxu0 %v9503_v45  ;;  %v4772_v45 = vld [vmem:[#allocation7 + $0x658] sm:$0xff] }
 0x71c   :  { %6700 = vmatpush1.bf16.msra.mxu1 %v9505_v47  ;;  %6619 = vmatprep.subr.bf16.mxu0 %v9512_v52  ;;  %v4776_v47 = vld [vmem:[#allocation7 + $0x678] sm:$0xff]  ;;  %v9551_v52 = vcombine.low %v4763_v25, %v4767_v7  ;;  %v9592_v25 = vcombine.high %v4803_v13, %v4807_v14 }
 0x71d   :  { %6701 = vmatprep.subr.bf16.mxu1 %v9514_v54  ;;  %v9553_v54 = vcombine.low %v4764_v39, %v4768_v50  ;;  %v9562_v32 = vcombine.high %v4772_v45, %v4776_v47  ;;  %v4811_v39 = vld [vmem:[#allocation7 + $0x790] sm:$0xff] }
 0x71e   :  { %v4815_v50 = vld [vmem:[#allocation7 + $0x7b0] sm:$0xff] }
 0x71f   :  { %6620 = vmatpush1.bf16.msra.mxu0 %v9511_v51  ;;  %v4780_v51 = vld [vmem:[#allocation7 + $0x698] sm:$0xff] }
 0x720   :  { %6702 = vmatpush1.bf16.msra.mxu1 %v9513_v53  ;;  %6621 = vmatprep.subr.bf16.mxu0 %v9520_v36  ;;  %v4784_v53 = vld [vmem:[#allocation7 + $0x6b8] sm:$0xff]  ;;  %v9559_v36 = vcombine.low %v4771_v35, %v4775_v46  ;;  %v9600_v35 = vcombine.high %v4811_v39, %v4815_v50 }
 0x721   :  { %6703 = vmatprep.subr.bf16.mxu1 %v9522_v44  ;;  %v9561_v44 = vcombine.low %v4772_v45, %v4776_v47  ;;  %v9570_v10 = vcombine.high %v4780_v51, %v4784_v53  ;;  %v4819_v45 = vld [vmem:[#allocation7 + $0x7d0] sm:$0xff] }
 0x722   :  { %v4823_v47 = vld [vmem:[#allocation7 + $0x7f0] sm:$0xff] }
 0x723   :  { %6622 = vmatpush1.bf16.msra.mxu0 %v9519_v58  ;;  %v4788_v58 = vld [vmem:[#allocation7 + $0x6d8] sm:$0xff] }
 0x724   :  { %6704 = vmatpush1.bf16.msra.mxu1 %v9521_v59  ;;  %6623 = vmatprep.subr.bf16.mxu0 %v9528_v60  ;;  %v4792_v59 = vld [vmem:[#allocation7 + $0x6f8] sm:$0xff]  ;;  %v9567_v60 = vcombine.low %v4779_v24, %v4783_v4  ;;  %v9608_v24 = vcombine.high %v4819_v45, %v4823_v47 }
 0x725   :  { %6705 = vmatprep.subr.bf16.mxu1 %v9530_v61  ;;  %v9569_v61 = vcombine.low %v4780_v51, %v4784_v53  ;;  %v9578_v62 = vcombine.high %v4788_v58, %v4792_v59  ;;  %v9607_v51 = vcombine.low %v4819_v45, %v4823_v47  ;;  %v10545_v45 = vld [vmem:[#allocation9 + $0x324] ss:$16 sps:$4 sm:$0xff]   ;;  %v10540_v47 = vld [vmem:[#allocation9 + $0x120] ss:$16 sps:$4 sm:$0xff]  }
 0x727   :  { %6624 = vmatpush1.bf16.msra.mxu0 %v9527_v1  ;;  %v4796_v1 = vld [vmem:[#allocation7 + $0x718] sm:$0xff] }
 0x728   :  { %6706 = vmatpush1.bf16.msra.mxu1 %v9529_v43  ;;  %6625 = vmatprep.subr.bf16.mxu0 %v9536_v8  ;;  %v4800_v43 = vld [vmem:[#allocation7 + $0x738] sm:$0xff]  ;;  %v9575_v8 = vcombine.low %v4787_v56, %v4791_v57  ;;  %v10494_v56 = vld [vmem:[#allocation9 + $0x24] ss:$16 sps:$4 sm:$0xff]  }
 0x729   :  { %6707 = vmatprep.subr.bf16.mxu1 %v9538_v42  ;;  %v9577_v42 = vcombine.low %v4788_v58, %v4792_v59  ;;  %v9586_v12 = vcombine.high %v4796_v1, %v4800_v43  ;;  %v10497_v57 = vld [vmem:[#allocation9 + $0x224] ss:$16 sps:$4 sm:$0xff]   ;;  %v10492_v58 = vld [vmem:[#allocation9 + $0x20] ss:$16 sps:$4 sm:$0xff]  }
 0x72a   :  { %v10495_v59 = vld [vmem:[#allocation9 + $0x220] ss:$16 sps:$4 sm:$0xff]  }
 0x72b   :  { %6626 = vmatpush1.bf16.msra.mxu0 %v9535_v17  ;;  %v4804_v17 = vld [vmem:[#allocation7 + $0x758] sm:$0xff] }
 0x72c   :  { %6708 = vmatpush1.bf16.msra.mxu1 %v9537_v19  ;;  %6627 = vmatprep.subr.bf16.mxu0 %v9544_v22  ;;  %v4808_v19 = vld [vmem:[#allocation7 + $0x778] sm:$0xff]  ;;  %v9583_v22 = vcombine.low %v4795_v63, %v4799_v40  ;;  %v10506_v63 = vld [vmem:[#allocation9 + $0x64] ss:$16 sps:$4 sm:$0xff]  }
 0x72d   :  { %6709 = vmatprep.subr.bf16.mxu1 %v9546_v0  ;;  %v9585_v0 = vcombine.low %v4796_v1, %v4800_v43  ;;  %v9594_v7 = vcombine.high %v4804_v17, %v4808_v19  ;;  %v10509_v40 = vld [vmem:[#allocation9 + $0x264] ss:$16 sps:$4 sm:$0xff]   ;;  %v10504_v1 = vld [vmem:[#allocation9 + $0x60] ss:$16 sps:$4 sm:$0xff]  }
 0x72e   :  { %v10512_v43 = vld [vmem:[#allocation9 + $0x84] ss:$16 sps:$4 sm:$0xff]  }
 0x72f   :  { %6628 = vmatpush1.bf16.msra.mxu0 %v9543_v26  ;;  %v4812_v26 = vld [vmem:[#allocation7 + $0x798] sm:$0xff] }
 0x730   :  { %6710 = vmatpush1.bf16.msra.mxu1 %v9545_v5  ;;  %6629 = vmatprep.subr.bf16.mxu0 %v9552_v29  ;;  %v4816_v5 = vld [vmem:[#allocation7 + $0x7b8] sm:$0xff]  ;;  %v9591_v29 = vcombine.low %v4803_v13, %v4807_v14  ;;  %v10521_v13 = vld [vmem:[#allocation9 + $0x2a4] ss:$16 sps:$4 sm:$0xff]   ;;  %v10516_v14 = vld [vmem:[#allocation9 + $0xa0] ss:$16 sps:$4 sm:$0xff]  }
 0x731   :  { %6711 = vmatprep.subr.bf16.mxu1 %v9554_v48  ;;  %v9593_v48 = vcombine.low %v4804_v17, %v4808_v19  ;;  %v9602_v46 = vcombine.high %v4812_v26, %v4816_v5  ;;  %v10519_v17 = vld [vmem:[#allocation9 + $0x2a0] ss:$16 sps:$4 sm:$0xff]   ;;  %v10524_v19 = vld [vmem:[#allocation9 + $0xc4] ss:$16 sps:$4 sm:$0xff]  }
 0x733   :  { %6630 = vmatpush1.bf16.msra.mxu0 %v9551_v52  ;;  %v4820_v52 = vld [vmem:[#allocation7 + $0x7d8] sm:$0xff] }
 0x734   :  { %6712 = vmatpush1.bf16.msra.mxu1 %v9553_v54  ;;  %6631 = vmatprep.subr.bf16.mxu0 %v9560_v55  ;;  %v4824_v54 = vld [vmem:[#allocation7 + $0x7f8] sm:$0xff]  ;;  %v9599_v55 = vcombine.low %v4811_v39, %v4815_v50  ;;  %v10533_v39 = vld [vmem:[#allocation9 + $0x2e4] ss:$16 sps:$4 sm:$0xff]   ;;  %v10528_v50 = vld [vmem:[#allocation9 + $0xe0] ss:$16 sps:$4 sm:$0xff]  }
 0x735   :  { %6713 = vmatprep.subr.bf16.mxu1 %v9562_v32  ;;  %v9601_v32 = vcombine.low %v4812_v26, %v4816_v5  ;;  %v9610_v4 = vcombine.high %v4820_v52, %v4824_v54  ;;  %v9609_v53 = vcombine.low %v4820_v52, %v4824_v54  ;;  %v10531_v26 = vld [vmem:[#allocation9 + $0x2e0] ss:$16 sps:$4 sm:$0xff]   ;;  %v10536_v5 = vld [vmem:[#allocation9 + $0x104] ss:$16 sps:$4 sm:$0xff]  }
 0x736   :  { %v10543_v52 = vld [vmem:[#allocation9 + $0x320] ss:$16 sps:$4 sm:$0xff]   ;;  %v10548_v54 = vld [vmem:[#allocation9 + $0x144] ss:$16 sps:$4 sm:$0xff]  }
 0x737   :  { %6632 = vmatpush1.bf16.msra.mxu0 %v9559_v36  ;;  %v10488_v36 = vld [vmem:[#allocation9 + $0x4] ss:$16 sps:$4 sm:$0xff]  }
 0x738   :  { %6714 = vmatpush1.bf16.msra.mxu1 %v9561_v44  ;;  %6633 = vmatprep.subr.bf16.mxu0 %v9568_v9  ;;  %v10491_v44 = vld [vmem:[#allocation9 + $0x204] ss:$16 sps:$4 sm:$0xff]   ;;  %v10486_v9 = vld [vmem:[#allocation9] ss:$16 sps:$4 sm:$0xff]  }
 0x739   :  { %6715 = vmatprep.subr.bf16.mxu1 %v9570_v10  ;;  %v10489_v10 = vld [vmem:[#allocation9 + $0x200] ss:$16 sps:$4 sm:$0xff]  }
 0x73b   :  { %6634 = vmatpush1.bf16.msra.mxu0 %v9567_v60  ;;  %v10500_v60 = vld [vmem:[#allocation9 + $0x44] ss:$16 sps:$4 sm:$0xff]  }
 0x73c   :  { %6716 = vmatpush1.bf16.msra.mxu1 %v9569_v61  ;;  %6635 = vmatprep.subr.bf16.mxu0 %v9576_v16  ;;  %v10503_v61 = vld [vmem:[#allocation9 + $0x244] ss:$16 sps:$4 sm:$0xff]   ;;  %v10498_v16 = vld [vmem:[#allocation9 + $0x40] ss:$16 sps:$4 sm:$0xff]  }
 0x73d   :  { %6717 = vmatprep.subr.bf16.mxu1 %v9578_v62  ;;  %v10501_v62 = vld [vmem:[#allocation9 + $0x240] ss:$16 sps:$4 sm:$0xff]  }
 0x73f   :  { %6636 = vmatpush1.bf16.msra.mxu0 %v9575_v8  ;;  %v10515_v8 = vld [vmem:[#allocation9 + $0x284] ss:$16 sps:$4 sm:$0xff]  }
 0x740   :  { %6718 = vmatpush1.bf16.msra.mxu1 %v9577_v42  ;;  %6637 = vmatprep.subr.bf16.mxu0 %v9584_v11  ;;  %v10510_v42 = vld [vmem:[#allocation9 + $0x80] ss:$16 sps:$4 sm:$0xff]  }
 0x741   :  { %6719 = vmatprep.subr.bf16.mxu1 %v9586_v12  ;;  %v10513_v11 = vld [vmem:[#allocation9 + $0x280] ss:$16 sps:$4 sm:$0xff]   ;;  %v10518_v12 = vld [vmem:[#allocation9 + $0xa4] ss:$16 sps:$4 sm:$0xff]  }
 0x743   :  { %6638 = vmatpush1.bf16.msra.mxu0 %v9583_v22  ;;  %v10527_v22 = vld [vmem:[#allocation9 + $0x2c4] ss:$16 sps:$4 sm:$0xff]  }
 0x744   :  { %6720 = vmatpush1.bf16.msra.mxu1 %v9585_v0  ;;  %6639 = vmatprep.subr.bf16.mxu0 %v9592_v25  ;;  %v10522_v0 = vld [vmem:[#allocation9 + $0xc0] ss:$16 sps:$4 sm:$0xff]  }
 0x745   :  { %6721 = vmatprep.subr.bf16.mxu1 %v9594_v7  ;;  %v10525_v25 = vld [vmem:[#allocation9 + $0x2c0] ss:$16 sps:$4 sm:$0xff]   ;;  %v10530_v7 = vld [vmem:[#allocation9 + $0xe4] ss:$16 sps:$4 sm:$0xff]  }
 0x747   :  { %6640 = vmatpush1.bf16.msra.mxu0 %v9591_v29  ;;  %v10539_v29 = vld [vmem:[#allocation9 + $0x304] ss:$16 sps:$4 sm:$0xff]  }
 0x748   :  { %6722 = vmatpush1.bf16.msra.mxu1 %v9593_v48  ;;  %6641 = vmatprep.subr.bf16.mxu0 %v9600_v35  ;;  %v10534_v48 = vld [vmem:[#allocation9 + $0x100] ss:$16 sps:$4 sm:$0xff]  }
 0x749   :  { %6723 = vmatprep.subr.bf16.mxu1 %v9602_v46  ;;  %v10537_v35 = vld [vmem:[#allocation9 + $0x300] ss:$16 sps:$4 sm:$0xff]   ;;  %v10542_v46 = vld [vmem:[#allocation9 + $0x124] ss:$16 sps:$4 sm:$0xff]  }
 0x74b   :  { %6642 = vmatpush1.bf16.msra.mxu0 %v9599_v55  ;;  %v10551_v55 = vld [vmem:[#allocation9 + $0x344] ss:$16 sps:$4 sm:$0xff]  }
 0x74c   :  { %6724 = vmatpush1.bf16.msra.mxu1 %v9601_v32  ;;  %6643 = vmatprep.subr.bf16.mxu0 %v9608_v24  ;;  %v10546_v32 = vld [vmem:[#allocation9 + $0x140] ss:$16 sps:$4 sm:$0xff]  }
 0x74d   :  { %6725 = vmatprep.subr.bf16.mxu1 %v9610_v4  ;;  %v10549_v24 = vld [vmem:[#allocation9 + $0x340] ss:$16 sps:$4 sm:$0xff]   ;;  %v10554_v4 = vld [vmem:[#allocation9 + $0x164] ss:$16 sps:$4 sm:$0xff]  }
 0x74f   :  { %6644 = vmatpush1.bf16.msra.mxu0 %v9607_v51  ;;  %v10557_v51 = vld [vmem:[#allocation9 + $0x364] ss:$16 sps:$4 sm:$0xff]  }
 0x750   :  { %6726 = vmatpush1.bf16.msra.mxu1 %v9609_v53  ;;  %8069 = vmatprep.subr.bf16.mxu0 %v10488_v36  ;;  %v10552_v53 = vld [vmem:[#allocation9 + $0x160] ss:$16 sps:$4 sm:$0xff]  }
 0x751   :  { %8110 = vmatprep.subr.bf16.mxu1 %v10491_v44  ;;  %v10555_v36 = vld [vmem:[#allocation9 + $0x360] ss:$16 sps:$4 sm:$0xff]   ;;  %v10560_v44 = vld [vmem:[#allocation9 + $0x184] ss:$16 sps:$4 sm:$0xff]  }
 0x752   :  { %6646 = vmatmul.mubr.bf16.vlgmr.msra.gmra.mrb[32].mxu0 %v11503_v49 }
 0x753   :  { %6728 = vmatmul.mubr.bf16.vlgmr.msra.gmra.mrb[32].mxu1 %v11503_v49  ;;  %8070 = vmatpush1.bf16.msra.mxu0 %v10486_v9  ;;  %v10507_v49 = vld [vmem:[#allocation9 + $0x260] ss:$16 sps:$4 sm:$0xff]   ;;  %v10563_v9 = vld [vmem:[#allocation9 + $0x384] ss:$16 sps:$4 sm:$0xff]  }
 0x754   :  { %8111 = vmatpush1.bf16.msra.mxu1 %v10489_v10  ;;  %8071 = vmatprep.subr.bf16.mxu0 %v10494_v56  ;;  %v10558_v10 = vld [vmem:[#allocation9 + $0x180] ss:$16 sps:$4 sm:$0xff]  }
 0x755   :  { %8112 = vmatprep.subr.bf16.mxu1 %v10497_v57  ;;  %v10561_v56 = vld [vmem:[#allocation9 + $0x380] ss:$16 sps:$4 sm:$0xff]   ;;  %v10566_v57 = vld [vmem:[#allocation9 + $0x1a4] ss:$16 sps:$4 sm:$0xff]  }
 0x757   :  { %8072 = vmatpush1.bf16.msra.mxu0 %v10492_v58  ;;  %v10569_v58 = vld [vmem:[#allocation9 + $0x3a4] ss:$16 sps:$4 sm:$0xff]  }
 0x758   :  { %8113 = vmatpush1.bf16.msra.mxu1 %v10495_v59  ;;  %8073 = vmatprep.subr.bf16.mxu0 %v10500_v60  ;;  %v10564_v59 = vld [vmem:[#allocation9 + $0x1a0] ss:$16 sps:$4 sm:$0xff]  }
 0x759   :  { %8114 = vmatprep.subr.bf16.mxu1 %v10503_v61  ;;  %v10567_v60 = vld [vmem:[#allocation9 + $0x3a0] ss:$16 sps:$4 sm:$0xff]   ;;  %v10572_v61 = vld [vmem:[#allocation9 + $0x1c4] ss:$16 sps:$4 sm:$0xff]  }
 0x75b   :  { %8074 = vmatpush1.bf16.msra.mxu0 %v10498_v16  ;;  %v10575_v16 = vld [vmem:[#allocation9 + $0x3c4] ss:$16 sps:$4 sm:$0xff]  }
 0x75c   :  { %8115 = vmatpush1.bf16.msra.mxu1 %v10501_v62  ;;  %8075 = vmatprep.subr.bf16.mxu0 %v10506_v63  ;;  %v10570_v62 = vld [vmem:[#allocation9 + $0x1c0] ss:$16 sps:$4 sm:$0xff]  }
 0x75d   :  { %8116 = vmatprep.subr.bf16.mxu1 %v10509_v40  ;;  %v10573_v63 = vld [vmem:[#allocation9 + $0x3c0] ss:$16 sps:$4 sm:$0xff]   ;;  %v10578_v40 = vld [vmem:[#allocation9 + $0x1e4] ss:$16 sps:$4 sm:$0xff]  }
 0x75f   :  { %8076 = vmatpush1.bf16.msra.mxu0 %v10504_v1  ;;  %v10581_v1 = vld [vmem:[#allocation9 + $0x3e4] ss:$16 sps:$4 sm:$0xff]  }
 0x760   :  { %8117 = vmatpush1.bf16.msra.mxu1 %v10507_v49  ;;  %8077 = vmatprep.subr.bf16.mxu0 %v10512_v43  ;;  %v10576_v49 = vld [vmem:[#allocation9 + $0x1e0] ss:$16 sps:$4 sm:$0xff]  }
 0x761   :  { %8118 = vmatprep.subr.bf16.mxu1 %v10515_v8  ;;  %v10579_v43 = vld [vmem:[#allocation9 + $0x3e0] ss:$16 sps:$4 sm:$0xff]   ;;  %v10584_v8 = vld [vmem:[#allocation9 + $0x404] ss:$16 sps:$4 sm:$0xff]  }
 0x763   :  { %8078 = vmatpush1.bf16.msra.mxu0 %v10510_v42  ;;  %v10587_v42 = vld [vmem:[#allocation9 + $0x604] ss:$16 sps:$4 sm:$0xff]  }
 0x764   :  { %8119 = vmatpush1.bf16.msra.mxu1 %v10513_v11  ;;  %8079 = vmatprep.subr.bf16.mxu0 %v10518_v12  ;;  %v11526_v11 = vld [vmem:[%s11626_s10] sm:$0xff] }
 0x765   :  { %8120 = vmatprep.subr.bf16.mxu1 %v10521_v13  ;;  %v5091_v12 = vrot.slane %v11526_v11, %v11269_v28  ;;  %v5099_v13 = vrot.slane %v11526_v11, %v11278_v31 }
 0x767   :  { %8080 = vmatpush1.bf16.msra.mxu0 %v10516_v14  ;;  %v5095_v14 = vrot.slane %v11526_v11, %v11275_v30 }
 0x768   :  { %8121 = vmatpush1.bf16.msra.mxu1 %v10519_v17  ;;  %8081 = vmatprep.subr.bf16.mxu0 %v10524_v19  ;;  %v5103_v17 = vrot.slane %v11526_v11, %v11283_v33 }
 0x769   :  { %8122 = vmatprep.subr.bf16.mxu1 %v10527_v22 }
 0x76b   :  { %8082 = vmatpush1.bf16.msra.mxu0 %v10522_v0 }
 0x76c   :  { %8123 = vmatpush1.bf16.msra.mxu1 %v10525_v25  ;;  %8083 = vmatprep.subr.bf16.mxu0 %v10530_v7 }
 0x76d   :  { %8124 = vmatprep.subr.bf16.mxu1 %v10533_v39 }
 0x76f   :  { %8084 = vmatpush1.bf16.msra.mxu0 %v10528_v50 }
 0x770   :  { %8125 = vmatpush1.bf16.msra.mxu1 %v10531_v26  ;;  %8085 = vmatprep.subr.bf16.mxu0 %v10536_v5 }
 0x771   :  { %8126 = vmatprep.subr.bf16.mxu1 %v10539_v29 }
 0x773   :  { %8086 = vmatpush1.bf16.msra.mxu0 %v10534_v48 }
 0x774   :  { %8127 = vmatpush1.bf16.msra.mxu1 %v10537_v35  ;;  %8087 = vmatprep.subr.bf16.mxu0 %v10542_v46 }
 0x775   :  { %8128 = vmatprep.subr.bf16.mxu1 %v10545_v45 }
 0x777   :  { %8088 = vmatpush1.bf16.msra.mxu0 %v10540_v47 }
 0x778   :  { %8129 = vmatpush1.bf16.msra.mxu1 %v10543_v52  ;;  %8089 = vmatprep.subr.bf16.mxu0 %v10548_v54 }
 0x779   :  { %8130 = vmatprep.subr.bf16.mxu1 %v10551_v55 }
 0x77b   :  { %8090 = vmatpush1.bf16.msra.mxu0 %v10546_v32 }
 0x77c   :  { %8131 = vmatpush1.bf16.msra.mxu1 %v10549_v24  ;;  %8091 = vmatprep.subr.bf16.mxu0 %v10554_v4 }
 0x77d   :  { %8132 = vmatprep.subr.bf16.mxu1 %v10557_v51 }
 0x77f   :  { %8092 = vmatpush1.bf16.msra.mxu0 %v10552_v53  ;;  %v10582_v53 = vld [vmem:[#allocation9 + $0x400] ss:$16 sps:$4 sm:$0xff]  }
 0x780   :  { %8133 = vmatpush1.bf16.msra.mxu1 %v10555_v36  ;;  %8093 = vmatprep.subr.bf16.mxu0 %v10560_v44  ;;  %v10585_v36 = vld [vmem:[#allocation9 + $0x600] ss:$16 sps:$4 sm:$0xff]  }
 0x781   :  { %8134 = vmatprep.subr.bf16.mxu1 %v10563_v9 }
 0x783   :  { %8094 = vmatpush1.bf16.msra.mxu0 %v10558_v10  ;;  %v10590_v10 = vld [vmem:[#allocation9 + $0x424] ss:$16 sps:$4 sm:$0xff]  }
 0x784   :  { %8135 = vmatpush1.bf16.msra.mxu1 %v10561_v56  ;;  %8095 = vmatprep.subr.bf16.mxu0 %v10566_v57  ;;  %v10593_v56 = vld [vmem:[#allocation9 + $0x624] ss:$16 sps:$4 sm:$0xff]   ;;  %v10588_v57 = vld [vmem:[#allocation9 + $0x420] ss:$16 sps:$4 sm:$0xff]  }
 0x785   :  { %8136 = vmatprep.subr.bf16.mxu1 %v10569_v58  ;;  %v10591_v58 = vld [vmem:[#allocation9 + $0x620] ss:$16 sps:$4 sm:$0xff]  }
 0x787   :  { %8096 = vmatpush1.bf16.msra.mxu0 %v10564_v59  ;;  %v10596_v59 = vld [vmem:[#allocation9 + $0x444] ss:$16 sps:$4 sm:$0xff]  }
 0x788   :  { %8137 = vmatpush1.bf16.msra.mxu1 %v10567_v60  ;;  %8097 = vmatprep.subr.bf16.mxu0 %v10572_v61  ;;  %v10599_v60 = vld [vmem:[#allocation9 + $0x644] ss:$16 sps:$4 sm:$0xff]   ;;  %v10594_v61 = vld [vmem:[#allocation9 + $0x440] ss:$16 sps:$4 sm:$0xff]  }
 0x789   :  { %8138 = vmatprep.subr.bf16.mxu1 %v10575_v16  ;;  %v10597_v16 = vld [vmem:[#allocation9 + $0x640] ss:$16 sps:$4 sm:$0xff]  }
 0x78b   :  { %8098 = vmatpush1.bf16.msra.mxu0 %v10570_v62  ;;  %v10602_v62 = vld [vmem:[#allocation9 + $0x464] ss:$16 sps:$4 sm:$0xff]  }
 0x78c   :  { %8139 = vmatpush1.bf16.msra.mxu1 %v10573_v63  ;;  %8099 = vmatprep.subr.bf16.mxu0 %v10578_v40  ;;  %v10605_v63 = vld [vmem:[#allocation9 + $0x664] ss:$16 sps:$4 sm:$0xff]   ;;  %v10600_v40 = vld [vmem:[#allocation9 + $0x460] ss:$16 sps:$4 sm:$0xff]  }
 0x78d   :  { %8140 = vmatprep.subr.bf16.mxu1 %v10581_v1  ;;  %v10603_v1 = vld [vmem:[#allocation9 + $0x660] ss:$16 sps:$4 sm:$0xff]  }
 0x78f   :  { %8100 = vmatpush1.bf16.msra.mxu0 %v10576_v49  ;;  %v10608_v49 = vld [vmem:[#allocation9 + $0x484] ss:$16 sps:$4 sm:$0xff]  }
 0x790   :  { %8141 = vmatpush1.bf16.msra.mxu1 %v10579_v43  ;;  %8151 = vmatprep.subr.bf16.mxu0 %v10584_v8  ;;  %v10611_v43 = vld [vmem:[#allocation9 + $0x684] ss:$16 sps:$4 sm:$0xff]   ;;  %v10606_v8 = vld [vmem:[#allocation9 + $0x480] ss:$16 sps:$4 sm:$0xff]  }
 0x791   :  { %8192 = vmatprep.subr.bf16.mxu1 %v10587_v42  ;;  %v10609_v42 = vld [vmem:[#allocation9 + $0x680] ss:$16 sps:$4 sm:$0xff]  }
 0x7a5   :  { %v6483_v19 = vpop.f32.mrb[28].mxu0  ;;  %v6565_v22 = vpop.f32.mrb[28].mxu1 }
 0x7a6   :  { %v9952_v0 = vadd.f32 %v6483_v19, %v5091_v12  ;;  %v9954_v25 = vadd.f32 %v6565_v22, %v5099_v13  ;;  %v6485_v7 = vpop.f32.mrb[29].mxu0  ;;  %v6567_v39 = vpop.f32.mrb[29].mxu1  ;;  %v10614_v12 = vld [vmem:[#allocation9 + $0x4a4] ss:$16 sps:$4 sm:$0xff]  }
 0x7a7   :  { %v9953_v50 = vadd.f32 %v6485_v7, %v5095_v14  ;;  %v9955_v26 = vadd.f32 %v6567_v39, %v5103_v17  ;;  %v6487_v5 = vpop.f32.mrb[30].mxu0  ;;  %v6569_v29 = vpop.f32.mrb[30].mxu1  ;;  %v10617_v13 = vld [vmem:[#allocation9 + $0x6a4] ss:$16 sps:$4 sm:$0xff]   ;;  %v10612_v14 = vld [vmem:[#allocation9 + $0x4a0] ss:$16 sps:$4 sm:$0xff]  }
 0x7a8   :  { %vm6736_vm11 = vcmp.ge.f32.partialorder %v9952_v0, 0.0  ;;  %v6744_v48 = vmul.f32 0.01, %v9952_v0  ;;  %vm6738_vm12 = vcmp.ge.f32.partialorder %v9954_v25, 0.0  ;;  %v6746_v35 = vmul.f32 0.01, %v9954_v25 }
 0x7a9   :  { %vm6737_vm13 = vcmp.ge.f32.partialorder %v9953_v50, 0.0  ;;  %v6745_v46 = vmul.f32 0.01, %v9953_v50  ;;  %vm6739_vm14 = vcmp.ge.f32.partialorder %v9955_v26, 0.0  ;;  %v6747_v45 = vmul.f32 0.01, %v9955_v26 }
 0x7aa   :  { %v6752_v47 = vsel %vm6736_vm11, %v9952_v0, %v6744_v48  ;;  %v6754_v52 = vsel %vm6738_vm12, %v9954_v25, %v6746_v35  ;;  %v6488_v54 = vpop.f32.mrb[31].mxu0  ;;  %v6570_v55 = vpop.f32.mrb[31].mxu1  ;;  %v10615_v17 = vld [vmem:[#allocation9 + $0x6a0] ss:$16 sps:$4 sm:$0xff]   ;;  %v10620_v19 = vld [vmem:[#allocation9 + $0x4c4] ss:$16 sps:$4 sm:$0xff]  }
 0x7ab   :  { %v6753_v32 = vsel %vm6737_vm13, %v9953_v50, %v6745_v46  ;;  %v6755_v24 = vsel %vm6739_vm14, %v9955_v26, %v6747_v45  ;;  %v11540_v44 = vpack.c.bf16 %v6752_v47, %v6752_v47  ;;  %v11542_v9 = vpack.c.bf16 %v6754_v52, %v6754_v52  ;;  %v10623_v22 = vld [vmem:[#allocation9 + $0x6c4] ss:$16 sps:$4 sm:$0xff]   ;;  %v10618_v0 = vld [vmem:[#allocation9 + $0x4c0] ss:$16 sps:$4 sm:$0xff]  }
 0x7ac   :  { %v11536_v4 = vpack.c.bf16 %v6753_v32, %v6753_v32  ;;  %v11538_v51 = vpack.c.bf16 %v6755_v24, %v6755_v24  ;;  %v10621_v25 = vld [vmem:[#allocation9 + $0x6c0] ss:$16 sps:$4 sm:$0xff]   ;;  %v10626_v7 = vld [vmem:[#allocation9 + $0x4e4] ss:$16 sps:$4 sm:$0xff]  }
 0x7ad   :  { %v10629_v39 = vld [vmem:[#allocation9 + $0x6e4] ss:$16 sps:$4 sm:$0xff]   ;;  %v10624_v50 = vld [vmem:[#allocation9 + $0x4e0] ss:$16 sps:$4 sm:$0xff]  }
 0x7ae   :  { %8101 = vmatprep.mubr.bf16.mxu0 %v11536_v4  ;;  %8142 = vmatprep.mubr.bf16.mxu1 %v11538_v51  ;;  %v10627_v26 = vld [vmem:[#allocation9 + $0x6e0] ss:$16 sps:$4 sm:$0xff]   ;;  %v10632_v5 = vld [vmem:[#allocation9 + $0x504] ss:$16 sps:$4 sm:$0xff]  }
 0x7af   :  { %8102 = vmatmul.mubr.bf16.vlgmr.msra.gmra.mrb[36].mxu0 %v11540_v44  ;;  %8143 = vmatmul.mubr.bf16.vlgmr.msra.gmra.mrb[36].mxu1 %v11542_v9  ;;  %v10635_v29 = vld [vmem:[#allocation9 + $0x704] ss:$16 sps:$4 sm:$0xff]   ;;  %v10630_v48 = vld [vmem:[#allocation9 + $0x500] ss:$16 sps:$4 sm:$0xff]  }
 0x7b0   :  { %8152 = vmatpush1.bf16.msra.mxu0 %v10582_v53  ;;  %8193 = vmatpush1.bf16.msra.mxu1 %v10585_v36  ;;  %v10633_v35 = vld [vmem:[#allocation9 + $0x700] ss:$16 sps:$4 sm:$0xff]   ;;  %v10638_v46 = vld [vmem:[#allocation9 + $0x524] ss:$16 sps:$4 sm:$0xff]  }
 0x7b1   :  { %8153 = vmatprep.subr.bf16.mxu0 %v10590_v10  ;;  %8194 = vmatprep.subr.bf16.mxu1 %v10593_v56  ;;  %v10641_v45 = vld [vmem:[#allocation9 + $0x724] ss:$16 sps:$4 sm:$0xff]   ;;  %v10636_v47 = vld [vmem:[#allocation9 + $0x520] ss:$16 sps:$4 sm:$0xff]  }
 0x7b2   :  { %v10639_v52 = vld [vmem:[#allocation9 + $0x720] ss:$16 sps:$4 sm:$0xff]   ;;  %v10644_v54 = vld [vmem:[#allocation9 + $0x544] ss:$16 sps:$4 sm:$0xff]  }
 0x7b3   :  { %v10647_v55 = vld [vmem:[#allocation9 + $0x744] ss:$16 sps:$4 sm:$0xff]   ;;  %v10642_v32 = vld [vmem:[#allocation9 + $0x540] ss:$16 sps:$4 sm:$0xff]  }
 0x7b4   :  { %8154 = vmatpush1.bf16.msra.mxu0 %v10588_v57  ;;  %8195 = vmatpush1.bf16.msra.mxu1 %v10591_v58  ;;  %v10645_v24 = vld [vmem:[#allocation9 + $0x740] ss:$16 sps:$4 sm:$0xff]   ;;  %v10650_v53 = vld [vmem:[#allocation9 + $0x564] ss:$16 sps:$4 sm:$0xff]  }
 0x7b5   :  { %8155 = vmatprep.subr.bf16.mxu0 %v10596_v59  ;;  %8196 = vmatprep.subr.bf16.mxu1 %v10599_v60  ;;  %v10653_v36 = vld [vmem:[#allocation9 + $0x764] ss:$16 sps:$4 sm:$0xff]   ;;  %v10648_v10 = vld [vmem:[#allocation9 + $0x560] ss:$16 sps:$4 sm:$0xff]  }
 0x7b6   :  { %v10651_v56 = vld [vmem:[#allocation9 + $0x760] ss:$16 sps:$4 sm:$0xff]   ;;  %v10656_v57 = vld [vmem:[#allocation9 + $0x584] ss:$16 sps:$4 sm:$0xff]  }
 0x7b7   :  { %v10659_v58 = vld [vmem:[#allocation9 + $0x784] ss:$16 sps:$4 sm:$0xff]   ;;  %v10654_v59 = vld [vmem:[#allocation9 + $0x580] ss:$16 sps:$4 sm:$0xff]  }
 0x7b8   :  { %8156 = vmatpush1.bf16.msra.mxu0 %v10594_v61  ;;  %8197 = vmatpush1.bf16.msra.mxu1 %v10597_v16  ;;  %v10657_v60 = vld [vmem:[#allocation9 + $0x780] ss:$16 sps:$4 sm:$0xff]   ;;  %v10662_v61 = vld [vmem:[#allocation9 + $0x5a4] ss:$16 sps:$4 sm:$0xff]  }
 0x7b9   :  { %8157 = vmatprep.subr.bf16.mxu0 %v10602_v62  ;;  %8198 = vmatprep.subr.bf16.mxu1 %v10605_v63  ;;  %v10665_v16 = vld [vmem:[#allocation9 + $0x7a4] ss:$16 sps:$4 sm:$0xff]   ;;  %v10660_v62 = vld [vmem:[#allocation9 + $0x5a0] ss:$16 sps:$4 sm:$0xff]  }
 0x7ba   :  { %v10663_v63 = vld [vmem:[#allocation9 + $0x7a0] ss:$16 sps:$4 sm:$0xff]  }
 0x7bc   :  { %8158 = vmatpush1.bf16.msra.mxu0 %v10600_v40  ;;  %8199 = vmatpush1.bf16.msra.mxu1 %v10603_v1  ;;  %v10668_v40 = vld [vmem:[#allocation9 + $0x5c4] ss:$16 sps:$4 sm:$0xff]  }
 0x7bd   :  { %8159 = vmatprep.subr.bf16.mxu0 %v10608_v49  ;;  %8200 = vmatprep.subr.bf16.mxu1 %v10611_v43  ;;  %v10671_v1 = vld [vmem:[#allocation9 + $0x7c4] ss:$16 sps:$4 sm:$0xff]   ;;  %v10666_v49 = vld [vmem:[#allocation9 + $0x5c0] ss:$16 sps:$4 sm:$0xff]  }
 0x7be   :  { %v10669_v43 = vld [vmem:[#allocation9 + $0x7c0] ss:$16 sps:$4 sm:$0xff]  }
 0x7c0   :  { %8160 = vmatpush1.bf16.msra.mxu0 %v10606_v8  ;;  %8201 = vmatpush1.bf16.msra.mxu1 %v10609_v42  ;;  %v10674_v8 = vld [vmem:[#allocation9 + $0x5e4] ss:$16 sps:$4 sm:$0xff]  }
 0x7c1   :  { %8161 = vmatprep.subr.bf16.mxu0 %v10614_v12  ;;  %8202 = vmatprep.subr.bf16.mxu1 %v10617_v13  ;;  %v10677_v42 = vld [vmem:[#allocation9 + $0x7e4] ss:$16 sps:$4 sm:$0xff]   ;;  %v10672_v12 = vld [vmem:[#allocation9 + $0x5e0] ss:$16 sps:$4 sm:$0xff]  }
 0x7c2   :  { %v10675_v13 = vld [vmem:[#allocation9 + $0x7e0] ss:$16 sps:$4 sm:$0xff]  }
 0x7c4   :  { %8162 = vmatpush1.bf16.msra.mxu0 %v10612_v14  ;;  %8203 = vmatpush1.bf16.msra.mxu1 %v10615_v17  ;;  %v10680_v14 = vld [vmem:[#allocation9 + $0xc] ss:$16 sps:$4 sm:$0xff]  }
 0x7c5   :  { %8163 = vmatprep.subr.bf16.mxu0 %v10620_v19  ;;  %8204 = vmatprep.subr.bf16.mxu1 %v10623_v22  ;;  %v10683_v17 = vld [vmem:[#allocation9 + $0x20c] ss:$16 sps:$4 sm:$0xff]   ;;  %v5107_v19 = vrot.slane %v11526_v11, %v1274_v2  ;;  %v5115_v22 = vrot.slane %v11526_v11, %v1282_v3 }
 0x7c8   :  { %8164 = vmatpush1.bf16.msra.mxu0 %v10618_v0  ;;  %8205 = vmatpush1.bf16.msra.mxu1 %v10621_v25  ;;  %v5111_v0 = vrot.slane %v11526_v11, %v1278_v6  ;;  %v5119_v25 = vrot.slane %v11526_v11, %v1286_v38 }
 0x7c9   :  { %8165 = vmatprep.subr.bf16.mxu0 %v10626_v7  ;;  %8206 = vmatprep.subr.bf16.mxu1 %v10629_v39 }
 0x7cc   :  { %8166 = vmatpush1.bf16.msra.mxu0 %v10624_v50  ;;  %8207 = vmatpush1.bf16.msra.mxu1 %v10627_v26 }
 0x7cd   :  { %8167 = vmatprep.subr.bf16.mxu0 %v10632_v5  ;;  %8208 = vmatprep.subr.bf16.mxu1 %v10635_v29 }
 0x7d0   :  { %8168 = vmatpush1.bf16.msra.mxu0 %v10630_v48  ;;  %8209 = vmatpush1.bf16.msra.mxu1 %v10633_v35 }
 0x7d1   :  { %8169 = vmatprep.subr.bf16.mxu0 %v10638_v46  ;;  %8210 = vmatprep.subr.bf16.mxu1 %v10641_v45 }
 0x7d4   :  { %8170 = vmatpush1.bf16.msra.mxu0 %v10636_v47  ;;  %8211 = vmatpush1.bf16.msra.mxu1 %v10639_v52 }
 0x7d5   :  { %8171 = vmatprep.subr.bf16.mxu0 %v10644_v54  ;;  %8212 = vmatprep.subr.bf16.mxu1 %v10647_v55 }
 0x7d8   :  { %8172 = vmatpush1.bf16.msra.mxu0 %v10642_v32  ;;  %8213 = vmatpush1.bf16.msra.mxu1 %v10645_v24  ;;  %v10678_v24 = vld [vmem:[#allocation9 + $0x8] ss:$16 sps:$4 sm:$0xff]  }
 0x7d9   :  { %8173 = vmatprep.subr.bf16.mxu0 %v10650_v53  ;;  %8214 = vmatprep.subr.bf16.mxu1 %v10653_v36 }
 0x7dc   :  { %8174 = vmatpush1.bf16.msra.mxu0 %v10648_v10  ;;  %8215 = vmatpush1.bf16.msra.mxu1 %v10651_v56  ;;  %v10681_v10 = vld [vmem:[#allocation9 + $0x208] ss:$16 sps:$4 sm:$0xff]  }
 0x7dd   :  { %8175 = vmatprep.subr.bf16.mxu0 %v10656_v57  ;;  %8216 = vmatprep.subr.bf16.mxu1 %v10659_v58  ;;  %v10686_v57 = vld [vmem:[#allocation9 + $0x2c] ss:$16 sps:$4 sm:$0xff]  }
 0x7de   :  { %v10689_v58 = vld [vmem:[#allocation9 + $0x22c] ss:$16 sps:$4 sm:$0xff]  }
 0x7e0   :  { %8176 = vmatpush1.bf16.msra.mxu0 %v10654_v59  ;;  %8217 = vmatpush1.bf16.msra.mxu1 %v10657_v60  ;;  %v10684_v59 = vld [vmem:[#allocation9 + $0x28] ss:$16 sps:$4 sm:$0xff]  }
 0x7e1   :  { %8177 = vmatprep.subr.bf16.mxu0 %v10662_v61  ;;  %8218 = vmatprep.subr.bf16.mxu1 %v10665_v16  ;;  %v10687_v60 = vld [vmem:[#allocation9 + $0x228] ss:$16 sps:$4 sm:$0xff]   ;;  %v10692_v61 = vld [vmem:[#allocation9 + $0x4c] ss:$16 sps:$4 sm:$0xff]  }
 0x7e2   :  { %v10695_v16 = vld [vmem:[#allocation9 + $0x24c] ss:$16 sps:$4 sm:$0xff]  }
 0x7e4   :  { %8178 = vmatpush1.bf16.msra.mxu0 %v10660_v62  ;;  %8219 = vmatpush1.bf16.msra.mxu1 %v10663_v63  ;;  %v10690_v62 = vld [vmem:[#allocation9 + $0x48] ss:$16 sps:$4 sm:$0xff]  }
 0x7e5   :  { %8179 = vmatprep.subr.bf16.mxu0 %v10668_v40  ;;  %8220 = vmatprep.subr.bf16.mxu1 %v10671_v1  ;;  %v10693_v63 = vld [vmem:[#allocation9 + $0x248] ss:$16 sps:$4 sm:$0xff]   ;;  %v10698_v40 = vld [vmem:[#allocation9 + $0x6c] ss:$16 sps:$4 sm:$0xff]  }
 0x7e6   :  { %v10701_v1 = vld [vmem:[#allocation9 + $0x26c] ss:$16 sps:$4 sm:$0xff]  }
 0x7e8   :  { %8180 = vmatpush1.bf16.msra.mxu0 %v10666_v49  ;;  %8221 = vmatpush1.bf16.msra.mxu1 %v10669_v43  ;;  %v10696_v49 = vld [vmem:[#allocation9 + $0x68] ss:$16 sps:$4 sm:$0xff]   ;;  %v10704_v43 = vld [vmem:[#allocation9 + $0x8c] ss:$16 sps:$4 sm:$0xff]  }
 0x7e9   :  { %8181 = vmatprep.subr.bf16.mxu0 %v10674_v8  ;;  %8222 = vmatprep.subr.bf16.mxu1 %v10677_v42  ;;  %v10707_v8 = vld [vmem:[#allocation9 + $0x28c] ss:$16 sps:$4 sm:$0xff]   ;;  %v10705_v42 = vld [vmem:[#allocation9 + $0x288] ss:$16 sps:$4 sm:$0xff]  }
 0x7ec   :  { %8182 = vmatpush1.bf16.msra.mxu0 %v10672_v12  ;;  %8223 = vmatpush1.bf16.msra.mxu1 %v10675_v13  ;;  %v10710_v12 = vld [vmem:[#allocation9 + $0xac] ss:$16 sps:$4 sm:$0xff]  }
 0x7ed   :  { %8233 = vmatprep.subr.bf16.mxu0 %v10680_v14  ;;  %8274 = vmatprep.subr.bf16.mxu1 %v10683_v17  ;;  %v10713_v13 = vld [vmem:[#allocation9 + $0x2ac] ss:$16 sps:$4 sm:$0xff]   ;;  %v10708_v14 = vld [vmem:[#allocation9 + $0xa8] ss:$16 sps:$4 sm:$0xff]  }
 0x7ee   :  { %v10711_v17 = vld [vmem:[#allocation9 + $0x2a8] ss:$16 sps:$4 sm:$0xff]  }
 0x825   :  { %v6647_v7 = vpop.f32.mrb[32].mxu0 }
 0x826   :  { %v9956_v39 = vadd.f32 %v6647_v7, %v5107_v19  ;;  %v6729_v50 = vpop.f32.mrb[32].mxu1  ;;  %v6649_v26 = vpop.f32.mrb[33].mxu0  ;;  %v10716_v19 = vld [vmem:[#allocation9 + $0xcc] ss:$16 sps:$4 sm:$0xff]  }
 0x827   :  { %v9958_v5 = vadd.f32 %v6729_v50, %v5115_v22  ;;  %v9957_v29 = vadd.f32 %v6649_v26, %v5111_v0  ;;  %v6731_v48 = vpop.f32.mrb[33].mxu1  ;;  %v6651_v2 = vpop.f32.mrb[34].mxu0  ;;  %v10719_v22 = vld [vmem:[#allocation9 + $0x2cc] ss:$16 sps:$4 sm:$0xff]   ;;  %v10714_v0 = vld [vmem:[#allocation9 + $0xc8] ss:$16 sps:$4 sm:$0xff]  }
 0x828   :  { %vm6740_vm15 = vcmp.ge.f32.partialorder %v9956_v39, 0.0  ;;  %v6748_v35 = vmul.f32 0.01, %v9956_v39  ;;  %v9959_v46 = vadd.f32 %v6731_v48, %v5119_v25  ;;  %v6733_v3 = vpop.f32.mrb[34].mxu1  ;;  %v6652_v45 = vpop.f32.mrb[35].mxu0 }
 0x829   :  { %vm6742_vm0 = vcmp.ge.f32.partialorder %v9958_v5, 0.0  ;;  %v6750_v47 = vmul.f32 0.01, %v9958_v5  ;;  %vm6741_vm1 = vcmp.ge.f32.partialorder %v9957_v29, 0.0  ;;  %v6749_v6 = vmul.f32 0.01, %v9957_v29 }
 0x82a   :  { %v6756_v27 = vsel %vm6740_vm15, %v9956_v39, %v6748_v35  ;;  %vm6743_vm2 = vcmp.ge.f32.partialorder %v9959_v46, 0.0  ;;  %v6751_v38 = vmul.f32 0.01, %v9959_v46  ;;  %v6734_v11 = vpop.f32.mrb[35].mxu1  ;;  %v10717_v25 = vld [vmem:[#allocation9 + $0x2c8] ss:$16 sps:$4 sm:$0xff]  }
 0x82b   :  { %v6758_v52 = vsel %vm6742_vm0, %v9958_v5, %v6750_v47  ;;  %v6757_v54 = vsel %vm6741_vm1, %v9957_v29, %v6749_v6  ;;  %v11562_v53 = vpack.c.bf16 %v6756_v27, %v6756_v27  ;;  %v10722_v7 = vld [vmem:[#allocation9 + $0xec] ss:$16 sps:$4 sm:$0xff]   ;;  %v10720_v50 = vld [vmem:[#allocation9 + $0xe8] ss:$16 sps:$4 sm:$0xff]  }
 0x82c   :  { %v11560_v55 = vpack.c.bf16 %v6757_v54, %v6757_v54  ;;  %v6759_v32 = vsel %vm6743_vm2, %v9959_v46, %v6751_v38  ;;  %v11566_v56 = vpack.c.bf16 %v6758_v52, %v6758_v52  ;;  %v10725_v39 = vld [vmem:[#allocation9 + $0x2ec] ss:$16 sps:$4 sm:$0xff]   ;;  %v10723_v26 = vld [vmem:[#allocation9 + $0x2e8] ss:$16 sps:$4 sm:$0xff]  }
 0x82d   :  { %v11564_v36 = vpack.c.bf16 %v6759_v32, %v6759_v32  ;;  %v10728_v5 = vld [vmem:[#allocation9 + $0x10c] ss:$16 sps:$4 sm:$0xff]   ;;  %v10726_v48 = vld [vmem:[#allocation9 + $0x108] ss:$16 sps:$4 sm:$0xff]  }
 0x82e   :  { %8183 = vmatprep.mubr.bf16.mxu0 %v11560_v55  ;;  %v10731_v29 = vld [vmem:[#allocation9 + $0x30c] ss:$16 sps:$4 sm:$0xff]   ;;  %v10729_v2 = vld [vmem:[#allocation9 + $0x308] ss:$16 sps:$4 sm:$0xff]  }
 0x82f   :  { %8224 = vmatprep.mubr.bf16.mxu1 %v11564_v36  ;;  %8184 = vmatmul.mubr.bf16.vlgmr.msra.gmra.mrb[40].mxu0 %v11562_v53  ;;  %v10734_v35 = vld [vmem:[#allocation9 + $0x12c] ss:$16 sps:$4 sm:$0xff]   ;;  %v10732_v3 = vld [vmem:[#allocation9 + $0x128] ss:$16 sps:$4 sm:$0xff]  }
 0x830   :  { %8225 = vmatmul.mubr.bf16.vlgmr.msra.gmra.mrb[40].mxu1 %v11566_v56  ;;  %8234 = vmatpush1.bf16.msra.mxu0 %v10678_v24  ;;  %v10737_v46 = vld [vmem:[#allocation9 + $0x32c] ss:$16 sps:$4 sm:$0xff]   ;;  %v10735_v45 = vld [vmem:[#allocation9 + $0x328] ss:$16 sps:$4 sm:$0xff]  }
 0x831   :  { %8275 = vmatpush1.bf16.msra.mxu1 %v10681_v10  ;;  %8265 = vmatprep.mubr.bf16.mxu0 %v11536_v4  ;;  %v10699_v4 = vld [vmem:[#allocation9 + $0x268] ss:$16 sps:$4 sm:$0xff]   ;;  %v10740_v47 = vld [vmem:[#allocation9 + $0x14c] ss:$16 sps:$4 sm:$0xff]  }
 0x832   :  { %8306 = vmatprep.mubr.bf16.mxu1 %v11538_v51  ;;  %8235 = vmatprep.subr.bf16.mxu0 %v10686_v57  ;;  %v10702_v51 = vld [vmem:[#allocation9 + $0x88] ss:$16 sps:$4 sm:$0xff]   ;;  %v10743_v6 = vld [vmem:[#allocation9 + $0x34c] ss:$16 sps:$4 sm:$0xff]  }
 0x833   :  { %8276 = vmatprep.subr.bf16.mxu1 %v10689_v58  ;;  %v10738_v27 = vld [vmem:[#allocation9 + $0x148] ss:$16 sps:$4 sm:$0xff]   ;;  %v10746_v11 = vld [vmem:[#allocation9 + $0x16c] ss:$16 sps:$4 sm:$0xff]  }
 0x834   :  { %8236 = vmatpush1.bf16.msra.mxu0 %v10684_v59  ;;  %v10741_v38 = vld [vmem:[#allocation9 + $0x348] ss:$16 sps:$4 sm:$0xff]   ;;  %v10749_v52 = vld [vmem:[#allocation9 + $0x36c] ss:$16 sps:$4 sm:$0xff]  }
 0x835   :  { %8277 = vmatpush1.bf16.msra.mxu1 %v10687_v60  ;;  %8237 = vmatprep.subr.bf16.mxu0 %v10692_v61  ;;  %v10744_v54 = vld [vmem:[#allocation9 + $0x168] ss:$16 sps:$4 sm:$0xff]   ;;  %v10752_v24 = vld [vmem:[#allocation9 + $0x18c] ss:$16 sps:$4 sm:$0xff]  }
 0x836   :  { %8278 = vmatprep.subr.bf16.mxu1 %v10695_v16  ;;  %v10747_v32 = vld [vmem:[#allocation9 + $0x368] ss:$16 sps:$4 sm:$0xff]   ;;  %v10755_v10 = vld [vmem:[#allocation9 + $0x38c] ss:$16 sps:$4 sm:$0xff]  }
 0x837   :  { %v10750_v57 = vld [vmem:[#allocation9 + $0x188] ss:$16 sps:$4 sm:$0xff]   ;;  %v10758_v59 = vld [vmem:[#allocation9 + $0x1ac] ss:$16 sps:$4 sm:$0xff]  }
 0x838   :  { %8238 = vmatpush1.bf16.msra.mxu0 %v10690_v62  ;;  %v10753_v58 = vld [vmem:[#allocation9 + $0x388] ss:$16 sps:$4 sm:$0xff]   ;;  %v10761_v60 = vld [vmem:[#allocation9 + $0x3ac] ss:$16 sps:$4 sm:$0xff]  }
 0x839   :  { %8279 = vmatpush1.bf16.msra.mxu1 %v10693_v63  ;;  %8239 = vmatprep.subr.bf16.mxu0 %v10698_v40  ;;  %v10756_v61 = vld [vmem:[#allocation9 + $0x1a8] ss:$16 sps:$4 sm:$0xff]   ;;  %v10764_v62 = vld [vmem:[#allocation9 + $0x1cc] ss:$16 sps:$4 sm:$0xff]  }
 0x83a   :  { %8280 = vmatprep.subr.bf16.mxu1 %v10701_v1  ;;  %v10759_v16 = vld [vmem:[#allocation9 + $0x3a8] ss:$16 sps:$4 sm:$0xff]   ;;  %v10767_v63 = vld [vmem:[#allocation9 + $0x3cc] ss:$16 sps:$4 sm:$0xff]  }
 0x83b   :  { %v10762_v40 = vld [vmem:[#allocation9 + $0x1c8] ss:$16 sps:$4 sm:$0xff]  }
 0x83c   :  { %8240 = vmatpush1.bf16.msra.mxu0 %v10696_v49  ;;  %v10765_v1 = vld [vmem:[#allocation9 + $0x3c8] ss:$16 sps:$4 sm:$0xff]   ;;  %v10770_v49 = vld [vmem:[#allocation9 + $0x1ec] ss:$16 sps:$4 sm:$0xff]  }
 0x83d   :  { %8281 = vmatpush1.bf16.msra.mxu1 %v10699_v4  ;;  %8241 = vmatprep.subr.bf16.mxu0 %v10704_v43  ;;  %v10773_v4 = vld [vmem:[#allocation9 + $0x3ec] ss:$16 sps:$4 sm:$0xff]   ;;  %v10768_v43 = vld [vmem:[#allocation9 + $0x1e8] ss:$16 sps:$4 sm:$0xff]  }
 0x83e   :  { %8282 = vmatprep.subr.bf16.mxu1 %v10707_v8  ;;  %v10771_v8 = vld [vmem:[#allocation9 + $0x3e8] ss:$16 sps:$4 sm:$0xff]  }
 0x840   :  { %8242 = vmatpush1.bf16.msra.mxu0 %v10702_v51  ;;  %v10776_v51 = vld [vmem:[#allocation9 + $0x40c] ss:$16 sps:$4 sm:$0xff]  }
 0x841   :  { %8283 = vmatpush1.bf16.msra.mxu1 %v10705_v42  ;;  %8243 = vmatprep.subr.bf16.mxu0 %v10710_v12  ;;  %v10779_v42 = vld [vmem:[#allocation9 + $0x60c] ss:$16 sps:$4 sm:$0xff]   ;;  %v10774_v12 = vld [vmem:[#allocation9 + $0x408] ss:$16 sps:$4 sm:$0xff]  }
 0x842   :  { %8284 = vmatprep.subr.bf16.mxu1 %v10713_v13  ;;  %v10777_v13 = vld [vmem:[#allocation9 + $0x608] ss:$16 sps:$4 sm:$0xff]  }
 0x844   :  { %8244 = vmatpush1.bf16.msra.mxu0 %v10708_v14  ;;  %v10782_v14 = vld [vmem:[#allocation9 + $0x42c] ss:$16 sps:$4 sm:$0xff]  }
 0x845   :  { %8285 = vmatpush1.bf16.msra.mxu1 %v10711_v17  ;;  %8245 = vmatprep.subr.bf16.mxu0 %v10716_v19  ;;  %v10785_v17 = vld [vmem:[#allocation9 + $0x62c] ss:$16 sps:$4 sm:$0xff]   ;;  %v10780_v19 = vld [vmem:[#allocation9 + $0x428] ss:$16 sps:$4 sm:$0xff]  }
 0x846   :  { %8286 = vmatprep.subr.bf16.mxu1 %v10719_v22  ;;  %v10783_v22 = vld [vmem:[#allocation9 + $0x628] ss:$16 sps:$4 sm:$0xff]  }
 0x848   :  { %8246 = vmatpush1.bf16.msra.mxu0 %v10714_v0  ;;  %v10788_v0 = vld [vmem:[#allocation9 + $0x44c] ss:$16 sps:$4 sm:$0xff]  }
 0x849   :  { %8287 = vmatpush1.bf16.msra.mxu1 %v10717_v25  ;;  %8247 = vmatprep.subr.bf16.mxu0 %v10722_v7  ;;  %v10791_v25 = vld [vmem:[#allocation9 + $0x64c] ss:$16 sps:$4 sm:$0xff]   ;;  %v10786_v7 = vld [vmem:[#allocation9 + $0x448] ss:$16 sps:$4 sm:$0xff]  }
 0x84a   :  { %8288 = vmatprep.subr.bf16.mxu1 %v10725_v39  ;;  %v10794_v39 = vld [vmem:[#allocation9 + $0x46c] ss:$16 sps:$4 sm:$0xff]  }
 0x84c   :  { %8248 = vmatpush1.bf16.msra.mxu0 %v10720_v50  ;;  %v10792_v50 = vld [vmem:[#allocation9 + $0x468] ss:$16 sps:$4 sm:$0xff]  }
 0x84d   :  { %8289 = vmatpush1.bf16.msra.mxu1 %v10723_v26  ;;  %8249 = vmatprep.subr.bf16.mxu0 %v10728_v5  ;;  %v10800_v26 = vld [vmem:[#allocation9 + $0x48c] ss:$16 sps:$4 sm:$0xff]  }
 0x84e   :  { %8290 = vmatprep.subr.bf16.mxu1 %v10731_v29  ;;  %v10803_v5 = vld [vmem:[#allocation9 + $0x68c] ss:$16 sps:$4 sm:$0xff]   ;;  %v11581_v29 = vld [vmem:[%s11628_s12] sm:$0xf] }
 0x850   :  { %8250 = vmatpush1.bf16.msra.mxu0 %v10726_v48  ;;  %v10801_v48 = vld [vmem:[#allocation9 + $0x688] ss:$16 sps:$4 sm:$0xff]  }
 0x851   :  { %8291 = vmatpush1.bf16.msra.mxu1 %v10729_v2  ;;  %8251 = vmatprep.subr.bf16.mxu0 %v10734_v35  ;;  %v10806_v2 = vld [vmem:[#allocation9 + $0x4ac] ss:$16 sps:$4 sm:$0xff]  }
 0x852   :  { %8292 = vmatprep.subr.bf16.mxu1 %v10737_v46  ;;  %v10809_v35 = vld [vmem:[#allocation9 + $0x6ac] ss:$16 sps:$4 sm:$0xff]   ;;  %v6772_v46 = vrot.slane %v11581_v29, %v11269_v28 }
 0x854   :  { %8252 = vmatpush1.bf16.msra.mxu0 %v10732_v3  ;;  %v10804_v3 = vld [vmem:[#allocation9 + $0x4a8] ss:$16 sps:$4 sm:$0xff]  }
 0x855   :  { %8293 = vmatpush1.bf16.msra.mxu1 %v10735_v45  ;;  %8253 = vmatprep.subr.bf16.mxu0 %v10740_v47  ;;  %v6776_v45 = vrot.slane %v11581_v29, %v11275_v30  ;;  %v10807_v47 = vld [vmem:[#allocation9 + $0x6a8] ss:$16 sps:$4 sm:$0xff]  }
 0x856   :  { %8294 = vmatprep.subr.bf16.mxu1 %v10743_v6  ;;  %v10812_v6 = vld [vmem:[#allocation9 + $0x4cc] ss:$16 sps:$4 sm:$0xff]  }
 0x858   :  { %8254 = vmatpush1.bf16.msra.mxu0 %v10738_v27 }
 0x859   :  { %8295 = vmatpush1.bf16.msra.mxu1 %v10741_v38  ;;  %8255 = vmatprep.subr.bf16.mxu0 %v10746_v11  ;;  %v10815_v11 = vld [vmem:[#allocation9 + $0x6cc] ss:$16 sps:$4 sm:$0xff]  }
 0x85a   :  { %8296 = vmatprep.subr.bf16.mxu1 %v10749_v52 }
 0x85c   :  { %8256 = vmatpush1.bf16.msra.mxu0 %v10744_v54 }
 0x85d   :  { %8297 = vmatpush1.bf16.msra.mxu1 %v10747_v32  ;;  %8257 = vmatprep.subr.bf16.mxu0 %v10752_v24 }
 0x85e   :  { %8298 = vmatprep.subr.bf16.mxu1 %v10755_v10 }
 0x860   :  { %8258 = vmatpush1.bf16.msra.mxu0 %v10750_v57  ;;  %v10810_v57 = vld [vmem:[#allocation9 + $0x4c8] ss:$16 sps:$4 sm:$0xff]  }
 0x861   :  { %8299 = vmatpush1.bf16.msra.mxu1 %v10753_v58  ;;  %8259 = vmatprep.subr.bf16.mxu0 %v10758_v59 }
 0x862   :  { %8300 = vmatprep.subr.bf16.mxu1 %v10761_v60  ;;  %v10813_v60 = vld [vmem:[#allocation9 + $0x6c8] ss:$16 sps:$4 sm:$0xff]  }
 0x864   :  { %8260 = vmatpush1.bf16.msra.mxu0 %v10756_v61  ;;  %v10818_v61 = vld [vmem:[#allocation9 + $0x4ec] ss:$16 sps:$4 sm:$0xff]  }
 0x865   :  { %8301 = vmatpush1.bf16.msra.mxu1 %v10759_v16  ;;  %8261 = vmatprep.subr.bf16.mxu0 %v10764_v62  ;;  %v10821_v62 = vld [vmem:[#allocation9 + $0x6ec] ss:$16 sps:$4 sm:$0xff]  }
 0x866   :  { %8302 = vmatprep.subr.bf16.mxu1 %v10767_v63  ;;  %v10816_v63 = vld [vmem:[#allocation9 + $0x4e8] ss:$16 sps:$4 sm:$0xff]  }
 0x868   :  { %8262 = vmatpush1.bf16.msra.mxu0 %v10762_v40  ;;  %v10819_v40 = vld [vmem:[#allocation9 + $0x6e8] ss:$16 sps:$4 sm:$0xff]  }
 0x869   :  { %8303 = vmatpush1.bf16.msra.mxu1 %v10765_v1  ;;  %8263 = vmatprep.subr.bf16.mxu0 %v10770_v49  ;;  %v10824_v1 = vld [vmem:[#allocation9 + $0x50c] ss:$16 sps:$4 sm:$0xff]  }
 0x86a   :  { %8304 = vmatprep.subr.bf16.mxu1 %v10773_v4  ;;  %v10827_v49 = vld [vmem:[#allocation9 + $0x70c] ss:$16 sps:$4 sm:$0xff]   ;;  %v10822_v4 = vld [vmem:[#allocation9 + $0x508] ss:$16 sps:$4 sm:$0xff]  }
 0x86c   :  { %8264 = vmatpush1.bf16.msra.mxu0 %v10768_v43  ;;  %v10825_v43 = vld [vmem:[#allocation9 + $0x708] ss:$16 sps:$4 sm:$0xff]  }
 0x86d   :  { %8305 = vmatpush1.bf16.msra.mxu1 %v10771_v8  ;;  %8315 = vmatprep.subr.bf16.mxu0 %v10776_v51  ;;  %v10830_v8 = vld [vmem:[#allocation9 + $0x52c] ss:$16 sps:$4 sm:$0xff]  }
 0x86e   :  { %8356 = vmatprep.subr.bf16.mxu1 %v10779_v42  ;;  %v10833_v51 = vld [vmem:[#allocation9 + $0x72c] ss:$16 sps:$4 sm:$0xff]   ;;  %v10828_v42 = vld [vmem:[#allocation9 + $0x528] ss:$16 sps:$4 sm:$0xff]  }
 0x86f   :  { %8266 = vmatmul.mubr.bf16.vlgmr.msra.gmra.mrb[44].mxu0 %v11540_v44  ;;  %v10789_v44 = vld [vmem:[#allocation9 + $0x648] ss:$16 sps:$4 sm:$0xff]  }
 0x870   :  { %8307 = vmatmul.mubr.bf16.vlgmr.msra.gmra.mrb[44].mxu1 %v11542_v9  ;;  %8316 = vmatpush1.bf16.msra.mxu0 %v10774_v12  ;;  %v10797_v9 = vld [vmem:[#allocation9 + $0x66c] ss:$16 sps:$4 sm:$0xff]   ;;  %v10831_v12 = vld [vmem:[#allocation9 + $0x728] ss:$16 sps:$4 sm:$0xff]  }
 0x871   :  { %8347 = vmatprep.mubr.bf16.mxu0 %v11560_v55  ;;  %8357 = vmatpush1.bf16.msra.mxu1 %v10777_v13  ;;  %v10795_v55 = vld [vmem:[#allocation9 + $0x668] ss:$16 sps:$4 sm:$0xff]   ;;  %v10836_v13 = vld [vmem:[#allocation9 + $0x54c] ss:$16 sps:$4 sm:$0xff]  }
 0x872   :  { %8388 = vmatprep.mubr.bf16.mxu1 %v11564_v36  ;;  %8317 = vmatprep.subr.bf16.mxu0 %v10782_v14  ;;  %v10798_v36 = vld [vmem:[#allocation9 + $0x488] ss:$16 sps:$4 sm:$0xff]   ;;  %v10839_v14 = vld [vmem:[#allocation9 + $0x74c] ss:$16 sps:$4 sm:$0xff]  }
 0x873   :  { %8358 = vmatprep.subr.bf16.mxu1 %v10785_v17  ;;  %v10834_v17 = vld [vmem:[#allocation9 + $0x548] ss:$16 sps:$4 sm:$0xff]  }
 0x874   :  { %8318 = vmatpush1.bf16.msra.mxu0 %v10780_v19  ;;  %v10837_v19 = vld [vmem:[#allocation9 + $0x748] ss:$16 sps:$4 sm:$0xff]  }
 0x875   :  { %8359 = vmatpush1.bf16.msra.mxu1 %v10783_v22  ;;  %8319 = vmatprep.subr.bf16.mxu0 %v10788_v0  ;;  %v10842_v22 = vld [vmem:[#allocation9 + $0x56c] ss:$16 sps:$4 sm:$0xff]  }
 0x876   :  { %8360 = vmatprep.subr.bf16.mxu1 %v10791_v25  ;;  %v10845_v0 = vld [vmem:[#allocation9 + $0x76c] ss:$16 sps:$4 sm:$0xff]   ;;  %v10840_v25 = vld [vmem:[#allocation9 + $0x568] ss:$16 sps:$4 sm:$0xff]  }
 0x878   :  { %8320 = vmatpush1.bf16.msra.mxu0 %v10786_v7  ;;  %v10843_v7 = vld [vmem:[#allocation9 + $0x768] ss:$16 sps:$4 sm:$0xff]  }
 0x879   :  { %8361 = vmatpush1.bf16.msra.mxu1 %v10789_v44  ;;  %8321 = vmatprep.subr.bf16.mxu0 %v10794_v39  ;;  %v10848_v44 = vld [vmem:[#allocation9 + $0x58c] ss:$16 sps:$4 sm:$0xff]  }
 0x87a   :  { %8362 = vmatprep.subr.bf16.mxu1 %v10797_v9  ;;  %v10851_v39 = vld [vmem:[#allocation9 + $0x78c] ss:$16 sps:$4 sm:$0xff]   ;;  %v10846_v9 = vld [vmem:[#allocation9 + $0x588] ss:$16 sps:$4 sm:$0xff]  }
 0x87c   :  { %8322 = vmatpush1.bf16.msra.mxu0 %v10792_v50  ;;  %v10849_v50 = vld [vmem:[#allocation9 + $0x788] ss:$16 sps:$4 sm:$0xff]  }
 0x87d   :  { %8363 = vmatpush1.bf16.msra.mxu1 %v10795_v55  ;;  %8323 = vmatprep.subr.bf16.mxu0 %v10800_v26  ;;  %v10854_v55 = vld [vmem:[#allocation9 + $0x5ac] ss:$16 sps:$4 sm:$0xff]  }
 0x87e   :  { %8364 = vmatprep.subr.bf16.mxu1 %v10803_v5  ;;  %v10857_v26 = vld [vmem:[#allocation9 + $0x7ac] ss:$16 sps:$4 sm:$0xff]   ;;  %v10852_v5 = vld [vmem:[#allocation9 + $0x5a8] ss:$16 sps:$4 sm:$0xff]  }
 0x880   :  { %8324 = vmatpush1.bf16.msra.mxu0 %v10798_v36  ;;  %v10855_v36 = vld [vmem:[#allocation9 + $0x7a8] ss:$16 sps:$4 sm:$0xff]  }
 0x881   :  { %8365 = vmatpush1.bf16.msra.mxu1 %v10801_v48  ;;  %8325 = vmatprep.subr.bf16.mxu0 %v10806_v2  ;;  %v10860_v48 = vld [vmem:[#allocation9 + $0x5cc] ss:$16 sps:$4 sm:$0xff]  }
 0x882   :  { %8366 = vmatprep.subr.bf16.mxu1 %v10809_v35  ;;  %v8103_v27 = vpop.f32.mrb[36].mxu0  ;;  %v8144_v38 = vpop.f32.mrb[36].mxu1  ;;  %v10863_v2 = vld [vmem:[#allocation9 + $0x7cc] ss:$16 sps:$4 sm:$0xff]   ;;  %v10858_v35 = vld [vmem:[#allocation9 + $0x5c8] ss:$16 sps:$4 sm:$0xff]  }
 0x883   :  { %v8104_v52 = vadd.f32 %v8103_v27, %v6772_v46  ;;  %v8105_v54 = vpop.f32.mrb[37].mxu0  ;;  %v8146_v32 = vpop.f32.mrb[37].mxu1  ;;  %v10861_v46 = vld [vmem:[#allocation9 + $0x7c8] ss:$16 sps:$4 sm:$0xff]   ;;  %v10870_v27 = vld [vmem:[#allocation10 + $0x40] sm:$0xff]  }
 0x884   :  { %8326 = vmatpush1.bf16.msra.mxu0 %v10804_v3  ;;  %v8106_v24 = vadd.f32 %v8105_v54, %v6776_v45  ;;  %v8107_v10 = vpop.f32.mrb[38].mxu0  ;;  %v8148_v28 = vpop.f32.mrb[38].mxu1  ;;  %v10866_v3 = vld [vmem:[#allocation9 + $0x5ec] ss:$16 sps:$4 sm:$0xff]   ;;  %v10874_v54 = vld [vmem:[#allocation10 + $0x50] sm:$0xff]  }
 0x885   :  { %v11587_v58 = vadd.f32 %v8144_v38, %v8104_v52  ;;  %8367 = vmatpush1.bf16.msra.mxu1 %v10807_v47  ;;  %v8108_v30 = vpop.f32.mrb[39].mxu0  ;;  %v8149_v59 = vpop.f32.mrb[39].mxu1  ;;  %8327 = vmatprep.subr.bf16.mxu0 %v10812_v6  ;;  %v10869_v45 = vld [vmem:[#allocation9 + $0x7ec] ss:$16 sps:$4 sm:$0xff]   ;;  %v10864_v47 = vld [vmem:[#allocation9 + $0x5e8] ss:$16 sps:$4 sm:$0xff]  }
 0x886   :  { %v11589_v16 = vadd.f32 %v8146_v32, %v8106_v24  ;;  %8368 = vmatprep.subr.bf16.mxu1 %v10815_v11  ;;  %v10867_v6 = vld [vmem:[#allocation9 + $0x7e8] ss:$16 sps:$4 sm:$0xff]   ;;  %v10871_v38 = vld [vmem:[#allocation10] sm:$0xff]   ;;  %v10875_v32 = vld [vmem:[#allocation10 + $0x10] sm:$0xff]  }
 0x887   :  { %v10872_v11 = vld [vmem:[#allocation10 + $0x48] sm:$0xff]   ;;  %v10876_v24 = vld [vmem:[#allocation10 + $0x58] sm:$0xff]   ;;  %v10878_v28 = vld [vmem:[#allocation10 + $0x60] sm:$0xff]  }
 0x888   :  { %8328 = vmatpush1.bf16.msra.mxu0 %v10810_v57  ;;  %v10873_v52 = vld [vmem:[#allocation10 + $0x8] sm:$0xff]   ;;  %v10877_v10 = vld [vmem:[#allocation10 + $0x18] sm:$0xff]   ;;  %v10879_v57 = vld [vmem:[#allocation10 + $0x20] sm:$0xff]  }
 0x889   :  { %8369 = vmatpush1.bf16.msra.mxu1 %v10813_v60  ;;  %8329 = vmatprep.subr.bf16.mxu0 %v10818_v61  ;;  %v10880_v30 = vld [vmem:[#allocation10 + $0x68] sm:$0xff]   ;;  %v10883_v59 = vld [vmem:[#allocation10 + $0x30] sm:$0xff]   ;;  %v10884_v60 = vld [vmem:[#allocation10 + $0x78] sm:$0xff]  }
 0x88a   :  { %8370 = vmatprep.subr.bf16.mxu1 %v10821_v62  ;;  %v10886_v61 = vld [vmem:[#allocation10 + $0xc0] sm:$0xff]  }
 0x88b   :  { %v10887_v62 = vld [vmem:[#allocation10 + $0x80] sm:$0xff]  }
 0x88c   :  { %8330 = vmatpush1.bf16.msra.mxu0 %v10816_v63  ;;  %v10888_v63 = vld [vmem:[#allocation10 + $0xc8] sm:$0xff]  }
 0x88d   :  { %8371 = vmatpush1.bf16.msra.mxu1 %v10819_v40  ;;  %8331 = vmatprep.subr.bf16.mxu0 %v10824_v1  ;;  %v10885_v40 = vld [vmem:[#allocation10 + $0x38] sm:$0xff]   ;;  %v10889_v1 = vld [vmem:[#allocation10 + $0x88] sm:$0xff]  }
 0x88e   :  { %8372 = vmatprep.subr.bf16.mxu1 %v10827_v49  ;;  %v10890_v49 = vld [vmem:[#allocation10 + $0xd0] sm:$0xff]  }
 0x890   :  { %8332 = vmatpush1.bf16.msra.mxu0 %v10822_v4  ;;  %v10891_v4 = vld [vmem:[#allocation10 + $0x90] sm:$0xff]  }
 0x891   :  { %8373 = vmatpush1.bf16.msra.mxu1 %v10825_v43  ;;  %8333 = vmatprep.subr.bf16.mxu0 %v10830_v8  ;;  %v10892_v43 = vld [vmem:[#allocation10 + $0xd8] sm:$0xff]  }
 0x892   :  { %8374 = vmatprep.subr.bf16.mxu1 %v10833_v51  ;;  %v10893_v8 = vld [vmem:[#allocation10 + $0x98] sm:$0xff]   ;;  %v10894_v51 = vld [vmem:[#allocation10 + $0xe0] sm:$0xff]  }
 0x894   :  { %8334 = vmatpush1.bf16.msra.mxu0 %v10828_v42  ;;  %v10895_v42 = vld [vmem:[#allocation10 + $0xa0] sm:$0xff]  }
 0x895   :  { %8375 = vmatpush1.bf16.msra.mxu1 %v10831_v12  ;;  %8335 = vmatprep.subr.bf16.mxu0 %v10836_v13  ;;  %v10896_v12 = vld [vmem:[#allocation10 + $0xe8] sm:$0xff]  }
 0x896   :  { %8376 = vmatprep.subr.bf16.mxu1 %v10839_v14  ;;  %v10897_v14 = vld [vmem:[#allocation10 + $0xa8] sm:$0xff]  }
 0x898   :  { %8336 = vmatpush1.bf16.msra.mxu0 %v10834_v17 }
 0x899   :  { %8377 = vmatpush1.bf16.msra.mxu1 %v10837_v19  ;;  %8337 = vmatprep.subr.bf16.mxu0 %v10842_v22 }
 0x89a   :  { %8378 = vmatprep.subr.bf16.mxu1 %v10845_v0 }
 0x89c   :  { %8338 = vmatpush1.bf16.msra.mxu0 %v10840_v25 }
 0x89d   :  { %8379 = vmatpush1.bf16.msra.mxu1 %v10843_v7  ;;  %8339 = vmatprep.subr.bf16.mxu0 %v10848_v44 }
 0x89e   :  { %8380 = vmatprep.subr.bf16.mxu1 %v10851_v39 }
 0x8a0   :  { %8340 = vmatpush1.bf16.msra.mxu0 %v10846_v9 }
 0x8a1   :  { %8381 = vmatpush1.bf16.msra.mxu1 %v10849_v50  ;;  %8341 = vmatprep.subr.bf16.mxu0 %v10854_v55  ;;  %v10898_v50 = vld [vmem:[#allocation10 + $0xf0] sm:$0xff]  }
 0x8a2   :  { %8382 = vmatprep.subr.bf16.mxu1 %v10857_v26 }
 0x8a4   :  { %8342 = vmatpush1.bf16.msra.mxu0 %v10852_v5  ;;  %v10899_v5 = vld [vmem:[#allocation10 + $0xb0] sm:$0xff]  }
 0x8a5   :  { %8383 = vmatpush1.bf16.msra.mxu1 %v10855_v36  ;;  %8343 = vmatprep.subr.bf16.mxu0 %v10860_v48 }
 0x8a6   :  { %8384 = vmatprep.subr.bf16.mxu1 %v10863_v2 }
 0x8a8   :  { %8344 = vmatpush1.bf16.msra.mxu0 %v10858_v35  ;;  %v10901_v35 = vld [vmem:[#allocation10 + $0xb8] sm:$0xff]  }
 0x8a9   :  { %8385 = vmatpush1.bf16.msra.mxu1 %v10861_v46  ;;  %8345 = vmatprep.subr.bf16.mxu0 %v10866_v3  ;;  %v6780_v46 = vrot.slane %v11581_v29, %v11278_v31  ;;  %v6784_v3 = vrot.slane %v11581_v29, %v11283_v33 }
 0x8aa   :  { %8386 = vmatprep.subr.bf16.mxu1 %v10869_v45 }
 0x8ac   :  { %8346 = vmatpush1.bf16.msra.mxu0 %v10864_v47 }
 0x8ad   :  { %8387 = vmatpush1.bf16.msra.mxu1 %v10867_v6  ;;  %9900 = vmatprep.subr.bf16.mxu0 %v10870_v27 }
 0x8ae   :  { %9922 = vmatprep.subr.bf16.mxu1 %v10886_v61 }
 0x8af   :  { %8348 = vmatmul.mubr.bf16.vlgmr.msra.gmra.mrb[48].mxu0 %v11562_v53  ;;  %v10881_v53 = vld [vmem:[#allocation10 + $0x28] sm:$0xff]  }
 0x8b0   :  { %8389 = vmatmul.mubr.bf16.vlgmr.msra.gmra.mrb[48].mxu1 %v11566_v56  ;;  %9901 = vmatpush3.bf16.msra.mxu0 %v10871_v38  ;;  %v10882_v56 = vld [vmem:[#allocation10 + $0x70] sm:$0xff]  }
 0x8b1   :  { %9902 = vmatprep.subr.bf16.mxu0 %v10872_v11  ;;  %9923 = vmatpush3.bf16.msra.mxu1 %v10887_v62 }
 0x8b2   :  { %9924 = vmatprep.subr.bf16.mxu1 %v10888_v63 }
 0x8b4   :  { %9903 = vmatpush3.bf16.msra.mxu0 %v10873_v52 }
 0x8b5   :  { %9904 = vmatprep.subr.bf16.mxu0 %v10874_v54  ;;  %9925 = vmatpush3.bf16.msra.mxu1 %v10889_v1 }
 0x8b6   :  { %9926 = vmatprep.subr.bf16.mxu1 %v10890_v49 }
 0x8b8   :  { %9905 = vmatpush3.bf16.msra.mxu0 %v10875_v32 }
 0x8b9   :  { %9906 = vmatprep.subr.bf16.mxu0 %v10876_v24  ;;  %9927 = vmatpush3.bf16.msra.mxu1 %v10891_v4 }
 0x8ba   :  { %9928 = vmatprep.subr.bf16.mxu1 %v10892_v43 }
 0x8bc   :  { %9907 = vmatpush3.bf16.msra.mxu0 %v10877_v10 }
 0x8bd   :  { %9908 = vmatprep.subr.bf16.mxu0 %v10878_v28  ;;  %9929 = vmatpush3.bf16.msra.mxu1 %v10893_v8 }
 0x8be   :  { %9930 = vmatprep.subr.bf16.mxu1 %v10894_v51 }
 0x8c0   :  { %9909 = vmatpush3.bf16.msra.mxu0 %v10879_v57 }
 0x8c1   :  { %9910 = vmatprep.subr.bf16.mxu0 %v10880_v30  ;;  %9931 = vmatpush3.bf16.msra.mxu1 %v10895_v42  ;;  %v11064_v42 = vmov 51  }
 0x8c2   :  { %9932 = vmatprep.subr.bf16.mxu1 %v10896_v12  ;;  %10005 = vset.pattern.permute.xlu0 %v11064_v42  ;;  %v9867_v12 = vld [vmem:[%s11630_s14] ss:$0 sm:$0xff] }
 0x8c4   :  { %9911 = vmatpush3.bf16.msra.mxu0 %v10881_v53 }
 0x8c5   :  { %9912 = vmatprep.subr.bf16.mxu0 %v10882_v56  ;;  %9933 = vmatpush3.bf16.msra.mxu1 %v10897_v14 }
 0x8c6   :  { %9934 = vmatprep.subr.bf16.mxu1 %v10898_v50 }
 0x8c8   :  { %9913 = vmatpush3.bf16.msra.mxu0 %v10883_v59 }
 0x8c9   :  { %9914 = vmatprep.subr.bf16.mxu0 %v10884_v60  ;;  %9935 = vmatpush3.bf16.msra.mxu1 %v10899_v5 }
 0x8cc   :  { %9915 = vmatpush3.bf16.msra.mxu0 %v10885_v40 }
 0x902   :  { %v8185_v13 = vpop.f32.mrb[40].mxu0 }
 0x903   :  { %v8186_v17 = vadd.f32 %v8185_v13, %v11587_v58  ;;  %v8226_v19 = vpop.f32.mrb[40].mxu1  ;;  %v8187_v22 = vpop.f32.mrb[41].mxu0  ;;  %v10900_v58 = vld [vmem:[#allocation10 + $0xf8] sm:$0xff]  }
 0x904   :  { %v8188_v0 = vadd.f32 %v8187_v22, %v11589_v16  ;;  %v8228_v25 = vpop.f32.mrb[41].mxu1  ;;  %v8189_v7 = vpop.f32.mrb[42].mxu0  ;;  %9936 = vmatprep.subr.bf16.mxu1 %v10900_v58 }
 0x905   :  { %v8227_v44 = vadd.f32 %v8226_v19, %v8186_v17  ;;  %v8230_v39 = vpop.f32.mrb[42].mxu1  ;;  %v8190_v9 = vpop.f32.mrb[43].mxu0  ;;  %9937 = vmatpush3.bf16.msra.mxu1 %v10901_v35 }
 0x906   :  { %v8229_v55 = vadd.f32 %v8228_v25, %v8188_v0  ;;  %v8231_v26 = vpop.f32.mrb[43].mxu1 }
 0x907   :  { %v8397_v36 = vadd.f32 %v8227_v44, %v11454_v18 }
 0x908   :  { %v8398_v48 = vadd.f32 %v8229_v55, %v11457_v21 }
 0x909   :  { %v8401_v16 = vpack.c.bf16 %v8397_v36, %v8397_v36 }
 0x90a   :  { %v8402_v2 = vpack.c.bf16 %v8398_v48, %v8398_v48 }
 0x90c   :  { %8700 = vmatprep.mubr.bf16.mxu0 %v8402_v2 }
 0x90d   :  { %8701 = vmatmul.mubr.bf16.vlgmr.msra.gmra.mrb[52].mxu0 %v8401_v16 }
 0x942   :  { %v8267_v45 = vpop.f32.mrb[44].mxu0 }
 0x943   :  { %v8268_v18 = vadd.f32 %v8267_v45, %v6780_v46  ;;  %v8308_v47 = vpop.f32.mrb[44].mxu1  ;;  %v8269_v6 = vpop.f32.mrb[45].mxu0 }
 0x944   :  { %v8270_v21 = vadd.f32 %v8269_v6, %v6784_v3  ;;  %v8310_v27 = vpop.f32.mrb[45].mxu1  ;;  %v8271_v38 = vpop.f32.mrb[46].mxu0 }
 0x945   :  { %v8309_v11 = vadd.f32 %v8308_v47, %v8268_v18  ;;  %v8312_v52 = vpop.f32.mrb[46].mxu1  ;;  %v8272_v54 = vpop.f32.mrb[47].mxu0 }
 0x946   :  { %v8311_v32 = vadd.f32 %v8310_v27, %v8270_v21  ;;  %v8313_v24 = vpop.f32.mrb[47].mxu1 }
 0x982   :  { %v8349_v10 = vpop.f32.mrb[48].mxu0 }
 0x983   :  { %v8350_v28 = vadd.f32 %v8349_v10, %v8309_v11  ;;  %v8390_v57 = vpop.f32.mrb[48].mxu1  ;;  %v8351_v30 = vpop.f32.mrb[49].mxu0 }
 0x984   :  { %v8352_v31 = vadd.f32 %v8351_v30, %v8311_v32  ;;  %v8392_v53 = vpop.f32.mrb[49].mxu1  ;;  %v8353_v56 = vpop.f32.mrb[50].mxu0 }
 0x985   :  { %v8391_v33 = vadd.f32 %v8390_v57, %v8350_v28  ;;  %v8394_v29 = vpop.f32.mrb[50].mxu1  ;;  %v8354_v59 = vpop.f32.mrb[51].mxu0 }
 0x986   :  { %v8393_v60 = vadd.f32 %v8392_v53, %v8352_v31  ;;  %v8395_v61 = vpop.f32.mrb[51].mxu1 }
 0x987   :  { %v8399_v62 = vadd.f32 %v8391_v33, %v11492_v41 }
 0x988   :  { %v8400_v63 = vadd.f32 %v8393_v60, %v11495_v15 }
 0x989   :  { %v8403_v1 = vpack.c.bf16 %v8399_v62, %v8399_v62 }
 0x98a   :  { %v8404_v40 = vpack.c.bf16 %v8400_v63, %v8400_v63 }
 0x98c   :  { %8740 = vmatprep.mubr.bf16.mxu1 %v8404_v40 }
 0x98d   :  { %8741 = vmatmul.mubr.bf16.vlgmr.msra.gmra.mrb[52].mxu1 %v8403_v1 }
 0x9e0   :  { %v9916_v49 = vpop.f32.mrb[52].mxu0 }
 0x9e1   :  { %v9917_v4 = vpop.f32.mrb[53].mxu0 }
 0x9e2   :  { %v9918_v43 = vadd.f32 %v9917_v4, %v9916_v49  ;;  %v9919_v8 = vpop.f32.mrb[54].mxu0 }
 0x9e3   :  { %v9920_v51 = vpop.f32.mrb[55].mxu0 }
 0x9e4   :  { %v8703_v41 = vadd.f32 %v9918_v43, %v9867_v12 }
 0xa60   :  { %v9938_v13 = vpop.f32.mrb[52].mxu1 }
 0xa61   :  { %v9939_v14 = vpop.f32.mrb[53].mxu1 }
 0xa62   :  { %v9940_v17 = vadd.f32 %v9939_v14, %v9938_v13  ;;  %v9941_v15 = vpop.f32.mrb[54].mxu1 }
 0xa63   :  { %v9942_v19 = vpop.f32.mrb[55].mxu1 }
 0xa64   :  { %v8743_v22 = vadd.f32 %v9940_v17, %v8703_v41 }
 0xa66   :  { %v8749_v0 = vsel %vm8748_vm3, %v8743_v22, -1e+30 }
 0xa67   :  { %8750 = vmax.xlane.f32.xlu0 %v8749_v0 }
 0xa7d   :  { %8762 = vperm.xlu0 %10005, %v11260_v23  }
 0xaf4   :  { %v8751_v25 = vpop.xlane.xlu0 %8750 }
 0xaf5   :  { %v8752_v7 = vsub.f32 %v8749_v0, %v8751_v25 }
 0xaf7   :  { %v8753_v44 = vmul.f32 1.442695, %v8752_v7 }
 0xaf9   :  { %10908 = vpow2.f32 %v8753_v44 }
 0xafc   :  { %v8763_v26 = vpop.permute.xlu0 %8762 }
 0xb03   :  { %v10909_v39 = vpop.eup %10908 }
 0xb04   :  { %8755 = vadd.xlane.f32.xlu1 %v10909_v39 }
 0xb91   :  { %v8756_v9 = vpop.xlane.xlu1 %8755 }
 0xb92   :  { %10910 = vrcp.f32 %v8756_v9 }
 0xb9c   :  { %v10911_v50 = vpop.eup %10910 }
 0xb9d   :  { %v8758_v55 = vmul.f32 %v10911_v50, %v10909_v39 }
 0xb9f   :  { %v8765_v5 = vsel %vm8759_vm4, %v8763_v26, %v8758_v55 }
 0xba0   :  { %v8767_v23 = vsel %vm8766_vm5, %v11242_v37, %v8765_v5 }
 0xba1   :  { %v8769_v36 = vsel %vm8768_vm6, %v11256_v20, %v8767_v23 }
 0xba2   :  { %8770 = vst [vmem:[%s11633_s21] sm:$0xff] %v8769_v36 }
 0xba3   :  { %8775 = vsyncpa [#allocation3], 1 }
 0xba4   :  { %8776 = vsyncpa [#allocation5], 1 }
 0xba5   :  { %8777 = vsyncpa [#allocation8], 1 }
 0xba6   :  { %8778 = vsyncpa [#allocation11], 1 }

</bundles_post_ra>
